<compile_context>
chip_gen: v7x
topology: tpu7x:2x2x1
jax: 0.10.0
libtpu: 0.0.40
codegen_flags: <defaults>
</compile_context>

<pallas_src>
import math

import jax
import jax.numpy as jnp
from jax.experimental import pallas as pl
from jax.experimental.pallas import tpu as pltpu

# ----------------------------- configuration ---------------------------------
DIM = 128                  # "dim" in the PyTorch module (lane-dense feature width)
MULT = 4
HID = DIM * MULT           # 512 ; first Linear outputs 2*HID (GEGLU splits it in half)
BATCH = 4
SEQ = 64
CHUNK = 128                # HID lanes processed per fused GEGLU + matmul-2 step
INV_SQRT2 = 1.0 / math.sqrt(2.0)


# ----------------------------- kernel -----------------------------------------
def _erf(x):
    # Abramowitz & Stegun 7.1.26 (max abs err ~1.5e-7). Plain VPU/EUP ops only so it is
    # guaranteed to lower in Mosaic.
    p = 0.3275911
    a1, a2, a3, a4, a5 = 0.254829592, -0.284496736, 1.421413741, -1.453152027, 1.061405429
    sgn = jnp.where(x >= 0.0, 1.0, -1.0)
    ax = jnp.abs(x)
    # approx reciprocal runs on the EUP slot (same unit as the exp below, which has slack).
    t = pl.reciprocal(1.0 + p * ax, approx=True)
    poly = ((((a5 * t + a4) * t + a3) * t + a2) * t + a1) * t
    return sgn * (1.0 - poly * jnp.exp(-ax * ax))


def _gelu_exact(x):
    return 0.5 * x * (1.0 + _erf(x * INV_SQRT2))


def _ff_kernel(x_ref, w1a_ref, b1a_ref, w1g_ref, b1g_ref, w2_ref, b2_ref,
               out_ref, acc_ref):
    """One (rows_per_tile, DIM) row tile of the FeedForward, chunked over HID.

    For each HID chunk c (CHUNK lanes):
        a_c  = x @ W1a[c] + b1a[c]
        g_c  = x @ W1g[c] + b1g[c]
        acc += (a_c * gelu(g_c)) @ W2[c]
    out = acc + b2
    """
    x_bf = x_ref[...].astype(jnp.bfloat16)          # (R, DIM) MXU operand
    n_chunks = w1a_ref.shape[0]

    # Short, fully unrolled static loop: chunk indices are compile-time constants,
    # so every ref slice is free and the accumulator lives in VMEM scratch.
    for c in range(n_chunks):
        a = jnp.dot(x_bf, w1a_ref[c], preferred_element_type=jnp.float32) + b1a_ref[c]
        g = jnp.dot(x_bf, w1g_ref[c], preferred_element_type=jnp.float32) + b1g_ref[c]
        geglu = (a * _gelu_exact(g)).astype(jnp.bfloat16)
        partial = jnp.dot(geglu, w2_ref[c], preferred_element_type=jnp.float32)
        if c == 0:
            acc_ref[...] = partial
        else:
            acc_ref[...] += partial

    out_ref[...] = acc_ref[...] + b2_ref[...]


# ----------------------------- wrapper -----------------------------------------
def feedforward(x, w1, b1, w2, b2, *, dropout=0.0, rows_per_tile=None, chunk=CHUNK):
    """FeedForward forward pass.

    x : (..., dim)          activations (float32)
    w1: (dim, 2*dim*mult)   first Linear weight, pre-transposed (torch weight.T)
    b1: (2*dim*mult,)
    w2: (dim*mult, dim)     second Linear weight, pre-transposed
    b2: (dim,)
    """
    # TODO(synk): Dropout is identity here (inference / p=0.0 only).
    if dropout != 0.0:
        raise NotImplementedError("dropout != 0.0 is not supported by this kernel")

    orig_shape = x.shape
    dim = orig_shape[-1]
    hid = w2.shape[0]
    assert w1.shape == (dim, 2 * hid) and b1.shape == (2 * hid,)
    assert w2.shape == (hid, dim) and b2.shape == (dim,)

    xf = x.reshape(-1, dim).astype(jnp.float32)     # flatten leading dims into rows
    n_rows = xf.shape[0]

    if rows_per_tile is None:
        # >=128 rows per tile fills the MXU M dimension; multiple "parallel" tiles keep
        # both v7x TensorCores busy (no-op on single-TC v5e/v6e).
        rows_per_tile = n_rows if n_rows <= 128 else 128
    assert n_rows % rows_per_tile == 0, (n_rows, rows_per_tile)
    grid = (n_rows // rows_per_tile,)

    assert hid % chunk == 0, (hid, chunk)
    nc = hid // chunk

    # Split W1 into the "a" half and the "gates" half, pre-chunk over HID, and store
    # the matmul weights in bf16 (f32 accumulation is kept via preferred_element_type).
    w1a = w1[:, :hid].reshape(dim, nc, chunk).transpose(1, 0, 2).astype(jnp.bfloat16)
    w1g = w1[:, hid:].reshape(dim, nc, chunk).transpose(1, 0, 2).astype(jnp.bfloat16)
    b1a = b1[:hid].reshape(nc, 1, chunk).astype(jnp.float32)
    b1g = b1[hid:].reshape(nc, 1, chunk).astype(jnp.float32)
    w2c = w2.reshape(nc, chunk, dim).astype(jnp.bfloat16)
    b2r = b2.reshape(1, dim).astype(jnp.float32)

    const3 = lambda i: (0, 0, 0)   # weights/biases: DMA'd once, VMEM-resident for the grid

    out = pl.pallas_call(
        _ff_kernel,
        out_shape=jax.ShapeDtypeStruct((n_rows, dim), jnp.float32),
        grid_spec=pltpu.PrefetchScalarGridSpec(
            num_scalar_prefetch=0,
            grid=grid,
            in_specs=[
                pl.BlockSpec((rows_per_tile, dim), lambda i: (i, 0)),
                pl.BlockSpec(w1a.shape, const3),
                pl.BlockSpec(b1a.shape, const3),
                pl.BlockSpec(w1g.shape, const3),
                pl.BlockSpec(b1g.shape, const3),
                pl.BlockSpec(w2c.shape, const3),
                pl.BlockSpec(b2r.shape, lambda i: (0, 0)),
            ],
            out_specs=pl.BlockSpec((rows_per_tile, dim), lambda i: (i, 0)),
            scratch_shapes=[pltpu.VMEM((rows_per_tile, dim), jnp.float32)],
        ),
        compiler_params=pltpu.CompilerParams(
            dimension_semantics=("parallel",)),
    )(xf, w1a, b1a, w1g, b1g, w2c, b2r)
    return out.reshape(orig_shape)


# ----------------------------- parameters --------------------------------------
def init_params(key):
    ks = jax.random.split(key, 4)
    sc = 0.05
    w1 = sc * jax.random.normal(ks[0], (DIM, 2 * HID), dtype=jnp.float32)  # Linear(dim, 2*dim*mult).weight.T
    b1 = sc * jax.random.normal(ks[1], (2 * HID,), dtype=jnp.float32)
    w2 = sc * jax.random.normal(ks[2], (HID, DIM), dtype=jnp.float32)      # Linear(dim*mult, dim).weight.T
    b2 = sc * jax.random.normal(ks[3], (DIM,), dtype=jnp.float32)
    return w1, b1, w2, b2


# ----------------------------- plain-JAX reference -----------------------------
def reference_forward(x, w1, b1, w2, b2):
    h = x @ w1 + b1
    hid = w2.shape[0]
    a, g = h[..., :hid], h[..., hid:]
    geglu = a * jax.nn.gelu(g, approximate=False)   # exact (erf) GELU == torch F.gelu default
    return geglu @ w2 + b2                          # Dropout = identity


# ----------------------------- main ---------------------------------------------
if __name__ == "__main__":
    key = jax.random.PRNGKey(0)
    kx, kp = jax.random.split(key)
    w1, b1, w2, b2 = init_params(kp)
    x = jax.random.normal(kx, (BATCH, SEQ, DIM), dtype=jnp.float32)

    out = feedforward(x, w1, b1, w2, b2)
    out = jax.block_until_ready(out)

    ref = reference_forward(x, w1, b1, w2, b2)
    assert out.shape == x.shape
    max_err = float(jnp.max(jnp.abs(out - ref)))
    # Tolerance accounts for bf16 weights/operands (accumulation stays f32).
    assert max_err < 3e-2, f"mismatch vs reference: max abs err = {max_err}"
    print("KERNEL_OK")
</pallas_src>

<mosaic_0001>
module attributes {stable_mosaic.version = 11 : i64} {
  func.func @_ff_kernel(%arg0: i32, %arg1: memref<128x128xf32, #tpu.memory_space<vmem>>, %arg2: memref<4x128x128xbf16, #tpu.memory_space<vmem>>, %arg3: memref<4x1x128xf32, #tpu.memory_space<vmem>>, %arg4: memref<4x128x128xbf16, #tpu.memory_space<vmem>>, %arg5: memref<4x1x128xf32, #tpu.memory_space<vmem>>, %arg6: memref<4x128x128xbf16, #tpu.memory_space<vmem>>, %arg7: memref<1x128xf32, #tpu.memory_space<vmem>>, %arg8: memref<128x128xf32, #tpu.memory_space<vmem>>, %arg9: memref<128x128xf32, #tpu.memory_space<vmem>>) attributes {dimension_semantics = [#tpu.dimension_semantics<parallel>], iteration_bounds = array<i64: 2>, scalar_prefetch = 0 : i64, scratch_operands = 1 : i64, tpu.core_type = #tpu.core_type<tc>, window_params = [{transform_indices = @transform_0, window_bounds = array<i64: 128, 128>}, {pipeline_mode = #tpu.pipeline_mode<synchronous>, transform_indices = @transform_1, window_bounds = array<i64: 4, 128, 128>}, {pipeline_mode = #tpu.pipeline_mode<synchronous>, transform_indices = @transform_2, window_bounds = array<i64: 4, 1, 128>}, {pipeline_mode = #tpu.pipeline_mode<synchronous>, transform_indices = @transform_3, window_bounds = array<i64: 4, 128, 128>}, {pipeline_mode = #tpu.pipeline_mode<synchronous>, transform_indices = @transform_4, window_bounds = array<i64: 4, 1, 128>}, {pipeline_mode = #tpu.pipeline_mode<synchronous>, transform_indices = @transform_5, window_bounds = array<i64: 4, 128, 128>}, {pipeline_mode = #tpu.pipeline_mode<synchronous>, transform_indices = @transform_6, window_bounds = array<i64: 1, 128>}, {transform_indices = @transform_7, window_bounds = array<i64: 128, 128>}]} {
    %c0 = arith.constant 0 : index
    %c0_0 = arith.constant 0 : index
    %0 = vector.load %arg1[%c0, %c0_0] : memref<128x128xf32, #tpu.memory_space<vmem>>, vector<128x128xf32>
    %1 = arith.truncf %0 : vector<128x128xf32> to vector<128x128xbf16>
    %c0_1 = arith.constant 0 : index
    %c0_2 = arith.constant 0 : index
    %c0_3 = arith.constant 0 : index
    %2 = vector.load %arg2[%c0_1, %c0_2, %c0_3] : memref<4x128x128xbf16, #tpu.memory_space<vmem>>, vector<1x128x128xbf16>
    %3 = vector.shape_cast %2 : vector<1x128x128xbf16> to vector<128x128xbf16>
    %cst = arith.constant dense<0.000000e+00> : vector<128x128xf32>
    %4 = tpu.matmul %1, %3, %cst {dimension_numbers = #tpu.dot_dimension_numbers<[1], [0], [0], [1], [0, 0, 1, 1], [], []>} : vector<128x128xbf16>, vector<128x128xbf16>, vector<128x128xf32> -> vector<128x128xf32>
    %c0_4 = arith.constant 0 : index
    %c0_5 = arith.constant 0 : index
    %c0_6 = arith.constant 0 : index
    %5 = vector.load %arg3[%c0_4, %c0_5, %c0_6] : memref<4x1x128xf32, #tpu.memory_space<vmem>>, vector<1x1x128xf32>
    %6 = vector.shape_cast %5 : vector<1x1x128xf32> to vector<1x128xf32>
    %7 = vector.broadcast %6 : vector<1x128xf32> to vector<128x128xf32>
    %8 = arith.addf %4, %7 : vector<128x128xf32>
    %c0_7 = arith.constant 0 : index
    %c0_8 = arith.constant 0 : index
    %c0_9 = arith.constant 0 : index
    %9 = vector.load %arg4[%c0_7, %c0_8, %c0_9] : memref<4x128x128xbf16, #tpu.memory_space<vmem>>, vector<1x128x128xbf16>
    %10 = vector.shape_cast %9 : vector<1x128x128xbf16> to vector<128x128xbf16>
    %cst_10 = arith.constant dense<0.000000e+00> : vector<128x128xf32>
    %11 = tpu.matmul %1, %10, %cst_10 {dimension_numbers = #tpu.dot_dimension_numbers<[1], [0], [0], [1], [0, 0, 1, 1], [], []>} : vector<128x128xbf16>, vector<128x128xbf16>, vector<128x128xf32> -> vector<128x128xf32>
    %c0_11 = arith.constant 0 : index
    %c0_12 = arith.constant 0 : index
    %c0_13 = arith.constant 0 : index
    %12 = vector.load %arg5[%c0_11, %c0_12, %c0_13] : memref<4x1x128xf32, #tpu.memory_space<vmem>>, vector<1x1x128xf32>
    %13 = vector.shape_cast %12 : vector<1x1x128xf32> to vector<1x128xf32>
    %14 = vector.broadcast %13 : vector<1x128xf32> to vector<128x128xf32>
    %15 = arith.addf %11, %14 : vector<128x128xf32>
    %cst_14 = arith.constant 5.000000e-01 : f32
    %16 = vector.broadcast %cst_14 : f32 to vector<128x128xf32>
    %17 = arith.mulf %16, %15 : vector<128x128xf32>
    %cst_15 = arith.constant 0.707106769 : f32
    %18 = vector.broadcast %cst_15 : f32 to vector<128x128xf32>
    %19 = arith.mulf %15, %18 : vector<128x128xf32>
    %cst_16 = arith.constant 0.000000e+00 : f32
    %20 = vector.broadcast %cst_16 : f32 to vector<128x128xf32>
    %21 = arith.cmpf oge, %19, %20 : vector<128x128xf32>
    %cst_17 = arith.constant 1.000000e+00 : f32
    %cst_18 = arith.constant -1.000000e+00 : f32
    %22 = vector.broadcast %cst_17 : f32 to vector<128x128xf32>
    %23 = vector.broadcast %cst_18 : f32 to vector<128x128xf32>
    %24 = arith.select %21, %22, %23 : vector<128x128xi1>, vector<128x128xf32>
    %25 = math.absf %19 : vector<128x128xf32>
    %cst_19 = arith.constant 0.327591091 : f32
    %26 = vector.broadcast %cst_19 : f32 to vector<128x128xf32>
    %27 = arith.mulf %26, %25 : vector<128x128xf32>
    %cst_20 = arith.constant 1.000000e+00 : f32
    %28 = vector.broadcast %cst_20 : f32 to vector<128x128xf32>
    %29 = arith.addf %28, %27 : vector<128x128xf32>
    %30 = tpu.reciprocal %29 {approx = true} : vector<128x128xf32> -> vector<128x128xf32>
    %cst_21 = arith.constant 1.06140542 : f32
    %31 = vector.broadcast %cst_21 : f32 to vector<128x128xf32>
    %32 = arith.mulf %31, %30 : vector<128x128xf32>
    %cst_22 = arith.constant -1.45315206 : f32
    %33 = vector.broadcast %cst_22 : f32 to vector<128x128xf32>
    %34 = arith.addf %32, %33 : vector<128x128xf32>
    %35 = arith.mulf %34, %30 : vector<128x128xf32>
    %cst_23 = arith.constant 1.42141378 : f32
    %36 = vector.broadcast %cst_23 : f32 to vector<128x128xf32>
    %37 = arith.addf %35, %36 : vector<128x128xf32>
    %38 = arith.mulf %37, %30 : vector<128x128xf32>
    %cst_24 = arith.constant -0.284496725 : f32
    %39 = vector.broadcast %cst_24 : f32 to vector<128x128xf32>
    %40 = arith.addf %38, %39 : vector<128x128xf32>
    %41 = arith.mulf %40, %30 : vector<128x128xf32>
    %cst_25 = arith.constant 0.254829586 : f32
    %42 = vector.broadcast %cst_25 : f32 to vector<128x128xf32>
    %43 = arith.addf %41, %42 : vector<128x128xf32>
    %44 = arith.mulf %43, %30 : vector<128x128xf32>
    %cst_26 = arith.constant 0.000000e+00 : f32
    %45 = vector.broadcast %cst_26 : f32 to vector<128x128xf32>
    %46 = arith.subf %45, %25 : vector<128x128xf32>
    %47 = arith.mulf %46, %25 : vector<128x128xf32>
    %48 = math.exp %47 : vector<128x128xf32>
    %49 = arith.mulf %44, %48 : vector<128x128xf32>
    %cst_27 = arith.constant 1.000000e+00 : f32
    %50 = vector.broadcast %cst_27 : f32 to vector<128x128xf32>
    %51 = arith.subf %50, %49 : vector<128x128xf32>
    %52 = arith.mulf %24, %51 : vector<128x128xf32>
    %cst_28 = arith.constant 1.000000e+00 : f32
    %53 = vector.broadcast %cst_28 : f32 to vector<128x128xf32>
    %54 = arith.addf %53, %52 : vector<128x128xf32>
    %55 = arith.mulf %17, %54 : vector<128x128xf32>
    %56 = arith.mulf %8, %55 : vector<128x128xf32>
    %57 = arith.truncf %56 : vector<128x128xf32> to vector<128x128xbf16>
    %c0_29 = arith.constant 0 : index
    %c0_30 = arith.constant 0 : index
    %c0_31 = arith.constant 0 : index
    %58 = vector.load %arg6[%c0_29, %c0_30, %c0_31] : memref<4x128x128xbf16, #tpu.memory_space<vmem>>, vector<1x128x128xbf16>
    %59 = vector.shape_cast %58 : vector<1x128x128xbf16> to vector<128x128xbf16>
    %cst_32 = arith.constant dense<0.000000e+00> : vector<128x128xf32>
    %60 = tpu.matmul %57, %59, %cst_32 {dimension_numbers = #tpu.dot_dimension_numbers<[1], [0], [0], [1], [0, 0, 1, 1], [], []>} : vector<128x128xbf16>, vector<128x128xbf16>, vector<128x128xf32> -> vector<128x128xf32>
    %c0_33 = arith.constant 0 : index
    %c0_34 = arith.constant 0 : index
    %61 = vector.load %arg9[%c0_33, %c0_34] : memref<128x128xf32, #tpu.memory_space<vmem>>, vector<128x128xf32>
    tpu.vector_store %arg9[%c0_33, %c0_34], %60 {strides = array<i32>} : memref<128x128xf32, #tpu.memory_space<vmem>>, vector<128x128xf32>,
    %c1 = arith.constant 1 : index
    %c0_35 = arith.constant 0 : index
    %c0_36 = arith.constant 0 : index
    %62 = vector.load %arg2[%c1, %c0_35, %c0_36] : memref<4x128x128xbf16, #tpu.memory_space<vmem>>, vector<1x128x128xbf16>
    %63 = vector.shape_cast %62 : vector<1x128x128xbf16> to vector<128x128xbf16>
    %cst_37 = arith.constant dense<0.000000e+00> : vector<128x128xf32>
    %64 = tpu.matmul %1, %63, %cst_37 {dimension_numbers = #tpu.dot_dimension_numbers<[1], [0], [0], [1], [0, 0, 1, 1], [], []>} : vector<128x128xbf16>, vector<128x128xbf16>, vector<128x128xf32> -> vector<128x128xf32>
    %c1_38 = arith.constant 1 : index
    %c0_39 = arith.constant 0 : index
    %c0_40 = arith.constant 0 : index
    %65 = vector.load %arg3[%c1_38, %c0_39, %c0_40] : memref<4x1x128xf32, #tpu.memory_space<vmem>>, vector<1x1x128xf32>
    %66 = vector.shape_cast %65 : vector<1x1x128xf32> to vector<1x128xf32>
    %67 = vector.broadcast %66 : vector<1x128xf32> to vector<128x128xf32>
    %68 = arith.addf %64, %67 : vector<128x128xf32>
    %c1_41 = arith.constant 1 : index
    %c0_42 = arith.constant 0 : index
    %c0_43 = arith.constant 0 : index
    %69 = vector.load %arg4[%c1_41, %c0_42, %c0_43] : memref<4x128x128xbf16, #tpu.memory_space<vmem>>, vector<1x128x128xbf16>
    %70 = vector.shape_cast %69 : vector<1x128x128xbf16> to vector<128x128xbf16>
    %cst_44 = arith.constant dense<0.000000e+00> : vector<128x128xf32>
    %71 = tpu.matmul %1, %70, %cst_44 {dimension_numbers = #tpu.dot_dimension_numbers<[1], [0], [0], [1], [0, 0, 1, 1], [], []>} : vector<128x128xbf16>, vector<128x128xbf16>, vector<128x128xf32> -> vector<128x128xf32>
    %c1_45 = arith.constant 1 : index
    %c0_46 = arith.constant 0 : index
    %c0_47 = arith.constant 0 : index
    %72 = vector.load %arg5[%c1_45, %c0_46, %c0_47] : memref<4x1x128xf32, #tpu.memory_space<vmem>>, vector<1x1x128xf32>
    %73 = vector.shape_cast %72 : vector<1x1x128xf32> to vector<1x128xf32>
    %74 = vector.broadcast %73 : vector<1x128xf32> to vector<128x128xf32>
    %75 = arith.addf %71, %74 : vector<128x128xf32>
    %cst_48 = arith.constant 5.000000e-01 : f32
    %76 = vector.broadcast %cst_48 : f32 to vector<128x128xf32>
    %77 = arith.mulf %76, %75 : vector<128x128xf32>
    %cst_49 = arith.constant 0.707106769 : f32
    %78 = vector.broadcast %cst_49 : f32 to vector<128x128xf32>
    %79 = arith.mulf %75, %78 : vector<128x128xf32>
    %cst_50 = arith.constant 0.000000e+00 : f32
    %80 = vector.broadcast %cst_50 : f32 to vector<128x128xf32>
    %81 = arith.cmpf oge, %79, %80 : vector<128x128xf32>
    %cst_51 = arith.constant 1.000000e+00 : f32
    %cst_52 = arith.constant -1.000000e+00 : f32
    %82 = vector.broadcast %cst_51 : f32 to vector<128x128xf32>
    %83 = vector.broadcast %cst_52 : f32 to vector<128x128xf32>
    %84 = arith.select %81, %82, %83 : vector<128x128xi1>, vector<128x128xf32>
    %85 = math.absf %79 : vector<128x128xf32>
    %cst_53 = arith.constant 0.327591091 : f32
    %86 = vector.broadcast %cst_53 : f32 to vector<128x128xf32>
    %87 = arith.mulf %86, %85 : vector<128x128xf32>
    %cst_54 = arith.constant 1.000000e+00 : f32
    %88 = vector.broadcast %cst_54 : f32 to vector<128x128xf32>
    %89 = arith.addf %88, %87 : vector<128x128xf32>
    %90 = tpu.reciprocal %89 {approx = true} : vector<128x128xf32> -> vector<128x128xf32>
    %cst_55 = arith.constant 1.06140542 : f32
    %91 = vector.broadcast %cst_55 : f32 to vector<128x128xf32>
    %92 = arith.mulf %91, %90 : vector<128x128xf32>
    %cst_56 = arith.constant -1.45315206 : f32
    %93 = vector.broadcast %cst_56 : f32 to vector<128x128xf32>
    %94 = arith.addf %92, %93 : vector<128x128xf32>
    %95 = arith.mulf %94, %90 : vector<128x128xf32>
    %cst_57 = arith.constant 1.42141378 : f32
    %96 = vector.broadcast %cst_57 : f32 to vector<128x128xf32>
    %97 = arith.addf %95, %96 : vector<128x128xf32>
    %98 = arith.mulf %97, %90 : vector<128x128xf32>
    %cst_58 = arith.constant -0.284496725 : f32
    %99 = vector.broadcast %cst_58 : f32 to vector<128x128xf32>
    %100 = arith.addf %98, %99 : vector<128x128xf32>
    %101 = arith.mulf %100, %90 : vector<128x128xf32>
    %cst_59 = arith.constant 0.254829586 : f32
    %102 = vector.broadcast %cst_59 : f32 to vector<128x128xf32>
    %103 = arith.addf %101, %102 : vector<128x128xf32>
    %104 = arith.mulf %103, %90 : vector<128x128xf32>
    %cst_60 = arith.constant 0.000000e+00 : f32
    %105 = vector.broadcast %cst_60 : f32 to vector<128x128xf32>
    %106 = arith.subf %105, %85 : vector<128x128xf32>
    %107 = arith.mulf %106, %85 : vector<128x128xf32>
    %108 = math.exp %107 : vector<128x128xf32>
    %109 = arith.mulf %104, %108 : vector<128x128xf32>
    %cst_61 = arith.constant 1.000000e+00 : f32
    %110 = vector.broadcast %cst_61 : f32 to vector<128x128xf32>
    %111 = arith.subf %110, %109 : vector<128x128xf32>
    %112 = arith.mulf %84, %111 : vector<128x128xf32>
    %cst_62 = arith.constant 1.000000e+00 : f32
    %113 = vector.broadcast %cst_62 : f32 to vector<128x128xf32>
    %114 = arith.addf %113, %112 : vector<128x128xf32>
    %115 = arith.mulf %77, %114 : vector<128x128xf32>
    %116 = arith.mulf %68, %115 : vector<128x128xf32>
    %117 = arith.truncf %116 : vector<128x128xf32> to vector<128x128xbf16>
    %c1_63 = arith.constant 1 : index
    %c0_64 = arith.constant 0 : index
    %c0_65 = arith.constant 0 : index
    %118 = vector.load %arg6[%c1_63, %c0_64, %c0_65] : memref<4x128x128xbf16, #tpu.memory_space<vmem>>, vector<1x128x128xbf16>
    %119 = vector.shape_cast %118 : vector<1x128x128xbf16> to vector<128x128xbf16>
    %cst_66 = arith.constant dense<0.000000e+00> : vector<128x128xf32>
    %120 = tpu.matmul %117, %119, %cst_66 {dimension_numbers = #tpu.dot_dimension_numbers<[1], [0], [0], [1], [0, 0, 1, 1], [], []>} : vector<128x128xbf16>, vector<128x128xbf16>, vector<128x128xf32> -> vector<128x128xf32>
    %c0_67 = arith.constant 0 : index
    %c0_68 = arith.constant 0 : index
    %121 = vector.load %arg9[%c0_67, %c0_68] : memref<128x128xf32, #tpu.memory_space<vmem>>, vector<128x128xf32>
    %122 = arith.addf %121, %120 : vector<128x128xf32>
    %c0_69 = arith.constant 0 : index
    %c0_70 = arith.constant 0 : index
    %123 = vector.load %arg9[%c0_69, %c0_70] : memref<128x128xf32, #tpu.memory_space<vmem>>, vector<128x128xf32>
    tpu.vector_store %arg9[%c0_69, %c0_70], %122 {strides = array<i32>} : memref<128x128xf32, #tpu.memory_space<vmem>>, vector<128x128xf32>,
    %c2 = arith.constant 2 : index
    %c0_71 = arith.constant 0 : index
    %c0_72 = arith.constant 0 : index
    %124 = vector.load %arg2[%c2, %c0_71, %c0_72] : memref<4x128x128xbf16, #tpu.memory_space<vmem>>, vector<1x128x128xbf16>
    %125 = vector.shape_cast %124 : vector<1x128x128xbf16> to vector<128x128xbf16>
    %cst_73 = arith.constant dense<0.000000e+00> : vector<128x128xf32>
    %126 = tpu.matmul %1, %125, %cst_73 {dimension_numbers = #tpu.dot_dimension_numbers<[1], [0], [0], [1], [0, 0, 1, 1], [], []>} : vector<128x128xbf16>, vector<128x128xbf16>, vector<128x128xf32> -> vector<128x128xf32>
    %c2_74 = arith.constant 2 : index
    %c0_75 = arith.constant 0 : index
    %c0_76 = arith.constant 0 : index
    %127 = vector.load %arg3[%c2_74, %c0_75, %c0_76] : memref<4x1x128xf32, #tpu.memory_space<vmem>>, vector<1x1x128xf32>
    %128 = vector.shape_cast %127 : vector<1x1x128xf32> to vector<1x128xf32>
    %129 = vector.broadcast %128 : vector<1x128xf32> to vector<128x128xf32>
    %130 = arith.addf %126, %129 : vector<128x128xf32>
    %c2_77 = arith.constant 2 : index
    %c0_78 = arith.constant 0 : index
    %c0_79 = arith.constant 0 : index
    %131 = vector.load %arg4[%c2_77, %c0_78, %c0_79] : memref<4x128x128xbf16, #tpu.memory_space<vmem>>, vector<1x128x128xbf16>
    %132 = vector.shape_cast %131 : vector<1x128x128xbf16> to vector<128x128xbf16>
    %cst_80 = arith.constant dense<0.000000e+00> : vector<128x128xf32>
    %133 = tpu.matmul %1, %132, %cst_80 {dimension_numbers = #tpu.dot_dimension_numbers<[1], [0], [0], [1], [0, 0, 1, 1], [], []>} : vector<128x128xbf16>, vector<128x128xbf16>, vector<128x128xf32> -> vector<128x128xf32>
    %c2_81 = arith.constant 2 : index
    %c0_82 = arith.constant 0 : index
    %c0_83 = arith.constant 0 : index
    %134 = vector.load %arg5[%c2_81, %c0_82, %c0_83] : memref<4x1x128xf32, #tpu.memory_space<vmem>>, vector<1x1x128xf32>
    %135 = vector.shape_cast %134 : vector<1x1x128xf32> to vector<1x128xf32>
    %136 = vector.broadcast %135 : vector<1x128xf32> to vector<128x128xf32>
    %137 = arith.addf %133, %136 : vector<128x128xf32>
    %cst_84 = arith.constant 5.000000e-01 : f32
    %138 = vector.broadcast %cst_84 : f32 to vector<128x128xf32>
    %139 = arith.mulf %138, %137 : vector<128x128xf32>
    %cst_85 = arith.constant 0.707106769 : f32
    %140 = vector.broadcast %cst_85 : f32 to vector<128x128xf32>
    %141 = arith.mulf %137, %140 : vector<128x128xf32>
    %cst_86 = arith.constant 0.000000e+00 : f32
    %142 = vector.broadcast %cst_86 : f32 to vector<128x128xf32>
    %143 = arith.cmpf oge, %141, %142 : vector<128x128xf32>
    %cst_87 = arith.constant 1.000000e+00 : f32
    %cst_88 = arith.constant -1.000000e+00 : f32
    %144 = vector.broadcast %cst_87 : f32 to vector<128x128xf32>
    %145 = vector.broadcast %cst_88 : f32 to vector<128x128xf32>
    %146 = arith.select %143, %144, %145 : vector<128x128xi1>, vector<128x128xf32>
    %147 = math.absf %141 : vector<128x128xf32>
    %cst_89 = arith.constant 0.327591091 : f32
    %148 = vector.broadcast %cst_89 : f32 to vector<128x128xf32>
    %149 = arith.mulf %148, %147 : vector<128x128xf32>
    %cst_90 = arith.constant 1.000000e+00 : f32
    %150 = vector.broadcast %cst_90 : f32 to vector<128x128xf32>
    %151 = arith.addf %150, %149 : vector<128x128xf32>
    %152 = tpu.reciprocal %151 {approx = true} : vector<128x128xf32> -> vector<128x128xf32>
    %cst_91 = arith.constant 1.06140542 : f32
    %153 = vector.broadcast %cst_91 : f32 to vector<128x128xf32>
    %154 = arith.mulf %153, %152 : vector<128x128xf32>
    %cst_92 = arith.constant -1.45315206 : f32
    %155 = vector.broadcast %cst_92 : f32 to vector<128x128xf32>
    %156 = arith.addf %154, %155 : vector<128x128xf32>
    %157 = arith.mulf %156, %152 : vector<128x128xf32>
    %cst_93 = arith.constant 1.42141378 : f32
    %158 = vector.broadcast %cst_93 : f32 to vector<128x128xf32>
    %159 = arith.addf %157, %158 : vector<128x128xf32>
    %160 = arith.mulf %159, %152 : vector<128x128xf32>
    %cst_94 = arith.constant -0.284496725 : f32
    %161 = vector.broadcast %cst_94 : f32 to vector<128x128xf32>
    %162 = arith.addf %160, %161 : vector<128x128xf32>
    %163 = arith.mulf %162, %152 : vector<128x128xf32>
    %cst_95 = arith.constant 0.254829586 : f32
    %164 = vector.broadcast %cst_95 : f32 to vector<128x128xf32>
    %165 = arith.addf %163, %164 : vector<128x128xf32>
    %166 = arith.mulf %165, %152 : vector<128x128xf32>
    %cst_96 = arith.constant 0.000000e+00 : f32
    %167 = vector.broadcast %cst_96 : f32 to vector<128x128xf32>
    %168 = arith.subf %167, %147 : vector<128x128xf32>
    %169 = arith.mulf %168, %147 : vector<128x128xf32>
    %170 = math.exp %169 : vector<128x128xf32>
    %171 = arith.mulf %166, %170 : vector<128x128xf32>
    %cst_97 = arith.constant 1.000000e+00 : f32
    %172 = vector.broadcast %cst_97 : f32 to vector<128x128xf32>
    %173 = arith.subf %172, %171 : vector<128x128xf32>
    %174 = arith.mulf %146, %173 : vector<128x128xf32>
    %cst_98 = arith.constant 1.000000e+00 : f32
    %175 = vector.broadcast %cst_98 : f32 to vector<128x128xf32>
    %176 = arith.addf %175, %174 : vector<128x128xf32>
    %177 = arith.mulf %139, %176 : vector<128x128xf32>
    %178 = arith.mulf %130, %177 : vector<128x128xf32>
    %179 = arith.truncf %178 : vector<128x128xf32> to vector<128x128xbf16>
    %c2_99 = arith.constant 2 : index
    %c0_100 = arith.constant 0 : index
    %c0_101 = arith.constant 0 : index
    %180 = vector.load %arg6[%c2_99, %c0_100, %c0_101] : memref<4x128x128xbf16, #tpu.memory_space<vmem>>, vector<1x128x128xbf16>
    %181 = vector.shape_cast %180 : vector<1x128x128xbf16> to vector<128x128xbf16>
    %cst_102 = arith.constant dense<0.000000e+00> : vector<128x128xf32>
    %182 = tpu.matmul %179, %181, %cst_102 {dimension_numbers = #tpu.dot_dimension_numbers<[1], [0], [0], [1], [0, 0, 1, 1], [], []>} : vector<128x128xbf16>, vector<128x128xbf16>, vector<128x128xf32> -> vector<128x128xf32>
    %c0_103 = arith.constant 0 : index
    %c0_104 = arith.constant 0 : index
    %183 = vector.load %arg9[%c0_103, %c0_104] : memref<128x128xf32, #tpu.memory_space<vmem>>, vector<128x128xf32>
    %184 = arith.addf %183, %182 : vector<128x128xf32>
    %c0_105 = arith.constant 0 : index
    %c0_106 = arith.constant 0 : index
    %185 = vector.load %arg9[%c0_105, %c0_106] : memref<128x128xf32, #tpu.memory_space<vmem>>, vector<128x128xf32>
    tpu.vector_store %arg9[%c0_105, %c0_106], %184 {strides = array<i32>} : memref<128x128xf32, #tpu.memory_space<vmem>>, vector<128x128xf32>,
    %c3 = arith.constant 3 : index
    %c0_107 = arith.constant 0 : index
    %c0_108 = arith.constant 0 : index
    %186 = vector.load %arg2[%c3, %c0_107, %c0_108] : memref<4x128x128xbf16, #tpu.memory_space<vmem>>, vector<1x128x128xbf16>
    %187 = vector.shape_cast %186 : vector<1x128x128xbf16> to vector<128x128xbf16>
    %cst_109 = arith.constant dense<0.000000e+00> : vector<128x128xf32>
    %188 = tpu.matmul %1, %187, %cst_109 {dimension_numbers = #tpu.dot_dimension_numbers<[1], [0], [0], [1], [0, 0, 1, 1], [], []>} : vector<128x128xbf16>, vector<128x128xbf16>, vector<128x128xf32> -> vector<128x128xf32>
    %c3_110 = arith.constant 3 : index
    %c0_111 = arith.constant 0 : index
    %c0_112 = arith.constant 0 : index
    %189 = vector.load %arg3[%c3_110, %c0_111, %c0_112] : memref<4x1x128xf32, #tpu.memory_space<vmem>>, vector<1x1x128xf32>
    %190 = vector.shape_cast %189 : vector<1x1x128xf32> to vector<1x128xf32>
    %191 = vector.broadcast %190 : vector<1x128xf32> to vector<128x128xf32>
    %192 = arith.addf %188, %191 : vector<128x128xf32>
    %c3_113 = arith.constant 3 : index
    %c0_114 = arith.constant 0 : index
    %c0_115 = arith.constant 0 : index
    %193 = vector.load %arg4[%c3_113, %c0_114, %c0_115] : memref<4x128x128xbf16, #tpu.memory_space<vmem>>, vector<1x128x128xbf16>
    %194 = vector.shape_cast %193 : vector<1x128x128xbf16> to vector<128x128xbf16>
    %cst_116 = arith.constant dense<0.000000e+00> : vector<128x128xf32>
    %195 = tpu.matmul %1, %194, %cst_116 {dimension_numbers = #tpu.dot_dimension_numbers<[1], [0], [0], [1], [0, 0, 1, 1], [], []>} : vector<128x128xbf16>, vector<128x128xbf16>, vector<128x128xf32> -> vector<128x128xf32>
    %c3_117 = arith.constant 3 : index
    %c0_118 = arith.constant 0 : index
    %c0_119 = arith.constant 0 : index
    %196 = vector.load %arg5[%c3_117, %c0_118, %c0_119] : memref<4x1x128xf32, #tpu.memory_space<vmem>>, vector<1x1x128xf32>
    %197 = vector.shape_cast %196 : vector<1x1x128xf32> to vector<1x128xf32>
    %198 = vector.broadcast %197 : vector<1x128xf32> to vector<128x128xf32>
    %199 = arith.addf %195, %198 : vector<128x128xf32>
    %cst_120 = arith.constant 5.000000e-01 : f32
    %200 = vector.broadcast %cst_120 : f32 to vector<128x128xf32>
    %201 = arith.mulf %200, %199 : vector<128x128xf32>
    %cst_121 = arith.constant 0.707106769 : f32
    %202 = vector.broadcast %cst_121 : f32 to vector<128x128xf32>
    %203 = arith.mulf %199, %202 : vector<128x128xf32>
    %cst_122 = arith.constant 0.000000e+00 : f32
    %204 = vector.broadcast %cst_122 : f32 to vector<128x128xf32>
    %205 = arith.cmpf oge, %203, %204 : vector<128x128xf32>
    %cst_123 = arith.constant 1.000000e+00 : f32
    %cst_124 = arith.constant -1.000000e+00 : f32
    %206 = vector.broadcast %cst_123 : f32 to vector<128x128xf32>
    %207 = vector.broadcast %cst_124 : f32 to vector<128x128xf32>
    %208 = arith.select %205, %206, %207 : vector<128x128xi1>, vector<128x128xf32>
    %209 = math.absf %203 : vector<128x128xf32>
    %cst_125 = arith.constant 0.327591091 : f32
    %210 = vector.broadcast %cst_125 : f32 to vector<128x128xf32>
    %211 = arith.mulf %210, %209 : vector<128x128xf32>
    %cst_126 = arith.constant 1.000000e+00 : f32
    %212 = vector.broadcast %cst_126 : f32 to vector<128x128xf32>
    %213 = arith.addf %212, %211 : vector<128x128xf32>
    %214 = tpu.reciprocal %213 {approx = true} : vector<128x128xf32> -> vector<128x128xf32>
    %cst_127 = arith.constant 1.06140542 : f32
    %215 = vector.broadcast %cst_127 : f32 to vector<128x128xf32>
    %216 = arith.mulf %215, %214 : vector<128x128xf32>
    %cst_128 = arith.constant -1.45315206 : f32
    %217 = vector.broadcast %cst_128 : f32 to vector<128x128xf32>
    %218 = arith.addf %216, %217 : vector<128x128xf32>
    %219 = arith.mulf %218, %214 : vector<128x128xf32>
    %cst_129 = arith.constant 1.42141378 : f32
    %220 = vector.broadcast %cst_129 : f32 to vector<128x128xf32>
    %221 = arith.addf %219, %220 : vector<128x128xf32>
    %222 = arith.mulf %221, %214 : vector<128x128xf32>
    %cst_130 = arith.constant -0.284496725 : f32
    %223 = vector.broadcast %cst_130 : f32 to vector<128x128xf32>
    %224 = arith.addf %222, %223 : vector<128x128xf32>
    %225 = arith.mulf %224, %214 : vector<128x128xf32>
    %cst_131 = arith.constant 0.254829586 : f32
    %226 = vector.broadcast %cst_131 : f32 to vector<128x128xf32>
    %227 = arith.addf %225, %226 : vector<128x128xf32>
    %228 = arith.mulf %227, %214 : vector<128x128xf32>
    %cst_132 = arith.constant 0.000000e+00 : f32
    %229 = vector.broadcast %cst_132 : f32 to vector<128x128xf32>
    %230 = arith.subf %229, %209 : vector<128x128xf32>
    %231 = arith.mulf %230, %209 : vector<128x128xf32>
    %232 = math.exp %231 : vector<128x128xf32>
    %233 = arith.mulf %228, %232 : vector<128x128xf32>
    %cst_133 = arith.constant 1.000000e+00 : f32
    %234 = vector.broadcast %cst_133 : f32 to vector<128x128xf32>
    %235 = arith.subf %234, %233 : vector<128x128xf32>
    %236 = arith.mulf %208, %235 : vector<128x128xf32>
    %cst_134 = arith.constant 1.000000e+00 : f32
    %237 = vector.broadcast %cst_134 : f32 to vector<128x128xf32>
    %238 = arith.addf %237, %236 : vector<128x128xf32>
    %239 = arith.mulf %201, %238 : vector<128x128xf32>
    %240 = arith.mulf %192, %239 : vector<128x128xf32>
    %241 = arith.truncf %240 : vector<128x128xf32> to vector<128x128xbf16>
    %c3_135 = arith.constant 3 : index
    %c0_136 = arith.constant 0 : index
    %c0_137 = arith.constant 0 : index
    %242 = vector.load %arg6[%c3_135, %c0_136, %c0_137] : memref<4x128x128xbf16, #tpu.memory_space<vmem>>, vector<1x128x128xbf16>
    %243 = vector.shape_cast %242 : vector<1x128x128xbf16> to vector<128x128xbf16>
    %cst_138 = arith.constant dense<0.000000e+00> : vector<128x128xf32>
    %244 = tpu.matmul %241, %243, %cst_138 {dimension_numbers = #tpu.dot_dimension_numbers<[1], [0], [0], [1], [0, 0, 1, 1], [], []>} : vector<128x128xbf16>, vector<128x128xbf16>, vector<128x128xf32> -> vector<128x128xf32>
    %c0_139 = arith.constant 0 : index
    %c0_140 = arith.constant 0 : index
    %245 = vector.load %arg9[%c0_139, %c0_140] : memref<128x128xf32, #tpu.memory_space<vmem>>, vector<128x128xf32>
    %246 = arith.addf %245, %244 : vector<128x128xf32>
    %c0_141 = arith.constant 0 : index
    %c0_142 = arith.constant 0 : index
    %247 = vector.load %arg9[%c0_141, %c0_142] : memref<128x128xf32, #tpu.memory_space<vmem>>, vector<128x128xf32>
    tpu.vector_store %arg9[%c0_141, %c0_142], %246 {strides = array<i32>} : memref<128x128xf32, #tpu.memory_space<vmem>>, vector<128x128xf32>,
    %c0_143 = arith.constant 0 : index
    %c0_144 = arith.constant 0 : index
    %248 = vector.load %arg9[%c0_143, %c0_144] : memref<128x128xf32, #tpu.memory_space<vmem>>, vector<128x128xf32>
    %c0_145 = arith.constant 0 : index
    %c0_146 = arith.constant 0 : index
    %249 = vector.load %arg7[%c0_145, %c0_146] : memref<1x128xf32, #tpu.memory_space<vmem>>, vector<1x128xf32>
    %250 = vector.broadcast %249 : vector<1x128xf32> to vector<128x128xf32>
    %251 = arith.addf %248, %250 : vector<128x128xf32>
    %c0_147 = arith.constant 0 : index
    %c0_148 = arith.constant 0 : index
    %252 = vector.load %arg8[%c0_147, %c0_148] : memref<128x128xf32, #tpu.memory_space<vmem>>, vector<128x128xf32>
    tpu.vector_store %arg8[%c0_147, %c0_148], %251 {strides = array<i32>} : memref<128x128xf32, #tpu.memory_space<vmem>>, vector<128x128xf32>,
    return
  }
  func.func @transform_0(%arg0: i32) -> (i32, i32) {
    %c0_i32 = arith.constant 0 : i32
    %c0_i32_0 = arith.constant 0 : i32
    return %arg0, %c0_i32 : i32, i32
  }
  func.func @transform_1(%arg0: i32) -> (i32, i32, i32) {
    %c0_i32 = arith.constant 0 : i32
    %c0_i32_0 = arith.constant 0 : i32
    %c0_i32_1 = arith.constant 0 : i32
    %c0_i32_2 = arith.constant 0 : i32
    return %c0_i32, %c0_i32_0, %c0_i32_1 : i32, i32, i32
  }
  func.func @transform_2(%arg0: i32) -> (i32, i32, i32) {
    %c0_i32 = arith.constant 0 : i32
    %c0_i32_0 = arith.constant 0 : i32
    %c0_i32_1 = arith.constant 0 : i32
    %c0_i32_2 = arith.constant 0 : i32
    return %c0_i32, %c0_i32_0, %c0_i32_1 : i32, i32, i32
  }
  func.func @transform_3(%arg0: i32) -> (i32, i32, i32) {
    %c0_i32 = arith.constant 0 : i32
    %c0_i32_0 = arith.constant 0 : i32
    %c0_i32_1 = arith.constant 0 : i32
    %c0_i32_2 = arith.constant 0 : i32
    return %c0_i32, %c0_i32_0, %c0_i32_1 : i32, i32, i32
  }
  func.func @transform_4(%arg0: i32) -> (i32, i32, i32) {
    %c0_i32 = arith.constant 0 : i32
    %c0_i32_0 = arith.constant 0 : i32
    %c0_i32_1 = arith.constant 0 : i32
    %c0_i32_2 = arith.constant 0 : i32
    return %c0_i32, %c0_i32_0, %c0_i32_1 : i32, i32, i32
  }
  func.func @transform_5(%arg0: i32) -> (i32, i32, i32) {
    %c0_i32 = arith.constant 0 : i32
    %c0_i32_0 = arith.constant 0 : i32
    %c0_i32_1 = arith.constant 0 : i32
    %c0_i32_2 = arith.constant 0 : i32
    return %c0_i32, %c0_i32_0, %c0_i32_1 : i32, i32, i32
  }
  func.func @transform_6(%arg0: i32) -> (i32, i32) {
    %c0_i32 = arith.constant 0 : i32
    %c0_i32_0 = arith.constant 0 : i32
    %c0_i32_1 = arith.constant 0 : i32
    return %c0_i32, %c0_i32_0 : i32, i32
  }
  func.func @transform_7(%arg0: i32) -> (i32, i32) {
    %c0_i32 = arith.constant 0 : i32
    %c0_i32_0 = arith.constant 0 : i32
    return %arg0, %c0_i32 : i32, i32
  }
}

</mosaic_0001>

<bundles_post_ra>
// kernel: tpu_custom_call.1
= control target key start
LH: loop header
LB: loop body
LE: loop exit
PB: predicated region body
PF: predicated region fallthrough
CT: control target
= control target key end

     0   :  { %12 = vsyncpa [#allocation4], 0  ;;  %s8352_s0 = inlined_call_operand.hbm [shape: f32[256,128], index: 0, kind: input, shape index: {}]   ;;  %s8353_s1 = inlined_call_operand.hbm [shape: bf16[4,128,128], index: 1, kind: input, shape index: {}]   ;;  %s8354_s2 = inlined_call_operand.vmem [shape: f32[4,1,128], index: 2, kind: input, shape index: {}]   ;;  %s8355_s3 = inlined_call_operand.hbm [shape: bf16[4,128,128], index: 3, kind: input, shape index: {}]   ;;  %s8356_s4 = inlined_call_operand.vmem [shape: f32[4,1,128], index: 4, kind: input, shape index: {}]   ;;  %s8357_s5 = inlined_call_operand.hbm [shape: bf16[4,128,128], index: 5, kind: input, shape index: {}]   ;;  %s8358_s6 = inlined_call_operand.vmem [shape: f32[1,128], index: 6, kind: input, shape index: {}]   ;;  %s8359_s7 = inlined_call_operand.hbm [shape: f32[256,128], index: 7, kind: output, shape index: {}]  }
   0x1   :  { %14 = vsyncpa [#allocation4 + $0x1], 0 }
   0x2   :  { %15 = vsyncpa [#allocation7], 0 }
   0x3   :  { %16 = vsyncpa [#allocation10], 0 }
   0x4   :  { %17 = vsyncpa [#allocation5], 0 }
   0x5   :  { %19 = vsyncpa [#allocation5 + $0x1], 0  ;;  %s5901_s24 = smov 0   ;;  %s5903_s25 = smov 0  }
   0x6   :  { %s5905_s26 = smov 0   ;;  %s5907_s27 = smov 0  }
   0x7 LB: > { %s5922_s28 = sadd.s32 4294967295, %s5847_s27   ;;  %s4462_s29 = sadd.s32 4294967294, %s5847_s27   ;;  %s5847_s27 = sphi %s5907_s27, %s8652_s27   ;;  %s5843_s26 = sphi %s5905_s26, %s8651_s26   ;;  %s5839_s25 = sphi %s5903_s25, %s8650_s25   ;;  %s5835_s24 = sphi %s5901_s24, %s8649_s24  }
   0x8   : > { %p45_p0 = scmp.ne.s32.totalorder %s5839_s25, %s5835_s24  ;;  %p8360_p1 = scmp.eq.s32.totalorder %s5922_s28, 0 }
   0x9   : > { %p201_p3 = scmp.eq.s32.totalorder %s4462_s29, 1  ;;  %p4463_p5 = scmp.ge.s32.totalorder %s5847_s27, 1 }
   0xa   : > { %p5931_p4 = por %p8360_p1, %p45_p0  ;;  %p208_p7 = scmp.lt.s32.totalorder %s5847_s27, 3 }
   0xb   : > { %p5936_p6 = por %p201_p3, %p45_p0  ;;  %s5849_s10 = smov [#allocation6]  }
   0xc   : > { %s8407_s30 = scalar_select %p5931_p4, 1, 0 }
   0xd   : > { %s8408_s8 = scalar_select %p5936_p6, 1, 0 }
   0xe   : > { %p5941_p8 = pnand %p4463_p5, %p208_p7  ;;  %s220_s11 = sshll.u32 %s5849_s10, 4  ;;  %s5945_s11 = int_to_ptr.vmem [resolvable:$true] %s220_s11 }
   0xf   : > { %8409 = sst [smem:[#allocation16_spill]] %s8408_s8  ;;  %s5850_s13 = smov [#allocation8]  }
  0x10   : > { %s8410_s9 = scalar_select %p5941_p8, 1, 0 }
  0x11   : > { %p5235_p9 = pneg %p5941_p8  ;;  %s236_s14 = sshll.u32 %s5850_s13, 4  ;;  %s5956_s14 = int_to_ptr.vmem [resolvable:$true] %s236_s14 }
  0x12   : > { %s5851_s15 = smov [#allocation9]   ;;  %s5659_s19 = scalar_lea.hbm %s8353_s1, 4096 }
  0x13   : > { %p5952_p11 = pnand %p5235_p9, %p8360_p1  ;;  %s5958_s16 = sshll.u32 %s5851_s15, 4  ;;  %s253_s16 = int_to_ptr.vmem [resolvable:$true] %s5958_s16 }
  0x14   : > { %p5660_p12 = scmp.ne.s32.totalorder %s8353_s1, %s5659_s19  ;;  %p5666_p5 = scmp.lt.u32.totalorder %s5659_s19, %s8353_s1 }
  0x15   : > { %p5968_p13 = pneg %p5952_p11 }
  0x17   : > { %p5662_p0 = pnand %p5968_p13, %p5660_p12 }
  0x19   : > { %p5663_p3 = pneg %p5662_p0 }
  0x1b   : > { %p5668_p7 = pnand %p5666_p5, %p5663_p3 }
  0x1d   : > { %5671 = shalt.err (!%p5668_p7)
}
  0x1e   : > { %s5672_s10 = scalar_lea.vmem %s5945_s11, 4096  ;;  %p5680_p2 = scmp.lt.s32.totalorder %s5945_s11, %s5945_s11 }
  0x1f   : > { %p5673_p9 = scmp.ne.s32.totalorder %s5945_s11, %s5672_s10  ;;  %p5681_p6 = scmp.lt.s32.totalorder %s5672_s10, %s5672_s10 }
  0x21   : > { %p5675_p10 = pnand %p5673_p9, %p5968_p13  ;;  %p5682_p12 = por %p5681_p6, %p5680_p2 }
  0x23   : > { %p5676_p1 = pneg %p5675_p10 }
  0x25   : > { %p5683_p0 = pnand %p5682_p12, %p5676_p1 }
  0x27   : > { %5686 = shalt.err (!%p5683_p0)
}
  0x28   : > { %s5852_s13 = smov 64   ;;  %s5853_s15 = smov 4  }
  0x29   : > { %5238 = dma.hbm_to_vmem [thread:$0]  (!%p5952_p11), %s8353_s1, 4096, %s5945_s11, [#allocation7], %s5852_s13, %s5852_s13, %s5853_s15  }
  0x2a   : > { %s5687_s21 = scalar_lea.hbm %s8355_s3, 4096 }
  0x2b   : > { %p5688_p1 = scmp.ne.s32.totalorder %s8355_s3, %s5687_s21  ;;  %p5694_p10 = scmp.lt.u32.totalorder %s5687_s21, %s8355_s3 }
  0x2d   : > { %p5690_p2 = pnand %p5688_p1, %p5968_p13 }
  0x2f   : > { %p5691_p6 = pneg %p5690_p2 }
  0x31   : > { %p5696_p3 = pnand %p5694_p10, %p5691_p6 }
  0x33   : > { %5699 = shalt.err (!%p5696_p3)
}
  0x34   : > { %s5700_s11 = scalar_lea.vmem %s5956_s14, 4096  ;;  %p5708_p12 = scmp.lt.s32.totalorder %s5956_s14, %s5956_s14 }
  0x35   : > { %p5701_p5 = scmp.ne.s32.totalorder %s5956_s14, %s5700_s11  ;;  %p5709_p0 = scmp.lt.s32.totalorder %s5700_s11, %s5700_s11 }
  0x37   : > { %p5703_p7 = pnand %p5701_p5, %p5968_p13  ;;  %p5710_p1 = por %p5709_p0, %p5708_p12 }
  0x39   : > { %p5704_p9 = pneg %p5703_p7 }
  0x3b   : > { %p5711_p2 = pnand %p5710_p1, %p5704_p9 }
  0x3d   : > { %5714 = shalt.err (!%p5711_p2)
}
  0x3e   : > { %5241 = dma.hbm_to_vmem [thread:$0]  (!%p5952_p11), %s8355_s3, 4096, %s5956_s14, [#allocation7], %s5852_s13, %s5852_s13, %s5853_s15  }
  0x3f   : > { %s5715_s20 = scalar_lea.hbm %s8357_s5, 4096 }
  0x40   : > { %p5716_p6 = scmp.ne.s32.totalorder %s8357_s5, %s5715_s20  ;;  %p5722_p5 = scmp.lt.u32.totalorder %s5715_s20, %s8357_s5 }
  0x42   : > { %p5718_p10 = pnand %p5716_p6, %p5968_p13 }
  0x44   : > { %p5719_p3 = pneg %p5718_p10 }
  0x46   : > { %p5724_p7 = pnand %p5722_p5, %p5719_p3 }
  0x48   : > { %5727 = shalt.err (!%p5724_p7)
}
  0x49   : > { %s5728_s11 = scalar_lea.vmem %s253_s16, 4096  ;;  %p5736_p1 = scmp.lt.s32.totalorder %s253_s16, %s253_s16 }
  0x4a   : > { %p5729_p9 = scmp.ne.s32.totalorder %s253_s16, %s5728_s11  ;;  %p5737_p2 = scmp.lt.s32.totalorder %s5728_s11, %s5728_s11 }
  0x4c   : > { %p5731_p12 = pnand %p5729_p9, %p5968_p13  ;;  %p5738_p4 = por %p5737_p2, %p5736_p1 }
  0x4e   : > { %p5732_p0 = pneg %p5731_p12 }
  0x50   : > { %p5739_p8 = pnand %p5738_p4, %p5732_p0 }
  0x52   : > { %5742 = shalt.err (!%p5739_p8)
}
  0x53   : > { %5244 = dma.hbm_to_vmem [thread:$0]  (!%p5952_p11), %s8357_s5, 4096, %s253_s16, [#allocation10], %s5852_s13, %s5852_s13, %s5853_s15  }
  0x54   : > { %s6041_s22 = sadd.s32 1, %s5847_s27   ;;  %s32_s17 = sadd.s32 1, %s5843_s26 }
  0x55   : > { %s29_s12 = ssub.s32 %s5847_s27, %s6041_s22  ;;  %p39_p8 = scmp.ne.s32.totalorder %s5843_s26, %s5839_s25 }
  0x56   : > { %p30_p4 = scmp.eq.s32.totalorder %s29_s12, 0  ;;  %p40_p13 = scmp.eq.s32.totalorder %s5847_s27, 0 }
  0x57   : > { %p5256_p6 = scmp.lt.s32.totalorder %s5847_s27, 2  ;;  %p8413_p3 = scmp.eq.s32.totalorder %s5922_s28, 1 }
  0x58   : > { %s6051_s18 = scalar_select %p30_p4, %s5843_s26, %s32_s17  }
  0x59   : > { %p41_p10 = por %p40_p13, %p39_p8  ;;  %p6055_p5 = por %p8413_p3, %p39_p8 }
  0x5a   : > { %s269_s20 = sand.u32 1, %s5843_s26   ;;  %s4593_s21 = sshll.u32 %s5847_s27, 11 }
  0x5b   : > { %s4468_s16 = sshll.u32 %s269_s20, 7  ;;  %s6064_s23 = scalar_lea.hbm %s8352_s0, %s4593_s21 }
  0x5c   : > { %s273_s29 = scalar_lea.vmem [#allocation3], %s4468_s16  ;;  %p6066_p11 = pnand %p5256_p6, %p41_p10 }
  0x5d   : > { %s280_s10 = sshll.u32 %s273_s29, 4  ;;  %s6072_s14 = scalar_lea.sflag [#allocation4], %s269_s20  ;;  %s6070_s10 = int_to_ptr.vmem [resolvable:$true] %s280_s10 }
  0x5e   : > { %s5743_s8 = scalar_lea.hbm %s6064_s23, 2048  ;;  %p5745_p9 = pneg %p6066_p11 }
  0x5f   : > { %p5744_p7 = scmp.ne.s32.totalorder %s6064_s23, %s5743_s8  ;;  %s5748_s21 = scalar_lea.hbm %s8352_s0, 4096 }
  0x60   : > { %p5749_p1 = scmp.lt.u32.totalorder %s6064_s23, %s8352_s0  ;;  %p5750_p2 = scmp.lt.u32.totalorder %s5748_s21, %s5743_s8 }
  0x61   : > { %p5746_p12 = pnand %p5745_p9, %p5744_p7  ;;  %p5752_p8 = scmp.lt.u32.totalorder %s5743_s8, %s6064_s23 }
  0x62   : > { %p5751_p4 = por %p5750_p2, %p5749_p1 }
  0x63   : > { %p5747_p0 = pneg %p5746_p12 }
  0x64   : > { %p5753_p13 = por %p5752_p8, %p5751_p4 }
  0x66   : > { %p5754_p6 = pnand %p5753_p13, %p5747_p0 }
  0x68   : > { %5757 = shalt.err (!%p5754_p6)
}
  0x69   : > { %s5758_s20 = scalar_lea.vmem %s6070_s10, 2048  ;;  %s5854_s15 = smov [#allocation3]  }
  0x6a   : > { %p5759_p10 = scmp.ne.s32.totalorder %s6070_s10, %s5758_s20  ;;  %s5763_s29 = sshll.u32 %s5854_s15, 4  ;;  %s5764_s29 = int_to_ptr.vmem [resolvable:$false] %s5763_s29 }
  0x6b   : > { %s5765_s12 = scalar_lea.vmem %s5764_s29, 4096  ;;  %p5766_p12 = scmp.lt.s32.totalorder %s6070_s10, %s5764_s29 }
  0x6c   : > { %p5761_p3 = pnand %p5759_p10, %p5745_p9  ;;  %p5767_p1 = scmp.lt.s32.totalorder %s5765_s12, %s5758_s20 }
  0x6e   : > { %p5762_p7 = pneg %p5761_p3  ;;  %p5768_p2 = por %p5767_p1, %p5766_p12 }
  0x70   : > { %p5769_p4 = pnand %p5768_p2, %p5762_p7 }
  0x72   : > { %5772 = shalt.err (!%p5769_p4)
}
  0x73   : > { %s5855_s8 = smov 128   ;;  %s5856_s17 = smov 8  }
  0x74   : > { %5248 = dma.hbm_to_vmem [thread:$0]  (!%p6066_p11), %s6064_s23, 2048, %s6070_s10, %s6072_s14, %s5855_s8, %s5855_s8, %s5856_s17  }
  0x75   : > { %p8416_p9 = scmp.ne.s32.totalorder %s8410_s9, 0 }
  0x77   : > { %292 = sbr.rel (%p8416_p9) target bundleno = 1525 (0x5f5), region = 48 }
  0x7e   : > { %s6103_s21 = sand.u32 1, %s5839_s25   ;;  %p8417_p0 = scmp.ne.s32.totalorder %s8407_s30, 0 }
  0x7f   : > { %s4472_s16 = sshll.u32 %s6103_s21, 7  ;;  %s295_s13 = scalar_lea.sflag [#allocation4], %s6103_s21 }
  0x80   : > { %s6109_s20 = scalar_lea.vmem [#allocation3], %s4472_s16 }
  0x81   : > { %5818 = dma.done.wait (%p8417_p0), %s295_s13, 2048  }
  0x82   : > { %5820 = vsyncadd (%p8417_p0), %s295_s13, 4294965248  ;;  %p8418_p11 = scmp.eq.s32.totalorder %s5922_s28, 0 }
  0x84   : > { %5822 = dma.done.wait (%p8418_p11), [#allocation7], 8192   ;;  %p8419_p8 = pmov %p8418_p11 }
  0x86   : > { %5824 = vsyncadd (%p8419_p8), [#allocation7], 4294959104  ;;  %p8420_p13 = pmov %p8419_p8 }
  0x87   : > { %p8421_p6 = pmov %p8419_p8 }
  0x88   : > { %5826 = dma.done.wait (%p8420_p13), [#allocation10], 4096  }
  0x89   : > { %5828 = vsyncadd (%p8421_p6), [#allocation10], 4294963200  ;;  %v5303_v0 = vld [vmem:[#allocation6] sm:$0xff]   ;;  %v5304_v1 = vld [vmem:[#allocation6 + $0x8] sm:$0xff]   ;;  %s8283_s13 = scalar_lea.vmem [#allocation11], %s4472_s16  ;;  %s4594_s16 = sshll.u32 %s5922_s28, 11 }
  0x8a   : > { %4787 = vmatprep.subr.bf16.mxu1 %v5303_v0  ;;  %v5305_v2 = vld [vmem:[#allocation6 + $0x10] sm:$0xff]   ;;  %v5306_v3 = vld [vmem:[#allocation6 + $0x18] sm:$0xff]   ;;  %v344_v4 = vld [vmem:[%s6109_s20] sm:$0xff]  ;;  %s8303_s23 = scalar_lea.hbm %s8359_s7, %s4594_s16  ;;  %s4347_s28 = scalar_lea.sflag [#allocation5], %s6103_s21 }
  0x8b   : > { %4788 = vmatpush3.bf16.msra.mxu1 %v5303_v0  ;;  %v345_v5 = vld [vmem:[%s6109_s20 + $0x8] sm:$0xff]  ;;  %v5307_v7 = vld [vmem:[#allocation6 + $0x20] sm:$0xff]   ;;  %v5309_v9 = vld [vmem:[#allocation6 + $0x30] sm:$0xff]   ;;  %s5858_s11 = smov [#allocation11]  }
  0x8c   : > { %4789 = vmatprep.subr.bf16.mxu1 %v5304_v1  ;;  %v6125_v6 = vpack.c.bf16 %v345_v5, %v344_v4  ;;  %v5308_v8 = vld [vmem:[#allocation6 + $0x28] sm:$0xff]   ;;  %v5310_v10 = vld [vmem:[#allocation6 + $0x38] sm:$0xff]   ;;  %v346_v11 = vld [vmem:[%s6109_s20 + $0x10] sm:$0xff]  ;;  %s5777_s14 = sshll.u32 %s5858_s11, 4  ;;  %s5778_s14 = int_to_ptr.vmem [resolvable:$false] %s5777_s14 }
  0x8d   : > { %v347_v12 = vld [vmem:[%s6109_s20 + $0x18] sm:$0xff]  ;;  %v5311_v13 = vld [vmem:[#allocation8] sm:$0xff]   ;;  %v349_v15 = vld [vmem:[%s6109_s20 + $0x28] sm:$0xff]  ;;  %s5779_s15 = scalar_lea.vmem %s5778_s14, 4096 }
  0x8e   : > { %8422 = vst [vmem:[#allocation17_spill] sm:$0xff] %v6125_v6  ;;  %4803 = vmatprep.mubr.bf16.mxu1 %v6125_v6  ;;  %v348_v14 = vld [vmem:[%s6109_s20 + $0x20] sm:$0xff]  ;;  %v6132_v16 = vpack.c.bf16 %v347_v12, %v346_v11  ;;  %v5312_v17 = vld [vmem:[#allocation8 + $0x8] sm:$0xff]   ;;  %v350_v19 = vld [vmem:[%s6109_s20 + $0x30] sm:$0xff] }
  0x8f   : > { %4790 = vmatpush3.bf16.msra.mxu1 %v5304_v1  ;;  %v6134_v18 = vpack.c.bf16 %v349_v15, %v348_v14  ;;  %v351_v20 = vld [vmem:[%s6109_s20 + $0x38] sm:$0xff]  ;;  %v5313_v21 = vld [vmem:[#allocation8 + $0x10] sm:$0xff]   ;;  %v352_v22 = vld [vmem:[%s6109_s20 + $0x40] sm:$0xff] }
  0x90   : > { %4791 = vmatprep.subr.bf16.mxu1 %v5305_v2  ;;  %8423 = vst [vmem:[#allocation18_spill] sm:$0xff] %v6132_v16  ;;  %v353_v23 = vld [vmem:[%s6109_s20 + $0x48] sm:$0xff]  ;;  %v6142_v24 = vpack.c.bf16 %v351_v20, %v350_v19  ;;  %v5314_v25 = vld [vmem:[#allocation8 + $0x18] sm:$0xff]   ;;  %v354_v27 = vld [vmem:[%s6109_s20 + $0x50] sm:$0xff] }
  0x91   : > { %8424 = vst [vmem:[#allocation19_spill] sm:$0xff] %v6134_v18  ;;  %v6144_v26 = vpack.c.bf16 %v353_v23, %v352_v22  ;;  %v355_v28 = vld [vmem:[%s6109_s20 + $0x58] sm:$0xff]  ;;  %v5315_v29 = vld [vmem:[#allocation8 + $0x20] sm:$0xff]   ;;  %v357_v31 = vld [vmem:[%s6109_s20 + $0x68] sm:$0xff] }
  0x92   : > { %8425 = vst [vmem:[#allocation20_spill] sm:$0xff] %v6142_v24  ;;  %v356_v30 = vld [vmem:[%s6109_s20 + $0x60] sm:$0xff]  ;;  %v6152_v32 = vpack.c.bf16 %v355_v28, %v354_v27  ;;  %v5316_v33 = vld [vmem:[#allocation8 + $0x28] sm:$0xff]   ;;  %v358_v35 = vld [vmem:[%s6109_s20 + $0x70] sm:$0xff] }
  0x93   : > { %4792 = vmatpush3.bf16.msra.mxu1 %v5305_v2  ;;  %8426 = vst [vmem:[#allocation21_spill] sm:$0xff] %v6144_v26  ;;  %v6154_v34 = vpack.c.bf16 %v357_v31, %v356_v30  ;;  %v359_v36 = vld [vmem:[%s6109_s20 + $0x78] sm:$0xff]  ;;  %v5317_v37 = vld [vmem:[#allocation8 + $0x30] sm:$0xff]   ;;  %v5319_v40 = vld [vmem:[#allocation6 + $0x40] sm:$0xff]   ;;  %s4360_s20 = sshll.u32 %s8283_s13, 4  ;;  %s8305_s20 = int_to_ptr.vmem [resolvable:$true] %s4360_s20 }
  0x94   : > { %4793 = vmatprep.subr.bf16.mxu1 %v5306_v3  ;;  %8427 = vst [vmem:[#allocation22_spill] sm:$0xff] %v6152_v32  ;;  %v6160_v38 = vpack.c.bf16 %v359_v36, %v358_v35  ;;  %v5318_v39 = vld [vmem:[#allocation8 + $0x38] sm:$0xff]   ;;  %v5320_v41 = vld [vmem:[#allocation6 + $0x48] sm:$0xff]   ;;  %v5321_v42 = vld [vmem:[#allocation6 + $0x50] sm:$0xff]   ;;  %s5773_s10 = scalar_lea.vmem %s8305_s20, 2048  ;;  %p5780_p12 = scmp.lt.s32.totalorder %s8305_s20, %s5778_s14 }
  0x95   : > { %8428 = vst [vmem:[#allocation23_spill] sm:$0xff] %v6154_v34  ;;  %v5322_v43 = vld [vmem:[#allocation6 + $0x58] sm:$0xff]   ;;  %v5323_v44 = vld [vmem:[#allocation6 + $0x60] sm:$0xff]   ;;  %v5324_v45 = vld [vmem:[#allocation6 + $0x68] sm:$0xff]   ;;  %p5774_p10 = scmp.ne.s32.totalorder %s8305_s20, %s5773_s10  ;;  %p5781_p1 = scmp.lt.s32.totalorder %s5779_s15, %s5773_s10 }
  0x96   : > { %8429 = vst [vmem:[#allocation24_spill] sm:$0xff] %v6160_v38  ;;  %v5325_v46 = vld [vmem:[#allocation6 + $0x70] sm:$0xff]   ;;  %v5326_v47 = vld [vmem:[#allocation6 + $0x78] sm:$0xff]   ;;  %v5327_v48 = vld [vmem:[#allocation6 + $0x80] sm:$0xff]  }
  0x97   : > { %4794 = vmatpush3.bf16.msra.mxu1 %v5306_v3  ;;  %v5328_v49 = vld [vmem:[#allocation6 + $0x88] sm:$0xff]   ;;  %v5329_v50 = vld [vmem:[#allocation6 + $0x90] sm:$0xff]   ;;  %v5330_v51 = vld [vmem:[#allocation6 + $0x98] sm:$0xff]   ;;  %p5775_p3 = pnand %p5774_p10, %p6055_p5  ;;  %p5782_p2 = por %p5781_p1, %p5780_p12 }
  0x98   : > { %4795 = vmatprep.subr.bf16.mxu1 %v5307_v7  ;;  %v5331_v52 = vld [vmem:[#allocation6 + $0xa0] sm:$0xff]   ;;  %v5332_v53 = vld [vmem:[#allocation6 + $0xa8] sm:$0xff]   ;;  %v5333_v54 = vld [vmem:[#allocation6 + $0xb0] sm:$0xff]  }
  0x99   : > { %v5334_v55 = vld [vmem:[#allocation6 + $0xb8] sm:$0xff]   ;;  %v5335_v56 = vld [vmem:[#allocation8 + $0x80] sm:$0xff]   ;;  %v5336_v57 = vld [vmem:[#allocation8 + $0x88] sm:$0xff]   ;;  %p5776_p7 = pneg %p5775_p3 }
  0x9a   : > { %v5337_v58 = vld [vmem:[#allocation8 + $0x90] sm:$0xff]   ;;  %v5338_v59 = vld [vmem:[#allocation8 + $0x98] sm:$0xff]   ;;  %v5339_v60 = vld [vmem:[#allocation8 + $0xa0] sm:$0xff]  }
  0x9b   : > { %4796 = vmatpush3.bf16.msra.mxu1 %v5307_v7  ;;  %v5340_v61 = vld [vmem:[#allocation9] sm:$0xff]   ;;  %v5341_v62 = vld [vmem:[#allocation8 + $0xa8] sm:$0xff]   ;;  %v5343_v0 = vld [vmem:[#allocation8 + $0xb0] sm:$0xff]   ;;  %p5783_p4 = pnand %p5782_p2, %p5776_p7 }
  0x9c   : > { %4797 = vmatprep.subr.bf16.mxu1 %v5308_v8  ;;  %4851 = vmatprep.subr.bf16.mxu0 %v5340_v61  ;;  %v5342_v63 = vld [vmem:[#allocation9 + $0x8] sm:$0xff]   ;;  %v5344_v1 = vld [vmem:[#allocation9 + $0x10] sm:$0xff]   ;;  %v5345_v2 = vld [vmem:[#allocation8 + $0xb8] sm:$0xff]  }
  0x9d   : > { %4852 = vmatpush3.bf16.msra.mxu0 %v5340_v61  ;;  %v5346_v3 = vld [vmem:[#allocation9 + $0x18] sm:$0xff]   ;;  %v5347_v4 = vld [vmem:[#allocation9 + $0x20] sm:$0xff]   ;;  %v5348_v7 = vld [vmem:[#allocation9 + $0x28] sm:$0xff]  }
  0x9e   : > { %4853 = vmatprep.subr.bf16.mxu0 %v5342_v63  ;;  %v5349_v11 = vld [vmem:[#allocation9 + $0x30] sm:$0xff]   ;;  %v5351_v23 = vld [vmem:[#allocation8 + $0x40] sm:$0xff]  }
  0x9f   : > { %4798 = vmatpush3.bf16.msra.mxu1 %v5308_v8  ;;  %v6209_v30 = vld [vmem:[%s8356_s4] ss:$0 sm:$0xff] }
  0xa0   : > { %4799 = vmatprep.subr.bf16.mxu1 %v5309_v9  ;;  %v6214_v31 = vld [vmem:[%s8354_s2] ss:$0 sm:$0xff] }
  0xa1   : > { %4854 = vmatpush3.bf16.msra.mxu0 %v5342_v63  ;;  %8434 = vst [vmem:[#allocation29_spill] sm:$0xff] %v6214_v31 }
  0xa2   : > { %4855 = vmatprep.subr.bf16.mxu0 %v5344_v1 }
  0xa3   : > { %4800 = vmatpush3.bf16.msra.mxu1 %v5309_v9 }
  0xa4   : > { %4801 = vmatprep.subr.bf16.mxu1 %v5310_v10 }
  0xa5   : > { %4856 = vmatpush3.bf16.msra.mxu0 %v5344_v1 }
  0xa6   : > { %4857 = vmatprep.subr.bf16.mxu0 %v5346_v3 }
  0xa7   : > { %4802 = vmatpush3.bf16.msra.mxu1 %v5310_v10 }
  0xa8   : > { %4819 = vmatprep.subr.bf16.mxu1 %v5311_v13 }
  0xa9   : > { %4858 = vmatpush3.bf16.msra.mxu0 %v5346_v3 }
  0xaa   : > { %4804 = vmatmul.mubr.bf16.vlgmr.msra.gmra.mrb[0].mxu1 %v6132_v16  ;;  %4859 = vmatprep.subr.bf16.mxu0 %v5347_v4 }
  0xab   : > { %4820 = vmatpush3.bf16.msra.mxu1 %v5311_v13  ;;  %4807 = vmatprep.mubr.bf16.mxu1 %v6134_v18  ;;  %v5350_v13 = vld [vmem:[#allocation9 + $0x38] sm:$0xff]  }
  0xac   : > { %4821 = vmatprep.subr.bf16.mxu1 %v5312_v17 }
  0xad   : > { %4860 = vmatpush3.bf16.msra.mxu0 %v5347_v4 }
  0xae   : > { %4861 = vmatprep.subr.bf16.mxu0 %v5348_v7 }
  0xaf   : > { %4822 = vmatpush3.bf16.msra.mxu1 %v5312_v17 }
  0xb0   : > { %4823 = vmatprep.subr.bf16.mxu1 %v5313_v21 }
  0xb1   : > { %4862 = vmatpush3.bf16.msra.mxu0 %v5348_v7 }
  0xb2   : > { %4808 = vmatmul.mubr.bf16.gmra.mrb[4].mxu1 %v6142_v24  ;;  %4863 = vmatprep.subr.bf16.mxu0 %v5349_v11 }
  0xb3   : > { %4824 = vmatpush3.bf16.msra.mxu1 %v5313_v21  ;;  %4811 = vmatprep.mubr.bf16.mxu1 %v6144_v26 }
  0xb4   : > { %4825 = vmatprep.subr.bf16.mxu1 %v5314_v25 }
  0xb5   : > { %4864 = vmatpush3.bf16.msra.mxu0 %v5349_v11 }
  0xb6   : > { %4865 = vmatprep.subr.bf16.mxu0 %v5350_v13 }
  0xb7   : > { %4826 = vmatpush3.bf16.msra.mxu1 %v5314_v25 }
  0xb8   : > { %4827 = vmatprep.subr.bf16.mxu1 %v5315_v29 }
  0xb9   : > { %4866 = vmatpush3.bf16.msra.mxu0 %v5350_v13 }
  0xba   : > { %4812 = vmatmul.mubr.bf16.gmra.mrb[8].mxu1 %v6152_v32  ;;  %4915 = vmatprep.subr.bf16.mxu0 %v5351_v23 }
  0xbb   : > { %4828 = vmatpush3.bf16.msra.mxu1 %v5315_v29  ;;  %4815 = vmatprep.mubr.bf16.mxu1 %v6154_v34 }
  0xbc   : > { %4829 = vmatprep.subr.bf16.mxu1 %v5316_v33 }
  0xbf   : > { %4830 = vmatpush3.bf16.msra.mxu1 %v5316_v33 }
  0xc0   : > { %4831 = vmatprep.subr.bf16.mxu1 %v5317_v37 }
  0xc2   : > { %4816 = vmatmul.mubr.bf16.gmra.mrb[12].mxu1 %v6160_v38 }
  0xc3   : > { %4832 = vmatpush3.bf16.msra.mxu1 %v5317_v37  ;;  %4835 = vmatprep.mubr.bf16.mxu1 %v6125_v6 }
  0xc4   : > { %4833 = vmatprep.subr.bf16.mxu1 %v5318_v39 }
  0xc7   : > { %4834 = vmatpush3.bf16.msra.mxu1 %v5318_v39 }
  0xc8   : > { %4883 = vmatprep.subr.bf16.mxu1 %v5319_v40 }
  0xca   : > { %4836 = vmatmul.mubr.bf16.vlgmr.msra.gmra.mrb[16].mxu1 %v6132_v16 }
  0xcb   : > { %4839 = vmatprep.mubr.bf16.mxu1 %v6134_v18  ;;  %4884 = vmatpush3.bf16.msra.mxu1 %v5319_v40 }
  0xcc   : > { %4885 = vmatprep.subr.bf16.mxu1 %v5320_v41 }
  0xcf   : > { %4886 = vmatpush3.bf16.msra.mxu1 %v5320_v41 }
  0xd0   : > { %4887 = vmatprep.subr.bf16.mxu1 %v5321_v42 }
  0xd2   : > { %4840 = vmatmul.mubr.bf16.gmra.mrb[20].mxu1 %v6142_v24 }
  0xd3   : > { %4843 = vmatprep.mubr.bf16.mxu1 %v6144_v26  ;;  %4888 = vmatpush3.bf16.msra.mxu1 %v5321_v42 }
  0xd4   : > { %4889 = vmatprep.subr.bf16.mxu1 %v5322_v43 }
  0xd7   : > { %4890 = vmatpush3.bf16.msra.mxu1 %v5322_v43 }
  0xd8   : > { %4891 = vmatprep.subr.bf16.mxu1 %v5323_v44 }
  0xda   : > { %4844 = vmatmul.mubr.bf16.gmra.mrb[24].mxu1 %v6152_v32 }
  0xdb   : > { %4847 = vmatprep.mubr.bf16.mxu1 %v6154_v34  ;;  %4892 = vmatpush3.bf16.msra.mxu1 %v5323_v44 }
  0xdc   : > { %4893 = vmatprep.subr.bf16.mxu1 %v5324_v45 }
  0xdf   : > { %4894 = vmatpush3.bf16.msra.mxu1 %v5324_v45 }
  0xe0   : > { %4895 = vmatprep.subr.bf16.mxu1 %v5325_v46 }
  0xe2   : > { %4848 = vmatmul.mubr.bf16.gmra.mrb[28].mxu1 %v6160_v38 }
  0xe3   : > { %4899 = vmatprep.mubr.bf16.mxu1 %v6125_v6  ;;  %4896 = vmatpush3.bf16.msra.mxu1 %v5325_v46 }
  0xe4   : > { %4897 = vmatprep.subr.bf16.mxu1 %v5326_v47 }
  0xe7   : > { %4898 = vmatpush3.bf16.msra.mxu1 %v5326_v47 }
  0xe8   : > { %4979 = vmatprep.subr.bf16.mxu1 %v5327_v48 }
  0xea   : > { %4900 = vmatmul.mubr.bf16.vlgmr.msra.gmra.mrb[32].mxu1 %v6132_v16 }
  0xeb   : > { %4980 = vmatpush3.bf16.msra.mxu1 %v5327_v48  ;;  %4903 = vmatprep.mubr.bf16.mxu1 %v6134_v18 }
  0xec   : > { %4981 = vmatprep.subr.bf16.mxu1 %v5328_v49 }
  0xef   : > { %4982 = vmatpush3.bf16.msra.mxu1 %v5328_v49 }
  0xf0   : > { %4983 = vmatprep.subr.bf16.mxu1 %v5329_v50 }
  0xf2   : > { %4904 = vmatmul.mubr.bf16.gmra.mrb[36].mxu1 %v6142_v24 }
  0xf3   : > { %4984 = vmatpush3.bf16.msra.mxu1 %v5329_v50  ;;  %4907 = vmatprep.mubr.bf16.mxu1 %v6144_v26 }
  0xf4   : > { %4985 = vmatprep.subr.bf16.mxu1 %v5330_v51 }
  0xf7   : > { %4986 = vmatpush3.bf16.msra.mxu1 %v5330_v51 }
  0xf8   : > { %4987 = vmatprep.subr.bf16.mxu1 %v5331_v52 }
  0xfa   : > { %4908 = vmatmul.mubr.bf16.gmra.mrb[40].mxu1 %v6152_v32 }
  0xfb   : > { %4988 = vmatpush3.bf16.msra.mxu1 %v5331_v52  ;;  %4911 = vmatprep.mubr.bf16.mxu1 %v6154_v34 }
  0xfc   : > { %4989 = vmatprep.subr.bf16.mxu1 %v5332_v53 }
  0xff   : > { %4990 = vmatpush3.bf16.msra.mxu1 %v5332_v53 }
 0x100   : > { %4991 = vmatprep.subr.bf16.mxu1 %v5333_v54 }
 0x102   : > { %4912 = vmatmul.mubr.bf16.gmra.mrb[44].mxu1 %v6160_v38 }
 0x103   : > { %4992 = vmatpush3.bf16.msra.mxu1 %v5333_v54  ;;  %4995 = vmatprep.mubr.bf16.mxu1 %v6125_v6 }
 0x104   : > { %4993 = vmatprep.subr.bf16.mxu1 %v5334_v55 }
 0x107   : > { %4994 = vmatpush3.bf16.msra.mxu1 %v5334_v55 }
 0x108   : > { %5011 = vmatprep.subr.bf16.mxu1 %v5335_v56 }
 0x10a   : > { %4996 = vmatmul.mubr.bf16.vlgmr.msra.gmra.mrb[48].mxu1 %v6132_v16 }
 0x10b   : > { %4999 = vmatprep.mubr.bf16.mxu1 %v6134_v18  ;;  %5012 = vmatpush3.bf16.msra.mxu1 %v5335_v56 }
 0x10c   : > { %5013 = vmatprep.subr.bf16.mxu1 %v5336_v57 }
 0x10f   : > { %5014 = vmatpush3.bf16.msra.mxu1 %v5336_v57 }
 0x110   : > { %5015 = vmatprep.subr.bf16.mxu1 %v5337_v58 }
 0x112   : > { %5000 = vmatmul.mubr.bf16.gmra.mrb[52].mxu1 %v6142_v24 }
 0x113   : > { %5003 = vmatprep.mubr.bf16.mxu1 %v6144_v26  ;;  %5016 = vmatpush3.bf16.msra.mxu1 %v5337_v58 }
 0x114   : > { %5017 = vmatprep.subr.bf16.mxu1 %v5338_v59 }
 0x117   : > { %5018 = vmatpush3.bf16.msra.mxu1 %v5338_v59 }
 0x118   : > { %5019 = vmatprep.subr.bf16.mxu1 %v5339_v60 }
 0x11a   : > { %5004 = vmatmul.mubr.bf16.gmra.mrb[56].mxu1 %v6152_v32 }
 0x11b   : > { %5007 = vmatprep.mubr.bf16.mxu1 %v6154_v34  ;;  %5020 = vmatpush3.bf16.msra.mxu1 %v5339_v60 }
 0x11c   : > { %5021 = vmatprep.subr.bf16.mxu1 %v5341_v62 }
 0x11f   : > { %5022 = vmatpush3.bf16.msra.mxu1 %v5341_v62 }
 0x120   : > { %5023 = vmatprep.subr.bf16.mxu1 %v5343_v0 }
 0x122   : > { %5008 = vmatmul.mubr.bf16.gmra.mrb[60].mxu1 %v6160_v38 }
 0x123   : > { %5027 = vmatprep.mubr.bf16.mxu1 %v6125_v6  ;;  %5024 = vmatpush3.bf16.msra.mxu1 %v5343_v0 }
 0x124   : > { %5025 = vmatprep.subr.bf16.mxu1 %v5345_v2 }
 0x127   : > { %5026 = vmatpush3.bf16.msra.mxu1 %v5345_v2 }
 0x12a   : > { %5028 = vmatmul.mubr.bf16.vlgmr.msra.gmra.mrb[64].mxu1 %v6132_v16 }
 0x12b   : > { %5031 = vmatprep.mubr.bf16.mxu1 %v6134_v18 }
 0x132   : > { %5032 = vmatmul.mubr.bf16.gmra.mrb[68].mxu1 %v6142_v24 }
 0x133   : > { %5035 = vmatprep.mubr.bf16.mxu1 %v6144_v26 }
 0x13a   : > { %5036 = vmatmul.mubr.bf16.gmra.mrb[72].mxu1 %v6152_v32 }
 0x13b   : > { %5039 = vmatprep.mubr.bf16.mxu1 %v6154_v34 }
 0x142   : > { %5040 = vmatmul.mubr.bf16.gmra.mrb[76].mxu1 %v6160_v38 }
 0x143   : > { %5091 = vmatprep.mubr.bf16.mxu1 %v6125_v6 }
 0x17d   : > { %v4805_v5 = vpop.f32.mrb[0].mxu1 }
 0x17e   : > { %v473_v8 = vpop.f32.mrb[1].mxu1  ;;  %v6219_v40 = vadd.f32 %v4805_v5, %v6214_v31 }
 0x17f   : > { %v4806_v9 = vpop.f32.mrb[2].mxu1  ;;  %v6223_v44 = vadd.f32 %v6214_v31, %v473_v8 }
 0x180   : > { %v6190_v10 = vpop.f32.mrb[3].mxu1  ;;  %v6226_v45 = vadd.f32 %v4806_v9, %v6214_v31 }
 0x181   : > { %8430 = vst [vmem:[#allocation25_spill] sm:$0xff] %v6190_v10  ;;  %8435 = vst [vmem:[#allocation30_spill] sm:$0xff] %v6223_v44 }
 0x185   : > { %v4809_v12 = vpop.f32.mrb[4].mxu1 }
 0x186   : > { %v489_v14 = vpop.f32.mrb[5].mxu1  ;;  %v6229_v46 = vadd.f32 %v4809_v12, %v6214_v31 }
 0x187   : > { %v4810_v15 = vpop.f32.mrb[6].mxu1  ;;  %v6232_v48 = vadd.f32 %v6214_v31, %v489_v14 }
 0x188   : > { %v492_v17 = vpop.f32.mrb[7].mxu1  ;;  %v6238_v52 = vadd.f32 %v4810_v15, %v6214_v31  ;;  %v8364_v15 = vmov -1.0  }
 0x189   : > { %v6241_v53 = vadd.f32 %v6214_v31, %v492_v17 }
 0x18d   : > { %v4813_v19 = vpop.f32.mrb[8].mxu1 }
 0x18e   : > { %v505_v20 = vpop.f32.mrb[9].mxu1  ;;  %v6244_v54 = vadd.f32 %v4813_v19, %v6214_v31 }
 0x18f   : > { %v4814_v21 = vpop.f32.mrb[10].mxu1  ;;  %v6247_v56 = vadd.f32 %v6214_v31, %v505_v20 }
 0x190   : > { %v508_v22 = vpop.f32.mrb[11].mxu1  ;;  %8436 = vst [vmem:[#allocation31_spill] sm:$0xff] %v6244_v54  ;;  %v6250_v57 = vadd.f32 %v4814_v21, %v6214_v31 }
 0x191   : > { %8437 = vst [vmem:[#allocation32_spill] sm:$0xff] %v6247_v56  ;;  %v6256_v63 = vadd.f32 %v6214_v31, %v508_v22 }
 0x192   : > { %8438 = vst [vmem:[#allocation33_spill] sm:$0xff] %v6250_v57 }
 0x193   : > { %8439 = vst [vmem:[#allocation34_spill] sm:$0xff] %v6256_v63 }
 0x195   : > { %v6198_v25 = vpop.f32.mrb[12].mxu1 }
 0x196   : > { %v6200_v27 = vpop.f32.mrb[13].mxu1 }
 0x197   : > { %8431 = vst [vmem:[#allocation26_spill] sm:$0xff] %v6200_v27  ;;  %v6202_v28 = vpop.f32.mrb[14].mxu1 }
 0x198   : > { %8432 = vst [vmem:[#allocation27_spill] sm:$0xff] %v6202_v28  ;;  %v6204_v29 = vpop.f32.mrb[15].mxu1 }
 0x199   : > { %8433 = vst [vmem:[#allocation28_spill] sm:$0xff] %v6204_v29 }
 0x19d   : > { %v4837_v33 = vpop.f32.mrb[16].mxu1 }
 0x19e   : > { %v650_v35 = vadd.f32 %v4837_v33, %v6209_v30  ;;  %v641_v36 = vpop.f32.mrb[17].mxu1 }
 0x19f   : > { %v642_v37 = vadd.f32 %v6209_v30, %v641_v36  ;;  %v4838_v39 = vpop.f32.mrb[18].mxu1 }
 0x1a0   : > { %v722_v41 = vmul.f32 0.70710677, %v650_v35  ;;  %v653_v42 = vadd.f32 %v4838_v39, %v6209_v30  ;;  %v644_v43 = vpop.f32.mrb[19].mxu1  ;;  %v6252_v60 = vmul.f32 0.5, %v650_v35 }
 0x1a1   : > { %v720_v47 = vmul.f32 0.70710677, %v642_v37  ;;  %v645_v51 = vadd.f32 %v6209_v30, %v644_v43  ;;  %v6258_v5 = vmul.f32 0.5, %v642_v37 }
 0x1a2   : > { %v770_v49 = vand.u32 2147483647, %v722_v41  ;;  %v6234_v50 = vmul.f32 0.70710677, %v653_v42  ;;  %vm738_vm0 = vcmp.ge.f32.partialorder %v722_v41, 0.0  ;;  %v6260_v12 = vmul.f32 0.5, %v653_v42 }
 0x1a3   : > { %v768_v55 = vand.u32 2147483647, %v720_v47  ;;  %v721_v2 = vmul.f32 0.70710677, %v645_v51  ;;  %8440 = vst [vmem:[#allocation35_spill] sm:$0xff] %v6258_v5  ;;  %v6264_v17 = vsel %vm738_vm0, 1.0, %v8364_v15 }
 0x1a4   : > { %v786_v58 = vmul.f32 0.3275911, %v770_v49  ;;  %v978_v59 = vsub.f32 0.0, %v770_v49  ;;  %v771_v62 = vand.u32 2147483647, %v6234_v50  ;;  %vm736_vm1 = vcmp.ge.f32.partialorder %v720_v47, 0.0 }
 0x1a5   : > { %v976_v61 = vsub.f32 0.0, %v768_v55  ;;  %v784_v1 = vmul.f32 0.3275911, %v768_v55  ;;  %v4841_v3 = vpop.f32.mrb[20].mxu1  ;;  %v769_v13 = vand.u32 2147483647, %v721_v2 }
 0x1a6   : > { %v802_v0 = vadd.f32 1.0, %v786_v58  ;;  %v994_v4 = vmul.f32 %v978_v59, %v770_v49  ;;  %v787_v7 = vmul.f32 0.3275911, %v771_v62  ;;  %v979_v8 = vsub.f32 0.0, %v771_v62  ;;  %v657_v9 = vpop.f32.mrb[21].mxu1 }
 0x1a7   : > { %v992_v11 = vmul.f32 %v976_v61, %v768_v55  ;;  %v4842_v14 = vpop.f32.mrb[22].mxu1  ;;  %v800_v22 = vadd.f32 1.0, %v784_v1  ;;  %v6266_v23 = vmul.f32 0.5, %v645_v51  ;;  %v785_v33 = vmul.f32 0.3275911, %v769_v13 }
 0x1a8   : > { %5399 = vrcp.f32 %v802_v0  ;;  %v803_v19 = vadd.f32 1.0, %v787_v7  ;;  %v995_v20 = vmul.f32 %v979_v8, %v771_v62  ;;  %v660_v21 = vpop.f32.mrb[23].mxu1  ;;  %v977_v35 = vsub.f32 0.0, %v769_v13 }
 0x1a9   : > { %8441 = vst [vmem:[#allocation36_spill] sm:$0xff] %v6266_v23  ;;  %v1012_v36 = vmul.f32 1.442695, %v994_v4  ;;  %vm739_vm2 = vcmp.ge.f32.partialorder %v6234_v50, 0.0  ;;  %v666_v37 = vadd.f32 %v4841_v3, %v6209_v30  ;;  %v658_v39 = vadd.f32 %v6209_v30, %v657_v9 }
 0x1aa   : > { %v1008_v42 = vmul.f32 1.442695, %v992_v11  ;;  %5401 = vrcp.f32 %v803_v19  ;;  %v993_v41 = vmul.f32 %v977_v35, %v769_v13  ;;  %v669_v43 = vadd.f32 %v4842_v14, %v6209_v30 }
 0x1ab   : > { %v6274_v49 = vadd.f32 %v6198_v25, %v6214_v31  ;;  %v1014_v51 = vmul.f32 1.442695, %v995_v20  ;;  %vm737_vm3 = vcmp.ge.f32.partialorder %v721_v2, 0.0  ;;  %v6276_v55 = vmul.f32 0.70710677, %v666_v37 }
 0x1ac   : > { %5403 = vrcp.f32 %v800_v22  ;;  %v801_v59 = vadd.f32 1.0, %v785_v33  ;;  %v1010_v61 = vmul.f32 1.442695, %v993_v41  ;;  %v724_v62 = vmul.f32 0.70710677, %v658_v39 }
 0x1ad   : > { %8442 = vst [vmem:[#allocation37_spill] sm:$0xff] %v6274_v49  ;;  %v4845_v58 = vpop.f32.mrb[24].mxu1  ;;  %5405 = vpow2.f32 %v1012_v36  ;;  %v6280_v1 = vsel %vm736_vm1, 1.0, %v8364_v15  ;;  %v774_v3 = vand.u32 2147483647, %v6276_v55  ;;  %v6290_v2 = vsel %vm739_vm2, 1.0, %v8364_v15 }
 0x1ae   : > { %v673_v0 = vpop.f32.mrb[25].mxu1  ;;  %8443 = vst [vmem:[#allocation38_spill] sm:$0xff] %v6280_v1  ;;  %v6283_v4 = vmul.f32 0.70710677, %v669_v43  ;;  %5407 = vpow2.f32 %v1008_v42  ;;  %v6293_v7 = vsel %vm737_vm3, 1.0, %v8364_v15  ;;  %v661_v13 = vadd.f32 %v6209_v30, %v660_v21 }
 0x1af   : > { %v6285_v25 = vpop.f32.mrb[26].mxu1  ;;  %8444 = vst [vmem:[#allocation39_spill] sm:$0xff] %v6293_v7  ;;  %v772_v8 = vand.u32 2147483647, %v724_v62  ;;  %5409 = vpow2.f32 %v1014_v51  ;;  %v790_v47 = vmul.f32 0.3275911, %v774_v3 }
 0x1b0   : > { %v6295_v9 = vpop.f32.mrb[27].mxu1  ;;  %v982_v11 = vsub.f32 0.0, %v774_v3  ;;  %5411 = vrcp.f32 %v801_v59  ;;  %v6300_v19 = vmul.f32 0.5, %v666_v37  ;;  %v775_v50 = vand.u32 2147483647, %v6283_v4 }
 0x1b1   : > { %v788_v20 = vmul.f32 0.3275911, %v772_v8  ;;  %5413 = vpow2.f32 %v1010_v61  ;;  %v806_v33 = vadd.f32 1.0, %v790_v47  ;;  %v980_v35 = vsub.f32 0.0, %v772_v8 }
 0x1b2   : > { %v6298_v14 = vpop.eup %5399  ;;  %v998_v36 = vmul.f32 %v982_v11, %v774_v3  ;;  %v791_v41 = vmul.f32 0.3275911, %v775_v50  ;;  %v983_v51 = vsub.f32 0.0, %v775_v50  ;;  %v6304_v21 = vmul.f32 0.5, %v658_v39 }
 0x1b3   : > { %v834_v22 = vmul.f32 1.0614054, %v6298_v14  ;;  %v804_v42 = vadd.f32 1.0, %v788_v20  ;;  %5415 = vrcp.f32 %v806_v33  ;;  %v725_v38 = vmul.f32 0.70710677, %v661_v13 }
 0x1b4   : > { %v6306_v59 = vpop.eup %5401  ;;  %vm742_vm4 = vcmp.ge.f32.partialorder %v6276_v55, 0.0  ;;  %v6309_v37 = vmul.f32 0.5, %v669_v43  ;;  %v807_v34 = vadd.f32 1.0, %v791_v41  ;;  %vm740_vm5 = vcmp.ge.f32.partialorder %v724_v62, 0.0 }
 0x1b5   : > { %v850_v15 = vadd.f32 -1.4531521, %v834_v22  ;;  %5417 = vrcp.f32 %v804_v42  ;;  %v6311_v61 = vpop.f32.mrb[28].mxu1  ;;  %v835_v47 = vmul.f32 1.0614054, %v6306_v59  ;;  %v996_v11 = vmul.f32 %v980_v35, %v772_v8 }
 0x1b6   : > { %v6315_v20 = vpop.f32.mrb[29].mxu1  ;;  %v6317_v39 = vpop.eup %5403  ;;  %v1020_v22 = vmul.f32 1.442695, %v998_v36  ;;  %vm743_vm6 = vcmp.ge.f32.partialorder %v6283_v4, 0.0  ;;  %v999_v33 = vmul.f32 %v983_v51, %v775_v50  ;;  %v773_v42 = vand.u32 2147483647, %v725_v38 }
 0x1b7   : > { %v866_v3 = vmul.f32 %v6298_v14, %v850_v15  ;;  %v6320_v43 = vpop.f32.mrb[30].mxu1  ;;  %v6322_v41 = vpop.eup %5405  ;;  %v851_v26 = vadd.f32 -1.4531521, %v835_v47  ;;  %5419 = vrcp.f32 %v807_v34  ;;  %v682_v15 = vadd.f32 %v4845_v58, %v6209_v30 }
 0x1b8   : > { %v6325_v24 = vpop.f32.mrb[31].mxu1  ;;  %v6327_v8 = vpop.eup %5407  ;;  %v8446_v35 = vmov -1.0   ;;  %v789_v51 = vmul.f32 0.3275911, %v773_v42  ;;  %v1016_v18 = vmul.f32 1.442695, %v996_v11  ;;  %5421 = vpow2.f32 %v1020_v22 }
 0x1b9   : > { %v882_v32 = vadd.f32 1.4214138, %v866_v3  ;;  %8445 = vst [vmem:[#allocation40_spill] sm:$0xff] %v6327_v8  ;;  %v6332_v36 = vsel %vm742_vm4, 1.0, %v8446_v35  ;;  %v6336_v50 = vsel %vm740_vm5, 1.0, %v8446_v35  ;;  %v674_v3 = vadd.f32 %v6209_v30, %v673_v0  ;;  %v6339_v47 = vpop.eup %5409 }
 0x1ba   : > { %v867_v58 = vmul.f32 %v6306_v59, %v851_v26  ;;  %v730_v16 = vmul.f32 0.70710677, %v682_v15  ;;  %v6343_v6 = vpop.eup %5411  ;;  %v6348_v55 = vsel %vm743_vm6, 1.0, %v8446_v35  ;;  %vm741_vm7 = vcmp.ge.f32.partialorder %v725_v38, 0.0 }
 0x1bb   : > { %v898_v34 = vmul.f32 %v6298_v14, %v882_v32  ;;  %v805_v62 = vadd.f32 1.0, %v789_v51  ;;  %v6350_v29 = vmul.f32 0.70710677, %v674_v3  ;;  %v6352_v0 = vpop.eup %5413  ;;  %v1022_v32 = vmul.f32 1.442695, %v999_v33 }
 0x1bc   : > { %8447 = vst [vmem:[#allocation41_spill] sm:$0xff] %v6352_v0  ;;  %v883_v27 = vadd.f32 1.4214138, %v867_v58  ;;  %v6354_v26 = vmul.f32 0.5, %v661_v13  ;;  %v981_v11 = vsub.f32 0.0, %v773_v42  ;;  %v6366_v13 = vsel %vm741_vm7, 1.0, %v8446_v35 }
 0x1bd   : > { %v914_v28 = vadd.f32 -0.28449672, %v898_v34  ;;  %5423 = vrcp.f32 %v805_v62  ;;  %v778_v49 = vand.u32 2147483647, %v730_v16  ;;  %v6356_v44 = vpop.eup %5415  ;;  %v776_v51 = vand.u32 2147483647, %v6350_v29 }
 0x1be   : > { %v899_v23 = vmul.f32 %v6306_v59, %v883_v27  ;;  %5425 = vpow2.f32 %v1016_v18  ;;  %v838_v34 = vmul.f32 1.0614054, %v6356_v44  ;;  %v6368_v22 = vmul.f32 0.5, %v682_v15 }
 0x1bf   : > { %v930_v4 = vmul.f32 %v6298_v14, %v914_v28  ;;  %v6361_v31 = vpop.eup %5417  ;;  %v794_v33 = vmul.f32 0.3275911, %v778_v49  ;;  %5427 = vpow2.f32 %v1022_v32  ;;  %v997_v18 = vmul.f32 %v981_v11, %v773_v42 }
 0x1c0   : > { %v915_v62 = vadd.f32 -0.28449672, %v899_v23  ;;  %v836_v28 = vmul.f32 1.0614054, %v6361_v31  ;;  %v854_v27 = vadd.f32 -1.4531521, %v838_v34 }
 0x1c1   : > { %v946_v58 = vadd.f32 0.2548296, %v930_v4  ;;  %v810_v10 = vadd.f32 1.0, %v794_v33  ;;  %v986_v5 = vsub.f32 0.0, %v778_v49  ;;  %v6371_v7 = vpop.eup %5419  ;;  %v792_v0 = vmul.f32 0.3275911, %v776_v51 }
 0x1c2   : > { %v931_v38 = vmul.f32 %v6306_v59, %v915_v62  ;;  %v852_v1 = vadd.f32 -1.4531521, %v836_v28  ;;  %v870_v15 = vmul.f32 %v6356_v44, %v854_v27  ;;  %v839_v4 = vmul.f32 1.0614054, %v6371_v7 }
 0x1c3   : > { %v962_v63 = vmul.f32 %v6298_v14, %v946_v58  ;;  %5429 = vrcp.f32 %v810_v10  ;;  %v6377_v23 = vmul.f32 0.5, %v674_v3  ;;  %vm746_vm8 = vcmp.ge.f32.partialorder %v730_v16, 0.0  ;;  %v5422_v58 = vpop.eup %5421 }
 0x1c4   : > { %v947_v32 = vadd.f32 0.2548296, %v931_v38  ;;  %v868_v42 = vmul.f32 %v6361_v31, %v852_v1  ;;  %v808_v11 = vadd.f32 1.0, %v792_v0  ;;  %v886_v34 = vadd.f32 1.4214138, %v870_v15 }
 0x1c5   : > { %v855_v33 = vadd.f32 -1.4531521, %v839_v4  ;;  %v1018_v57 = vmul.f32 1.442695, %v997_v18  ;;  %v1002_v14 = vmul.f32 %v986_v5, %v778_v49  ;;  %v1042_v62 = vmul.f32 %v6322_v41, %v962_v63 }
 0x1c6   : > { %v884_v28 = vadd.f32 1.4214138, %v868_v42  ;;  %5431 = vrcp.f32 %v808_v11  ;;  %v984_v27 = vsub.f32 0.0, %v776_v51  ;;  %v902_v10 = vmul.f32 %v6356_v44, %v886_v34 }
 0x1c7   : > { %v6381_v8 = vpop.eup %5423  ;;  %v871_v3 = vmul.f32 %v6371_v7, %v855_v33  ;;  %v6386_v1 = vsel %vm746_vm8, 1.0, %v8446_v35  ;;  %v685_v16 = vadd.f32 %v6285_v25, %v6209_v30  ;;  %v963_v5 = vmul.f32 %v6306_v59, %v947_v32 }
 0x1c8   : > { %v5426_v0 = vpop.eup %5425  ;;  %v900_v63 = vmul.f32 %v6361_v31, %v884_v28  ;;  %v837_v49 = vmul.f32 1.0614054, %v6381_v8  ;;  %vm744_vm9 = vcmp.ge.f32.partialorder %v6350_v29, 0.0  ;;  %v918_v41 = vadd.f32 -0.28449672, %v902_v10 }
 0x1c9   : > { %v887_v18 = vadd.f32 1.4214138, %v871_v3  ;;  %5433 = vpow2.f32 %v1018_v57  ;;  %v1028_v38 = vmul.f32 1.442695, %v1002_v14  ;;  %v5428_v15 = vpop.eup %5427  ;;  %v1058_v4 = vsub.f32 1.0, %v1042_v62 }
 0x1ca   : > { %v916_v42 = vadd.f32 -0.28449672, %v900_v63  ;;  %v853_v11 = vadd.f32 -1.4531521, %v837_v49  ;;  %v1000_v34 = vmul.f32 %v984_v27, %v776_v51  ;;  %v934_v25 = vmul.f32 %v6356_v44, %v918_v41 }
 0x1cb   : > { %v903_v33 = vmul.f32 %v6371_v7, %v887_v18  ;;  %v6396_v59 = vmul.f32 0.70710677, %v685_v16  ;;  %v6400_v32 = vadd.f32 %v6209_v30, %v6295_v9  ;;  %v1043_v28 = vmul.f32 %v6339_v47, %v963_v5 }
 0x1cc   : > { %v932_v57 = vmul.f32 %v6361_v31, %v916_v42  ;;  %v869_v14 = vmul.f32 %v6381_v8, %v853_v11  ;;  %v6408_v51 = vsel %vm744_vm9, 1.0, %v8446_v35  ;;  %v950_v27 = vadd.f32 0.2548296, %v934_v25 }
 0x1cd   : > { %v6410_v62 = vpop.eup %5429  ;;  %v919_v10 = vadd.f32 -0.28449672, %v903_v33  ;;  %5435 = vpow2.f32 %v1028_v38  ;;  %v6412_v3 = vmul.f32 0.5, %v685_v16  ;;  %v1074_v9 = vmul.f32 %v1058_v4, %v6264_v17 }
 0x1ce   : > { %v948_v63 = vadd.f32 0.2548296, %v932_v57  ;;  %v885_v47 = vadd.f32 1.4214138, %v869_v14  ;;  %v1024_v5 = vmul.f32 1.442695, %v1000_v34  ;;  %v966_v49 = vmul.f32 %v6356_v44, %v950_v27 }
 0x1cf   : > { %v935_v41 = vmul.f32 %v6371_v7, %v919_v10  ;;  %v842_v29 = vmul.f32 1.0614054, %v6410_v62  ;;  %v779_v18 = vand.u32 2147483647, %v6396_v59  ;;  %v1059_v11 = vsub.f32 1.0, %v1043_v28 }
 0x1d0   : > { %v6419_v42 = vpop.eup %5431  ;;  %v964_v38 = vmul.f32 %v6361_v31, %v948_v63  ;;  %v901_v16 = vmul.f32 %v6381_v8, %v885_v47  ;;  %v6425_v17 = vadd.f32 %v6311_v61, %v6209_v30  ;;  %v1046_v4 = vmul.f32 %v5422_v58, %v966_v49 }
 0x1d1   : > { %v951_v34 = vadd.f32 0.2548296, %v935_v41  ;;  %v858_v44 = vadd.f32 -1.4531521, %v842_v29  ;;  %v840_v25 = vmul.f32 1.0614054, %v6419_v42  ;;  %v1075_v49 = vmul.f32 %v1059_v11, %v6290_v2 }
 0x1d2   : > { %v1044_v33 = vmul.f32 %v5426_v0, %v964_v38  ;;  %v917_v57 = vadd.f32 -0.28449672, %v901_v16  ;;  %v795_v14 = vmul.f32 0.3275911, %v779_v18  ;;  %v987_v27 = vsub.f32 0.0, %v779_v18 }
 0x1d3   : > { %v5434_v10 = vpop.eup %5433  ;;  %v1062_v54 = vsub.f32 1.0, %v1046_v4  ;;  %v967_v28 = vmul.f32 %v6371_v7, %v951_v34  ;;  %v874_v31 = vmul.f32 %v6410_v62, %v858_v44  ;;  %v856_v63 = vadd.f32 -1.4531521, %v840_v25  ;;  %v6437_v25 = vpop.f32.mrb[32].mxu1 }
 0x1d4   : > { %v1090_v47 = vadd.f32 1.0, %v1074_v9  ;;  %v1060_v56 = vsub.f32 1.0, %v1044_v33  ;;  %v933_v61 = vmul.f32 %v6381_v8, %v917_v57  ;;  %v811_v58 = vadd.f32 1.0, %v795_v14  ;;  %8448 = vst [vmem:[#allocation42_spill] sm:$0xff] %v6437_v25  ;;  %v6444_v33 = vpop.f32.mrb[33].mxu1 }
 0x1d5   : > { %v890_v41 = vadd.f32 1.4214138, %v874_v31  ;;  %v872_v0 = vmul.f32 %v6419_v42, %v856_v63  ;;  %v1003_v29 = vmul.f32 %v987_v27, %v779_v18  ;;  %vm747_vm10 = vcmp.ge.f32.partialorder %v6396_v59, 0.0  ;;  %8449 = vst [vmem:[#allocation43_spill] sm:$0xff] %v6444_v33 }
 0x1d6   : > { %v949_v38 = vadd.f32 0.2548296, %v933_v61  ;;  %5437 = vrcp.f32 %v811_v58  ;;  %v729_v7 = vmul.f32 0.70710677, %v6400_v32  ;;  %v1078_v4 = vmul.f32 %v1062_v54, %v6332_v36 }
 0x1d7   : > { %v5436_v16 = vpop.eup %5435  ;;  %v1047_v9 = vmul.f32 %v5428_v15, %v967_v28  ;;  %v906_v34 = vmul.f32 %v6410_v62, %v890_v41  ;;  %v888_v44 = vadd.f32 1.4214138, %v872_v0  ;;  %v6440_v2 = vmul.f32 %v1090_v47, %v6252_v60  ;;  %v6447_v15 = vpop.f32.mrb[34].mxu1 }
 0x1d8   : > { %v1076_v18 = vmul.f32 %v1060_v56, %v6336_v50  ;;  %v965_v11 = vmul.f32 %v6381_v8, %v949_v38  ;;  %5439 = vpow2.f32 %v1024_v5  ;;  %v1091_v57 = vadd.f32 1.0, %v1075_v49  ;;  %8450 = vst [vmem:[#allocation44_spill] sm:$0xff] %v6447_v15  ;;  %v6457_v50 = vpop.f32.mrb[35].mxu1 }
 0x1d9   : > { %v922_v14 = vadd.f32 -0.28449672, %v906_v34  ;;  %v904_v54 = vmul.f32 %v6419_v42, %v888_v44  ;;  %v1030_v36 = vmul.f32 1.442695, %v1003_v29  ;;  %v6452_v60 = vsel %vm747_vm10, 1.0, %v8446_v35  ;;  %8451 = vst [vmem:[#allocation45_spill] sm:$0xff] %v6457_v50 }
 0x1da   : > { %v1045_v27 = vmul.f32 %v5434_v10, %v965_v11  ;;  %v6455_v56 = vmul.f32 0.5, %v6400_v32  ;;  %v777_v8 = vand.u32 2147483647, %v729_v7  ;;  %v1094_v5 = vadd.f32 1.0, %v1078_v4  ;;  %v6476_v34 = vpop.f32.mrb[36].mxu1 }
 0x1db   : > { %v1063_v28 = vsub.f32 1.0, %v1047_v9  ;;  %v938_v31 = vmul.f32 %v6410_v62, %v922_v14  ;;  %v920_v63 = vadd.f32 -0.28449672, %v904_v54  ;;  %v1092_v47 = vadd.f32 1.0, %v1076_v18  ;;  %8452 = vst [vmem:[#allocation46_spill] sm:$0xff] %v6476_v34 }
 0x1dc   : > { %v793_v61 = vmul.f32 0.3275911, %v777_v8  ;;  %v985_v58 = vsub.f32 0.0, %v777_v8  ;;  %v6461_v10 = vmul.f32 0.70710677, %v6425_v17  ;;  %v6464_v59 = vmul.f32 %v1091_v57, %v6260_v12  ;;  %v6484_v57 = vpop.f32.mrb[37].mxu1 }
 0x1dd   : > { %v954_v49 = vadd.f32 0.2548296, %v938_v31  ;;  %v936_v32 = vmul.f32 %v6419_v42, %v920_v63  ;;  %5441 = vpow2.f32 %v1030_v36  ;;  %v1061_v41 = vsub.f32 1.0, %v1045_v27  ;;  %8453 = vst [vmem:[#allocation47_spill] sm:$0xff] %v6484_v57  ;;  %v6488_v36 = vpop.f32.mrb[38].mxu1 }
 0x1de   : > { %vm745_vm11 = vcmp.ge.f32.partialorder %v729_v7, 0.0  ;;  %v809_v0 = vadd.f32 1.0, %v793_v61  ;;  %v6469_v29 = vadd.f32 %v6209_v30, %v6315_v20  ;;  %v6472_v38 = vmul.f32 %v1094_v5, %v6300_v19  ;;  %8454 = vst [vmem:[#allocation48_spill] sm:$0xff] %v6488_v36 }
 0x1df   : > { %v970_v4 = vmul.f32 %v6410_v62, %v954_v49  ;;  %v952_v9 = vadd.f32 0.2548296, %v936_v32  ;;  %v782_v12 = vand.u32 2147483647, %v6461_v10  ;;  %v6481_v18 = vmul.f32 %v1092_v47, %v6304_v21 }
 0x1e0   : > { %v6478_v44 = vpop.eup %5437  ;;  %v1079_v11 = vmul.f32 %v1063_v28, %v6348_v55  ;;  %5443 = vrcp.f32 %v809_v0  ;;  %v1001_v20 = vmul.f32 %v985_v58, %v777_v8  ;;  %v1077_v5 = vmul.f32 %v1061_v41, %v6366_v13  ;;  %v6498_v28 = vpop.f32.mrb[39].mxu1 }
 0x1e1   : > { %v1050_v19 = vmul.f32 %v5436_v16, %v970_v4  ;;  %v968_v14 = vmul.f32 %v6419_v42, %v952_v9  ;;  %v843_v62 = vmul.f32 1.0614054, %v6478_v44  ;;  %v798_v54 = vmul.f32 0.3275911, %v782_v12  ;;  %8455 = vst [vmem:[#allocation49_spill] sm:$0xff] %v6498_v28 }
 0x1e2   : > { %v5440_v27 = vpop.eup %5439  ;;  %v6493_v21 = vsel %vm745_vm11, 1.0, %v8446_v35  ;;  %v990_v55 = vsub.f32 0.0, %v782_v12  ;;  %v6496_v8 = vmul.f32 0.70710677, %v6469_v29  ;;  %v1095_v47 = vadd.f32 1.0, %v1079_v11 }
 0x1e3   : > { %v1066_v16 = vsub.f32 1.0, %v1050_v19  ;;  %v1048_v42 = vmul.f32 %v5440_v27, %v968_v14  ;;  %v859_v31 = vadd.f32 -1.4531521, %v843_v62  ;;  %v814_v63 = vadd.f32 1.0, %v798_v54 }
 0x1e4   : > { %v1006_v61 = vmul.f32 %v990_v55, %v782_v12  ;;  %v780_v58 = vand.u32 2147483647, %v6496_v8  ;;  %v6503_v13 = vadd.f32 %v6320_v43, %v6209_v30  ;;  %v1026_v32 = vmul.f32 1.442695, %v1001_v20  ;;  %v6511_v43 = vpop.f32.mrb[40].mxu1 }
 0x1e5   : > { %v1064_v7 = vsub.f32 1.0, %v1048_v42  ;;  %v875_v49 = vmul.f32 %v6478_v44, %v859_v31  ;;  %5445 = vrcp.f32 %v814_v63  ;;  %v1093_v41 = vadd.f32 1.0, %v1077_v5  ;;  %8456 = vst [vmem:[#allocation50_spill] sm:$0xff] %v6511_v43 }
 0x1e6   : > { %v6507_v0 = vmul.f32 0.5, %v6425_v17  ;;  %v796_v4 = vmul.f32 0.3275911, %v780_v58  ;;  %v988_v9 = vsub.f32 0.0, %v780_v58  ;;  %v1082_v12 = vmul.f32 %v1066_v16, %v6386_v1  ;;  %v6517_v17 = vpop.f32.mrb[41].mxu1 }
 0x1e7   : > { %v5442_v19 = vpop.eup %5441  ;;  %v891_v11 = vadd.f32 1.4214138, %v875_v49  ;;  %vm750_vm12 = vcmp.ge.f32.partialorder %v6461_v10, 0.0  ;;  %v1036_v14 = vmul.f32 1.442695, %v1006_v61  ;;  %v1080_v62 = vmul.f32 %v1064_v7, %v6408_v51  ;;  %8457 = vst [vmem:[#allocation51_spill] sm:$0xff] %v6517_v17 }
 0x1e8   : > { %v812_v54 = vadd.f32 1.0, %v796_v4  ;;  %v1004_v20 = vmul.f32 %v988_v9, %v780_v58  ;;  %v6515_v27 = vmul.f32 0.70710677, %v6503_v13  ;;  %v6520_v5 = vmul.f32 %v1095_v47, %v6309_v37  ;;  %v6527_v55 = vpop.f32.mrb[42].mxu1 }
 0x1e9   : > { %v907_v1 = vmul.f32 %v6478_v44, %v891_v11  ;;  %5447 = vpow2.f32 %v1026_v32  ;;  %v6525_v10 = vadd.f32 %v6209_v30, %v6325_v24  ;;  %8458 = vst [vmem:[#allocation52_spill] sm:$0xff] %v6527_v55  ;;  %v6532_v16 = vmul.f32 %v1093_v41, %v6354_v26  ;;  %v6538_v31 = vpop.f32.mrb[43].mxu1 }
 0x1ea   : > { %v6529_v51 = vpop.eup %5443  ;;  %v6535_v42 = vsel %vm750_vm12, 1.0, %v8446_v35  ;;  %5449 = vrcp.f32 %v812_v54  ;;  %v783_v37 = vand.u32 2147483647, %v6515_v27  ;;  %8459 = vst [vmem:[#allocation53_spill] sm:$0xff] %v6538_v31  ;;  %v1098_v63 = vadd.f32 1.0, %v1082_v12 }
 0x1eb   : > { %v923_v47 = vadd.f32 -0.28449672, %v907_v1  ;;  %v841_v24 = vmul.f32 1.0614054, %v6529_v51  ;;  %5451 = vpow2.f32 %v1036_v14  ;;  %v1096_v30 = vadd.f32 1.0, %v1080_v62 }
 0x1ec   : > { %v1032_v61 = vmul.f32 1.442695, %v1004_v20  ;;  %v799_v58 = vmul.f32 0.3275911, %v783_v37  ;;  %v991_v7 = vsub.f32 0.0, %v783_v37  ;;  %v6549_v11 = vmul.f32 %v6440_v2, %v6219_v40 }
 0x1ed   : > { %v939_v26 = vmul.f32 %v6478_v44, %v923_v47  ;;  %v857_v49 = vadd.f32 -1.4531521, %v841_v24  ;;  %v6543_v32 = vmul.f32 0.70710677, %v6525_v10  ;;  %v832_v41 = vmul.f32 1.0614054, %v6317_v39 }
 0x1ee   : > { %v815_v4 = vadd.f32 1.0, %v799_v58  ;;  %v1007_v9 = vmul.f32 %v991_v7, %v783_v37  ;;  %v833_v12 = vmul.f32 1.0614054, %v6343_v6  ;;  %v6554_v62 = vmul.f32 %v1098_v63, %v6368_v22  ;;  %v6558_v47 = vpop.f32.mrb[44].mxu1 }
 0x1ef   : > { %v6551_v14 = vpop.eup %5445  ;;  %v955_v54 = vadd.f32 0.2548296, %v939_v26  ;;  %v873_v20 = vmul.f32 %v6529_v51, %v857_v49  ;;  %v781_v1 = vand.u32 2147483647, %v6543_v32  ;;  %8460 = vst [vmem:[#allocation54_spill] sm:$0xff] %v6558_v47  ;;  %v6561_v37 = vmul.f32 %v1096_v30, %v6377_v23  ;;  %v6564_v2 = vpop.f32.mrb[45].mxu1 }
 0x1f0   : > { %v846_v24 = vmul.f32 1.0614054, %v6551_v14  ;;  %5453 = vrcp.f32 %v815_v4  ;;  %v1038_v40 = vmul.f32 1.442695, %v1007_v9  ;;  %8461 = vst [vmem:[#allocation55_spill] sm:$0xff] %v6564_v2  ;;  %v6567_v26 = vpop.f32.mrb[46].mxu1 }
 0x1f1   : > { %v971_v58 = vmul.f32 %v6478_v44, %v955_v54  ;;  %v889_v22 = vadd.f32 1.4214138, %v873_v20  ;;  %v797_v63 = vmul.f32 0.3275911, %v781_v1  ;;  %v989_v7 = vsub.f32 0.0, %v781_v1  ;;  %8462 = vst [vmem:[#allocation56_spill] sm:$0xff] %v6567_v26 }
 0x1f2   : > { %v862_v49 = vadd.f32 -1.4531521, %v846_v24  ;;  %5455 = vpow2.f32 %v1032_v61  ;;  %v848_v31 = vadd.f32 -1.4531521, %v832_v41  ;;  %v849_v47 = vadd.f32 -1.4531521, %v833_v12 }
 0x1f3   : > { %v5448_v55 = vpop.eup %5447  ;;  %v1051_v23 = vmul.f32 %v5442_v19, %v971_v58  ;;  %v905_v30 = vmul.f32 %v6529_v51, %v889_v22  ;;  %v813_v17 = vadd.f32 1.0, %v797_v63  ;;  %v1005_v4 = vmul.f32 %v989_v7, %v781_v1  ;;  %v6570_v9 = vpop.f32.mrb[47].mxu1  ;;  %v8466_v22 = vld [vmem:[#allocation40_spill] sm:$0xff] }
 0x1f4   : > { %8463 = vst [vmem:[#allocation57_spill] sm:$0xff] %v6570_v9  ;;  %v6572_v2 = vpop.eup %5449  ;;  %v878_v44 = vmul.f32 %v6551_v14, %v862_v49  ;;  %v864_v54 = vmul.f32 %v6317_v39, %v848_v31  ;;  %v865_v20 = vmul.f32 %v6343_v6, %v849_v47  ;;  %v6579_v61 = vmul.f32 %v6464_v59, %v6226_v45 }
 0x1f5   : > { %v5452_v41 = vpop.eup %5451  ;;  %v1067_v19 = vsub.f32 1.0, %v1051_v23  ;;  %v921_v12 = vadd.f32 -0.28449672, %v905_v30  ;;  %v844_v24 = vmul.f32 1.0614054, %v6572_v2  ;;  %5457 = vrcp.f32 %v813_v17 }
 0x1f6   : > { %v894_v1 = vadd.f32 1.4214138, %v878_v44  ;;  %5459 = vpow2.f32 %v1038_v40  ;;  %v880_v58 = vadd.f32 1.4214138, %v864_v54  ;;  %v881_v7 = vadd.f32 1.4214138, %v865_v20 }
 0x1f7   : > { %v1083_v31 = vmul.f32 %v1067_v19, %v6452_v60  ;;  %v937_v47 = vmul.f32 %v6529_v51, %v921_v12  ;;  %v860_v63 = vadd.f32 -1.4531521, %v844_v24  ;;  %v6587_v59 = vmul.f32 1.442695, %v1005_v4 }
 0x1f8   : > { %v910_v45 = vmul.f32 %v6551_v14, %v894_v1  ;;  %v896_v49 = vmul.f32 %v6317_v39, %v880_v58  ;;  %v6592_v17 = vmul.f32 %v6481_v18, %v6232_v48  ;;  %v897_v60 = vmul.f32 %v6343_v6, %v881_v7  ;;  %v6609_v1 = vpop.f32.mrb[48].mxu1 }
 0x1f9   : > { %v1099_v40 = vadd.f32 1.0, %v1083_v31  ;;  %v953_v23 = vadd.f32 0.2548296, %v937_v47  ;;  %v876_v30 = vmul.f32 %v6572_v2, %v860_v63  ;;  %v6600_v4 = vmul.f32 %v6532_v16, %v6241_v53 }
 0x1fa   : > { %v6596_v44 = vpop.eup %5453  ;;  %v926_v54 = vadd.f32 -0.28449672, %v910_v45  ;;  %v912_v20 = vadd.f32 -0.28449672, %v896_v49  ;;  %v6604_v19 = vmul.f32 %v6472_v38, %v6229_v46  ;;  %v913_v47 = vadd.f32 -0.28449672, %v897_v60 }
 0x1fb   : > { %v1115_v48 = vmul.f32 %v1099_v40, %v6412_v3  ;;  %v969_v18 = vmul.f32 %v6529_v51, %v953_v23  ;;  %v892_v12 = vadd.f32 1.4214138, %v876_v30  ;;  %v847_v24 = vmul.f32 1.0614054, %v6596_v44  ;;  %v6615_v46 = vpop.f32.mrb[49].mxu1  ;;  %v8464_v23 = vld [vmem:[#allocation32_spill] sm:$0xff] }
 0x1fc   : > { %v5456_v58 = vpop.eup %5455  ;;  %v942_v31 = vmul.f32 %v6551_v14, %v926_v54  ;;  %v928_v53 = vmul.f32 %v6317_v39, %v912_v20  ;;  %v6620_v63 = vmul.f32 %v6520_v5, %v6238_v52  ;;  %v6622_v7 = vpop.f32.mrb[50].mxu1  ;;  %vm748_vm13 = vcmp.ge.f32.partialorder %v6496_v8, 0.0 }
 0x1fd   : > { %v1049_v38 = vmul.f32 %v5448_v55, %v969_v18  ;;  %v908_v3 = vmul.f32 %v6572_v2, %v892_v12  ;;  %v863_v51 = vadd.f32 -1.4531521, %v847_v24  ;;  %v929_v49 = vmul.f32 %v6343_v6, %v913_v47  ;;  %v6630_v55 = vpop.f32.mrb[51].mxu1 }
 0x1fe   : > { %v958_v45 = vadd.f32 0.2548296, %v942_v31  ;;  %v944_v40 = vadd.f32 0.2548296, %v928_v53  ;;  %v6628_v30 = vmul.f32 %v6561_v37, %v8464_v23  ;;  %5461 = vpow2.f32 %v6587_v59 }
 0x1ff   : > { %v6632_v60 = vpop.eup %5457  ;;  %v1065_v54 = vsub.f32 1.0, %v1049_v38  ;;  %v924_v20 = vadd.f32 -0.28449672, %v908_v3  ;;  %v879_v52 = vmul.f32 %v6596_v44, %v863_v51  ;;  %v945_v31 = vadd.f32 0.2548296, %v929_v49  ;;  %v8465_v38 = vld [vmem:[#allocation31_spill] sm:$0xff] }
 0x200   : > { %v5460_v18 = vpop.eup %5459  ;;  %v974_v12 = vmul.f32 %v6551_v14, %v958_v45  ;;  %v845_v24 = vmul.f32 1.0614054, %v6632_v60  ;;  %v960_v37 = vmul.f32 %v6317_v39, %v944_v40  ;;  %v6644_v3 = vmul.f32 %v6554_v62, %v8465_v38  ;;  %v8467_v39 = vld [vmem:[#allocation33_spill] sm:$0xff] }
 0x201   : > { %v1081_v47 = vmul.f32 %v1065_v54, %v6493_v21  ;;  %v940_v53 = vmul.f32 %v6572_v2, %v924_v20  ;;  %v895_v23 = vadd.f32 1.4214138, %v879_v52  ;;  %v961_v5 = vmul.f32 %v6343_v6, %v945_v31  ;;  %v6652_v21 = vpop.f32.mrb[52].mxu1  ;;  %v8468_v62 = vld [vmem:[#allocation41_spill] sm:$0xff] }
 0x202   : > { %v1054_v51 = vmul.f32 %v5452_v41, %v974_v12  ;;  %v861_v16 = vadd.f32 -1.4531521, %v845_v24  ;;  %v1040_v14 = vmul.f32 %v8466_v22, %v960_v37  ;;  %v6650_v40 = vmul.f32 %v1115_v48, %v8467_v39  ;;  %v6656_v12 = vpop.f32.mrb[53].mxu1 }
 0x203   : > { %v1097_v45 = vadd.f32 1.0, %v1081_v47  ;;  %v956_v9 = vadd.f32 0.2548296, %v940_v53  ;;  %v911_v49 = vmul.f32 %v6596_v44, %v895_v23  ;;  %v1041_v52 = vmul.f32 %v8468_v62, %v961_v5  ;;  %v6662_v48 = vpop.f32.mrb[54].mxu1 }
 0x204   : > { %v1070_v54 = vsub.f32 1.0, %v1054_v51  ;;  %v877_v20 = vmul.f32 %v6632_v60, %v861_v16  ;;  %v1056_v41 = vsub.f32 1.0, %v1040_v14  ;;  %v1141_v31 = vpack.c.bf16 %v6650_v40, %v6644_v3  ;;  %v8469_v16 = vld [vmem:[#allocation38_spill] sm:$0xff]  ;;  %v6666_v5 = vpop.f32.mrb[55].mxu1  ;;  %v8496_v3 = vld [vmem:[#allocation21_spill] sm:$0xff] }
 0x205   : > { %v1113_v6 = vmul.f32 %v1097_v45, %v6455_v56  ;;  %v972_v22 = vmul.f32 %v6572_v2, %v956_v9  ;;  %v927_v24 = vadd.f32 -0.28449672, %v911_v49  ;;  %v1057_v53 = vsub.f32 1.0, %v1041_v52  ;;  %v8470_v56 = vld [vmem:[#allocation34_spill] sm:$0xff]  ;;  %v8471_v45 = vld [vmem:[#allocation39_spill] sm:$0xff] }
 0x206   : > { %v1086_v37 = vmul.f32 %v1070_v54, %v6535_v42  ;;  %v893_v47 = vadd.f32 1.4214138, %v877_v20  ;;  %v1072_v23 = vmul.f32 %v1056_v41, %v8469_v16  ;;  %v764_v39 = vsel %vm748_vm13, 1.0, %v8446_v35  ;;  %v8472_v41 = vld [vmem:[#allocation35_spill] sm:$0xff]  ;;  %v6685_v16 = vpop.f32.mrb[56].mxu1  ;;  %v8497_v40 = vld [vmem:[#allocation22_spill] sm:$0xff] }
 0x207   : > { %v1052_v38 = vmul.f32 %v5456_v58, %v972_v22  ;;  %v943_v51 = vmul.f32 %v6596_v44, %v927_v24  ;;  %v6671_v2 = vmul.f32 %v1113_v6, %v8470_v56  ;;  %v1073_v49 = vmul.f32 %v1057_v53, %v8471_v45  ;;  %v8473_v22 = vld [vmem:[#allocation25_spill] sm:$0xff]  ;;  %8475 = vst [vmem:[#allocation32_spill] sm:$0xff] %v6685_v16 }
 0x208   : > { %v1102_v9 = vadd.f32 1.0, %v1086_v37  ;;  %v909_v14 = vmul.f32 %v6632_v60, %v893_v47  ;;  %v1088_v42 = vadd.f32 1.0, %v1072_v23  ;;  %v8474_v24 = vld [vmem:[#allocation29_spill] sm:$0xff]  ;;  %v8476_v23 = vld [vmem:[#allocation36_spill] sm:$0xff]  ;;  %vm751_vm14 = vcmp.ge.f32.partialorder %v6515_v27, 0.0 }
 0x209   : > { %v1068_v54 = vsub.f32 1.0, %v1052_v38  ;;  %v959_v20 = vadd.f32 0.2548296, %v943_v51  ;;  %v1140_v58 = vpack.c.bf16 %v6671_v2, %v6628_v30  ;;  %v1089_v52 = vadd.f32 1.0, %v1073_v49  ;;  %v8477_v51 = vld [vmem:[#allocation30_spill] sm:$0xff]  ;;  %v8478_v45 = vld [vmem:[#allocation37_spill] sm:$0xff] }
 0x20a   : > { %v1118_v59 = vmul.f32 %v1102_v9, %v6507_v0  ;;  %v925_v62 = vadd.f32 -0.28449672, %v909_v14  ;;  %v1104_v6 = vmul.f32 %v1088_v42, %v8472_v41  ;;  %v477_v37 = vadd.f32 %v8474_v24, %v8473_v22  ;;  %v6693_v9 = vpop.f32.mrb[57].mxu1  ;;  %v8492_v30 = vld [vmem:[#allocation17_spill] sm:$0xff]  ;;  %v8493_v2 = vld [vmem:[#allocation18_spill] sm:$0xff] }
 0x20b   : > { %v1084_v47 = vmul.f32 %v1068_v54, %v764_v39  ;;  %v975_v53 = vmul.f32 %v6596_v44, %v959_v20  ;;  %v1105_v38 = vmul.f32 %v1089_v52, %v8476_v23  ;;  %8479 = vst [vmem:[#allocation31_spill] sm:$0xff] %v6693_v9  ;;  %v716_v14 = vmul.f32 0.5, %v6469_v29  ;;  %v6697_v44 = vpop.f32.mrb[58].mxu1 }
 0x20c   : > { %v941_v8 = vmul.f32 %v6632_v60, %v925_v62  ;;  %v1120_v56 = vmul.f32 %v1104_v6, %v8477_v51  ;;  %v6691_v0 = vmul.f32 %v1118_v59, %v8478_v45  ;;  %8480 = vst [vmem:[#allocation40_spill] sm:$0xff] %v6697_v44  ;;  %v6699_v20 = vpop.f32.mrb[59].mxu1  ;;  %v5655_v62 = vld [vmem:[%s8354_s2] ss:$0 sm:$0xff]  ;;  %v8482_v59 = vld [vmem:[#allocation26_spill] sm:$0xff]  ;;  %v767_v29 = vsel %vm751_vm14, 1.0, %v8446_v35 }
 0x20d   : > { %v1100_v49 = vadd.f32 1.0, %v1084_v47  ;;  %v1055_v42 = vmul.f32 %v5460_v18, %v975_v53  ;;  %v1121_v54 = vmul.f32 %v1105_v38, %v477_v37  ;;  %8481 = vst [vmem:[#allocation33_spill] sm:$0xff] %v6699_v20  ;;  %v522_v52 = vadd.f32 %v5655_v62, %v8482_v59  ;;  %v5462_v18 = vpop.eup %5461  ;;  %v5352_v47 = vld [vmem:[#allocation8 + $0x48] sm:$0xff]   ;;  %v6712_v51 = vpop.f32.mrb[60].mxu1 }
 0x20e   : > { %v957_v39 = vadd.f32 0.2548296, %v941_v8  ;;  %vm749_vm15 = vcmp.ge.f32.partialorder %v6543_v32, 0.0  ;;  %v719_v8 = vmul.f32 0.5, %v6503_v13  ;;  %v8483_v38 = vpack.c.bf16 %v6579_v61, %v6549_v11  ;;  %8484 = vst [vmem:[#allocation41_spill] sm:$0xff] %v6712_v51  ;;  %v8487_v32 = vld [vmem:[#allocation27_spill] sm:$0xff] }
 0x20f   : > { %v1116_v41 = vmul.f32 %v1100_v49, %v716_v14  ;;  %v1071_v6 = vsub.f32 1.0, %v1055_v42  ;;  %v1136_v27 = vpack.c.bf16 %v1121_v54, %v1120_v56  ;;  %v8485_v56 = vpack.c.bf16 %v6600_v4, %v6592_v17  ;;  %v6717_v14 = vpop.f32.mrb[61].mxu1  ;;  %v5354_v17 = vld [vmem:[#allocation8 + $0x58] sm:$0xff]  }
 0x210   : > { %v973_v22 = vmul.f32 %v6632_v60, %v957_v39  ;;  %v5656_v60 = vld [vmem:[#allocation8 + $0x40] sm:$0xff]   ;;  %8486 = vst [vmem:[#allocation38_spill] sm:$0xff] %v6717_v14  ;;  %v533_v49 = vadd.f32 %v5655_v62, %v8487_v32  ;;  %v765_v13 = vsel %vm749_vm15, 1.0, %v8446_v35  ;;  %v5353_v39 = vld [vmem:[#allocation8 + $0x50] sm:$0xff]   ;;  %v6721_v11 = vpop.f32.mrb[62].mxu1 }
 0x211   : > { %v1087_v24 = vmul.f32 %v1071_v6, %v767_v29  ;;  %v1132_v53 = vmul.f32 %v1116_v41, %v522_v52  ;;  %4867 = vmatprep.mubr.bf16.mxu0 %v1136_v27  ;;  %8488 = vst [vmem:[#allocation34_spill] sm:$0xff] %v6721_v11  ;;  %v6723_v54 = vpop.f32.mrb[63].mxu1  ;;  %v717_v52 = vmul.f32 0.5, %v6525_v10  ;;  %v8490_v6 = vld [vmem:[#allocation28_spill] sm:$0xff]  ;;  %v8491_v27 = vpack.c.bf16 %v6620_v63, %v6604_v19  ;;  %v5355_v10 = vld [vmem:[#allocation8 + $0x60] sm:$0xff]   ;;  %v5357_v19 = vld [vmem:[#allocation8 + $0x70] sm:$0xff]  }
 0x212   : > { %v1053_v37 = vmul.f32 %v5462_v18, %v973_v22  ;;  %4868 = vmatmul.mubr.bf16.vlgmr.msra.gmra.mrb[0].mxu0 %v8483_v38  ;;  %8489 = vst [vmem:[#allocation39_spill] sm:$0xff] %v6723_v54  ;;  %v525_v29 = vadd.f32 %v5655_v62, %v8490_v6  ;;  %v5358_v63 = vld [vmem:[#allocation8 + $0x78] sm:$0xff]   ;;  %v6747_v62 = vld [vmem:[%s8356_s4 + $0x2] ss:$0 sm:$0xff] }
 0x213   : > { %v1103_v23 = vadd.f32 1.0, %v1087_v24  ;;  %4916 = vmatpush3.bf16.msra.mxu0 %v5656_v60  ;;  %4871 = vmatprep.mubr.bf16.mxu0 %v8485_v56 }
 0x214   : > { %v1069_v45 = vsub.f32 1.0, %v1053_v37  ;;  %4917 = vmatprep.subr.bf16.mxu0 %v5352_v47  ;;  %v5029_v37 = vpop.f32.mrb[64].mxu1 }
 0x215   : > { %v1119_v42 = vmul.f32 %v1103_v23, %v719_v8  ;;  %v6751_v8 = vadd.f32 %v5029_v37, %v6747_v62  ;;  %v2588_v23 = vpop.f32.mrb[65].mxu1 }
 0x216   : > { %v1085_v61 = vmul.f32 %v1069_v45, %v765_v13  ;;  %v6754_v38 = vadd.f32 %v6747_v62, %v2588_v23  ;;  %v5030_v45 = vpop.f32.mrb[66].mxu1 }
 0x217   : > { %v1135_v59 = vmul.f32 %v1119_v42, %v533_v49  ;;  %4918 = vmatpush3.bf16.msra.mxu0 %v5352_v47  ;;  %v5356_v47 = vld [vmem:[#allocation8 + $0x68] sm:$0xff]   ;;  %v6757_v60 = vmul.f32 0.70710677, %v6751_v8  ;;  %v6760_v56 = vadd.f32 %v5030_v45, %v6747_v62  ;;  %v2591_v32 = vpop.f32.mrb[67].mxu1 }
 0x218   : > { %v1101_v41 = vadd.f32 1.0, %v1085_v61  ;;  %4919 = vmatprep.subr.bf16.mxu0 %v5353_v39  ;;  %v6763_v49 = vmul.f32 0.70710677, %v6754_v38  ;;  %v5033_v6 = vpop.f32.mrb[68].mxu1 }
 0x219   : > { %v1143_v4 = vpack.c.bf16 %v1135_v59, %v6691_v0  ;;  %v8495_v0 = vld [vmem:[#allocation20_spill] sm:$0xff]  ;;  %v2717_v42 = vand.u32 2147483647, %v6757_v60  ;;  %v6767_v13 = vmul.f32 0.70710677, %v6760_v56  ;;  %vm2685_vm0 = vcmp.ge.f32.partialorder %v6757_v60, 0.0 }
 0x21a   : > { %v1117_v22 = vmul.f32 %v1101_v41, %v717_v52  ;;  %4872 = vmatmul.mubr.bf16.gmra.mrb[4].mxu0 %v8491_v27  ;;  %v6773_v61 = vand.u32 2147483647, %v6763_v49  ;;  %v2604_v27 = vpop.f32.mrb[69].mxu1  ;;  %vm2683_vm2 = vcmp.ge.f32.partialorder %v6763_v49, 0.0 }
 0x21b   : > { %4920 = vmatpush3.bf16.msra.mxu0 %v5353_v39  ;;  %4875 = vmatprep.mubr.bf16.mxu0 %v1140_v58  ;;  %v8494_v58 = vld [vmem:[#allocation19_spill] sm:$0xff]  ;;  %v6770_v39 = vadd.f32 %v6747_v62, %v2591_v32  ;;  %v2733_v59 = vmul.f32 0.3275911, %v2717_v42  ;;  %v2718_v41 = vand.u32 2147483647, %v6767_v13  ;;  %v6788_v37 = vadd.f32 %v6747_v62, %v2604_v27 }
 0x21c   : > { %v1133_v18 = vmul.f32 %v1117_v22, %v525_v29  ;;  %4921 = vmatprep.subr.bf16.mxu0 %v5354_v17  ;;  %v2731_v52 = vmul.f32 0.3275911, %v6773_v61  ;;  %v2925_v23 = vsub.f32 0.0, %v2717_v42  ;;  %vm2686_vm1 = vcmp.ge.f32.partialorder %v6767_v13, 0.0 }
 0x21d   : > { %v2734_v22 = vmul.f32 0.3275911, %v2718_v41  ;;  %v2702_v13 = vsel %vm2686_vm1, 1.0, %v8446_v35 }
 0x21e   : > { %v1142_v24 = vpack.c.bf16 %v1133_v18, %v1132_v53  ;;  %v8499_v53 = vld [vmem:[#allocation24_spill] sm:$0xff]  ;;  %v2747_v29 = vadd.f32 1.0, %v2731_v52  ;;  %v6796_v52 = vmul.f32 0.70710677, %v6788_v37  ;;  %v2941_v27 = vmul.f32 %v2925_v23, %v2717_v42 }
 0x21f   : > { %4922 = vmatpush3.bf16.msra.mxu0 %v5354_v17  ;;  %v2749_v17 = vadd.f32 1.0, %v2733_v59 }
 0x220   : > { %4923 = vmatprep.subr.bf16.mxu0 %v5355_v10  ;;  %vm2687_vm5 = vcmp.ge.f32.partialorder %v6796_v52, 0.0 }
 0x221   : > { %5463 = vrcp.f32 %v2749_v17 }
 0x222   : > { %4876 = vmatmul.mubr.bf16.gmra.mrb[8].mxu0 %v1141_v31  ;;  %v8498_v31 = vld [vmem:[#allocation23_spill] sm:$0xff]  ;;  %5465 = vrcp.f32 %v2747_v29 }
 0x223   : > { %4924 = vmatpush3.bf16.msra.mxu0 %v5355_v10  ;;  %4879 = vmatprep.mubr.bf16.mxu0 %v1142_v24  ;;  %v5034_v10 = vpop.f32.mrb[70].mxu1  ;;  %v2750_v24 = vadd.f32 1.0, %v2734_v22 }
 0x224   : > { %4925 = vmatprep.subr.bf16.mxu0 %v5356_v47  ;;  %v6799_v17 = vadd.f32 %v5034_v10, %v6747_v62 }
 0x225   : > { %5467 = vrcp.f32 %v2750_v24  ;;  %v2926_v24 = vsub.f32 0.0, %v2718_v41 }
 0x226   : > { %v6815_v10 = vmul.f32 0.70710677, %v6799_v17 }
 0x227   : > { %4926 = vmatpush3.bf16.msra.mxu0 %v5356_v47  ;;  %v2607_v47 = vpop.f32.mrb[71].mxu1 }
 0x228   : > { %4927 = vmatprep.subr.bf16.mxu0 %v5357_v19  ;;  %v6793_v59 = vpop.f32.mrb[72].mxu1  ;;  %vm2690_vm6 = vcmp.ge.f32.partialorder %v6815_v10, 0.0 }
 0x229   : > { %v6801_v29 = vpop.f32.mrb[73].mxu1 }
 0x22a   : > { %4880 = vmatmul.mubr.bf16.gmra.mrb[12].mxu0 %v1143_v4  ;;  %v6778_v4 = vmul.f32 0.70710677, %v6770_v39  ;;  %v6806_v22 = vpop.f32.mrb[74].mxu1 }
 0x22b   : > { %4928 = vmatpush3.bf16.msra.mxu0 %v5357_v19  ;;  %4931 = vmatprep.mubr.bf16.mxu0 %v8492_v30  ;;  %v6811_v30 = vpop.f32.mrb[75].mxu1  ;;  %v5464_v26 = vpop.eup %5463 }
 0x22c   : > { %4929 = vmatprep.subr.bf16.mxu0 %v5358_v63  ;;  %v6781_v18 = vand.u32 2147483647, %v6778_v4  ;;  %v6820_v23 = vpop.f32.mrb[76].mxu1  ;;  %vm2684_vm3 = vcmp.ge.f32.partialorder %v6778_v4, 0.0 }
 0x22d   : > { %v6825_v28 = vpop.f32.mrb[77].mxu1  ;;  %v6949_v4 = vsel %vm2684_vm3, 1.0, %v8446_v35 }
 0x22e   : > { %v2732_v19 = vmul.f32 0.3275911, %v6781_v18  ;;  %v6827_v50 = vpop.f32.mrb[78].mxu1 }
 0x22f   : > { %4930 = vmatpush3.bf16.msra.mxu0 %v5358_v63  ;;  %v6785_v63 = vadd.f32 %v5033_v6, %v6747_v62 }
 0x230   : > { %v2748_v45 = vadd.f32 1.0, %v2732_v19  ;;  %v6809_v19 = vand.u32 2147483647, %v6796_v52 }
 0x231   : > { %v6791_v32 = vmul.f32 0.70710677, %v6785_v63 }
 0x232   : > { %4932 = vmatmul.mubr.bf16.vlgmr.msra.gmra.mrb[16].mxu0 %v8493_v2  ;;  %5469 = vrcp.f32 %v2748_v45  ;;  %v6823_v45 = vand.u32 2147483647, %v6815_v10 }
 0x233   : > { %4935 = vmatprep.mubr.bf16.mxu0 %v8494_v58  ;;  %v6804_v6 = vand.u32 2147483647, %v6791_v32  ;;  %v6818_v58 = vpop.eup %5465  ;;  %vm2689_vm4 = vcmp.ge.f32.partialorder %v6791_v32, 0.0 }
 0x234   : > { %v5468_v2 = vpop.eup %5467 }
 0x235   : > { %v2782_v57 = vmul.f32 1.0614054, %v5468_v2 }
 0x237   : > { %v2798_v15 = vadd.f32 -1.4531521, %v2782_v57 }
 0x239   : > { %v2814_v54 = vmul.f32 %v5468_v2, %v2798_v15  ;;  %v6846_v15 = vadd.f32 %v6747_v62, %v2607_v47 }
 0x23a   : > { %4936 = vmatmul.mubr.bf16.gmra.mrb[20].mxu0 %v8495_v0  ;;  %v2942_v0 = vmul.f32 %v2926_v24, %v2718_v41  ;;  %v6829_v41 = vpop.f32.mrb[79].mxu1 }
 0x23b   : > { %4939 = vmatprep.mubr.bf16.mxu0 %v8496_v3  ;;  %v2959_v3 = vmul.f32 1.442695, %v2941_v27 }
 0x23c   : > { %v2961_v27 = vmul.f32 1.442695, %v2942_v0  ;;  %v6833_v33 = vpop.eup %5469 }
 0x23d   : > { %5471 = vpow2.f32 %v2959_v3 }
 0x242   : > { %4940 = vmatmul.mubr.bf16.gmra.mrb[24].mxu0 %v8497_v40  ;;  %v2735_v40 = vmul.f32 0.3275911, %v6809_v19 }
 0x243   : > { %4943 = vmatprep.mubr.bf16.mxu0 %v8498_v31  ;;  %v2781_v31 = vmul.f32 1.0614054, %v5464_v26 }
 0x244   : > { %v2751_v34 = vadd.f32 1.0, %v2735_v40  ;;  %v6838_v40 = vld [vmem:[%s8354_s2 + $0x2] ss:$0 sm:$0xff] }
 0x245   : > { %v2797_v42 = vadd.f32 -1.4531521, %v2781_v31  ;;  %v2779_v31 = vmul.f32 1.0614054, %v6818_v58  ;;  %8500 = vst [vmem:[#allocation35_spill] sm:$0xff] %v6838_v40  ;;  %v6843_v14 = vadd.f32 %v6609_v1, %v6838_v40  ;;  %v6859_v1 = vadd.f32 %v6838_v40, %v6630_v55 }
 0x246   : > { %v6863_v47 = vadd.f32 %v6652_v21, %v6838_v40  ;;  %v6874_v55 = vadd.f32 %v6662_v48, %v6838_v40  ;;  %v2701_v48 = vsel %vm2685_vm0, 1.0, %v8446_v35 }
 0x247   : > { %v2813_v36 = vmul.f32 %v5464_v26, %v2797_v42  ;;  %v2795_v3 = vadd.f32 -1.4531521, %v2779_v31  ;;  %v2780_v42 = vmul.f32 1.0614054, %v6833_v33  ;;  %v6855_v31 = vadd.f32 %v6622_v7, %v6838_v40 }
 0x248   : > { %8501 = vst [vmem:[#allocation25_spill] sm:$0xff] %v6863_v47  ;;  %v6870_v7 = vadd.f32 %v6838_v40, %v6656_v12  ;;  %8503 = vst [vmem:[#allocation36_spill] sm:$0xff] %v6874_v55 }
 0x249   : > { %v2829_v24 = vadd.f32 1.4214138, %v2813_v36  ;;  %v2830_v36 = vadd.f32 1.4214138, %v2814_v54 }
 0x24a   : > { %4944 = vmatmul.mubr.bf16.gmra.mrb[28].mxu0 %v8499_v53  ;;  %v2737_v53 = vmul.f32 0.3275911, %v6804_v6  ;;  %8502 = vst [vmem:[#allocation29_spill] sm:$0xff] %v6870_v7 }
 0x24b   : > { %v2845_v25 = vmul.f32 %v5464_v26, %v2829_v24  ;;  %v2846_v11 = vmul.f32 %v5468_v2, %v2830_v36  ;;  %v5472_v24 = vpop.eup %5471  ;;  %v6878_v36 = vmul.f32 0.70710677, %v6846_v15 }
 0x24c   : > { %v2753_v43 = vadd.f32 1.0, %v2737_v53  ;;  %v2738_v53 = vmul.f32 0.3275911, %v6823_v45 }
 0x24d   : > { %v2861_v0 = vadd.f32 -0.28449672, %v2845_v25  ;;  %v2811_v25 = vmul.f32 %v6818_v58, %v2795_v3  ;;  %v2862_v54 = vadd.f32 -0.28449672, %v2846_v11  ;;  %v2923_v3 = vsub.f32 0.0, %v6773_v61 }
 0x24e   : > { %5473 = vrcp.f32 %v2753_v43  ;;  %v2754_v57 = vadd.f32 1.0, %v2738_v53  ;;  %v2796_v53 = vadd.f32 -1.4531521, %v2780_v42  ;;  %vm2688_vm7 = vcmp.ge.f32.partialorder %v6878_v36, 0.0 }
 0x24f   : > { %5475 = vrcp.f32 %v2751_v34  ;;  %v2877_v43 = vmul.f32 %v5464_v26, %v2861_v0  ;;  %v6850_v34 = vadd.f32 %v6838_v40, %v6615_v46  ;;  %v2878_v0 = vmul.f32 %v5468_v2, %v2862_v54 }
 0x250   : > { %5477 = vpow2.f32 %v2961_v27  ;;  %v2924_v54 = vsub.f32 0.0, %v6781_v18 }
 0x251   : > { %v2893_v27 = vadd.f32 0.2548296, %v2877_v43  ;;  %5479 = vrcp.f32 %v2754_v57  ;;  %v2894_v42 = vadd.f32 0.2548296, %v2878_v0  ;;  %v6884_v57 = vadd.f32 %v6793_v59, %v6747_v62 }
 0x252   : > { %v2653_v43 = vmul.f32 0.5, %v6751_v8  ;;  %v2939_v59 = vmul.f32 %v2923_v3, %v6773_v61  ;;  %v6898_v8 = vand.u32 2147483647, %v6878_v36 }
 0x253   : > { %v2909_v46 = vmul.f32 %v5464_v26, %v2893_v27  ;;  %v2827_v26 = vadd.f32 1.4214138, %v2811_v25  ;;  %v2812_v27 = vmul.f32 %v6833_v33, %v2796_v53  ;;  %v2910_v20 = vmul.f32 %v5468_v2, %v2894_v42 }
 0x254   : > { %v2654_v2 = vmul.f32 0.5, %v6760_v56  ;;  %v2940_v42 = vmul.f32 %v2924_v54, %v6781_v18  ;;  %v2736_v56 = vmul.f32 0.3275911, %v6898_v8  ;;  %v6919_v54 = vmul.f32 0.5, %v6770_v39 }
 0x255   : > { %v2989_v60 = vmul.f32 %v5472_v24, %v2909_v46  ;;  %v6893_v24 = vmul.f32 0.5, %v6754_v38  ;;  %v2843_v53 = vmul.f32 %v6818_v58, %v2827_v26  ;;  %v2828_v38 = vadd.f32 1.4214138, %v2812_v27 }
 0x256   : > { %v7032_v10 = vmul.f32 0.5, %v6884_v57 }
 0x257   : > { %v3005_v51 = vsub.f32 1.0, %v2989_v60  ;;  %v6902_v60 = vmul.f32 0.70710677, %v6884_v57 }
 0x258   : > { %v6866_v11 = vpop.eup %5473  ;;  %8508 = vst [vmem:[#allocation28_spill] sm:$0xff] %v7032_v10 }
 0x259   : > { %v6880_v21 = vpop.eup %5475  ;;  %v2785_v25 = vmul.f32 1.0614054, %v6866_v11  ;;  %v3021_v0 = vmul.f32 %v3005_v51, %v2701_v48  ;;  %v2955_v51 = vmul.f32 1.442695, %v2939_v59  ;;  %v2859_v48 = vadd.f32 -0.28449672, %v2843_v53 }
 0x25a   : > { %v5478_v12 = vpop.eup %5477  ;;  %v2783_v46 = vmul.f32 1.0614054, %v6880_v21  ;;  %v6916_v18 = vand.u32 2147483647, %v6902_v60  ;;  %v2929_v53 = vsub.f32 0.0, %v6804_v6  ;;  %vm2693_vm8 = vcmp.ge.f32.partialorder %v6902_v60, 0.0 }
 0x25b   : > { %v2990_v44 = vmul.f32 %v5478_v12, %v2910_v20  ;;  %v3037_v61 = vadd.f32 1.0, %v3021_v0  ;;  %v2801_v9 = vadd.f32 -1.4531521, %v2785_v25  ;;  %v6908_v16 = vpop.eup %5479  ;;  %v6912_v20 = vadd.f32 %v6838_v40, %v6666_v5 }
 0x25c   : > { %v2799_v26 = vadd.f32 -1.4531521, %v2783_v46  ;;  %v2957_v25 = vmul.f32 1.442695, %v2940_v42  ;;  %v6924_v5 = vadd.f32 %v6747_v62, %v6801_v29  ;;  %v2786_v0 = vmul.f32 1.0614054, %v6908_v16 }
 0x25d   : > { %v3006_v3 = vsub.f32 1.0, %v2990_v44  ;;  %8504 = vst [vmem:[#allocation30_spill] sm:$0xff] %v6912_v20  ;;  %v3053_v12 = vmul.f32 %v3037_v61, %v2653_v43  ;;  %v2844_v44 = vmul.f32 %v6833_v33, %v2828_v38  ;;  %v2817_v43 = vmul.f32 %v6866_v11, %v2801_v9 }
 0x25e   : > { %5481 = vpow2.f32 %v2955_v51  ;;  %v2815_v39 = vmul.f32 %v6880_v21, %v2799_v26  ;;  %v2875_v38 = vmul.f32 %v6818_v58, %v2859_v48  ;;  %v2741_v29 = vmul.f32 0.3275911, %v6916_v18 }
 0x25f   : > { %v3022_v27 = vmul.f32 %v3006_v3, %v2702_v13  ;;  %v6927_v59 = vmul.f32 %v3053_v12, %v6843_v14  ;;  %v2752_v13 = vadd.f32 1.0, %v2736_v56  ;;  %v6939_v14 = vsel %vm2683_vm2, 1.0, %v8446_v35 }
 0x260   : > { %v2860_v9 = vadd.f32 -0.28449672, %v2844_v44  ;;  %5483 = vpow2.f32 %v2957_v25  ;;  %v2927_v61 = vsub.f32 0.0, %v6809_v19  ;;  %v2833_v51 = vadd.f32 1.4214138, %v2817_v43 }
 0x261   : > { %8505 = vst [vmem:[#allocation37_spill] sm:$0xff] %v6927_v59  ;;  %v3038_v46 = vadd.f32 1.0, %v3022_v27  ;;  %v2802_v26 = vadd.f32 -1.4531521, %v2786_v0  ;;  %v2945_v56 = vmul.f32 %v2929_v53, %v6804_v6  ;;  %v2831_v49 = vadd.f32 1.4214138, %v2815_v39 }
 0x262   : > { %5485 = vrcp.f32 %v2752_v13  ;;  %v2891_v12 = vadd.f32 0.2548296, %v2875_v38  ;;  %v2757_v27 = vadd.f32 1.0, %v2741_v29  ;;  %v2876_v44 = vmul.f32 %v6833_v33, %v2860_v9 }
 0x263   : > { %v3054_v42 = vmul.f32 %v3038_v46, %v2654_v2  ;;  %v6946_v2 = vmul.f32 0.70710677, %v6924_v5  ;;  %v6959_v25 = vmul.f32 0.5, %v6785_v63  ;;  %v2943_v46 = vmul.f32 %v2927_v61, %v6809_v19 }
 0x264   : > { %v2930_v43 = vsub.f32 0.0, %v6823_v45  ;;  %v2849_v6 = vmul.f32 %v6866_v11, %v2833_v51  ;;  %v6965_v0 = vmul.f32 0.5, %v6788_v37  ;;  %v2818_v53 = vmul.f32 %v6908_v16, %v2802_v26 }
 0x265   : > { %v6943_v3 = vmul.f32 %v3054_v42, %v6855_v31  ;;  %v6955_v31 = vand.u32 2147483647, %v6946_v2  ;;  %v2967_v13 = vmul.f32 1.442695, %v2945_v56  ;;  %v2847_v63 = vmul.f32 %v6880_v21, %v2831_v49 }
 0x266   : > { %v2907_v19 = vmul.f32 %v6818_v58, %v2891_v12  ;;  %5487 = vrcp.f32 %v2757_v27  ;;  %v6975_v42 = vadd.f32 %v6806_v22, %v6747_v62  ;;  %v2892_v29 = vadd.f32 0.2548296, %v2876_v44 }
 0x267   : > { %8506 = vst [vmem:[#allocation26_spill] sm:$0xff] %v6943_v3  ;;  %v2739_v39 = vmul.f32 0.3275911, %v6955_v31  ;;  %v2963_v9 = vmul.f32 1.442695, %v2943_v46  ;;  %v6978_v61 = vmul.f32 0.5, %v6799_v17  ;;  %v2946_v32 = vmul.f32 %v2930_v43, %v6823_v45 }
 0x268   : > { %v5482_v37 = vpop.eup %5481  ;;  %v6982_v51 = vsel %vm2689_vm4, 1.0, %v8446_v35  ;;  %v2865_v26 = vadd.f32 -0.28449672, %v2849_v6  ;;  %v2834_v56 = vadd.f32 1.4214138, %v2818_v53  ;;  %v6987_v22 = vsel %vm2687_vm5, 1.0, %v8446_v35 }
 0x269   : > { %v2755_v38 = vadd.f32 1.0, %v2739_v39  ;;  %v2863_v49 = vadd.f32 -0.28449672, %v2847_v63  ;;  %v6992_v17 = vadd.f32 %v6747_v62, %v6811_v30  ;;  %v2987_v45 = vmul.f32 %v5482_v37, %v2907_v19 }
 0x26a   : > { %v5484_v58 = vpop.eup %5483  ;;  %v6995_v12 = vmul.f32 0.70710677, %v6975_v42  ;;  %v6999_v27 = vadd.f32 %v6820_v23, %v6747_v62  ;;  %v2908_v52 = vmul.f32 %v6833_v33, %v2892_v29  ;;  %v2969_v46 = vmul.f32 1.442695, %v2946_v32 }
 0x26b   : > { %5489 = vrcp.f32 %v2755_v38  ;;  %v2881_v30 = vmul.f32 %v6866_v11, %v2865_v26  ;;  %v2850_v43 = vmul.f32 %v6908_v16, %v2834_v56  ;;  %v7011_v53 = vmul.f32 0.70710677, %v6992_v17 }
 0x26c   : > { %5491 = vpow2.f32 %v2967_v13  ;;  %8507 = vst [vmem:[#allocation27_spill] sm:$0xff] %v6999_v27  ;;  %v7001_v44 = vpop.eup %5485  ;;  %v7008_v6 = vand.u32 2147483647, %v6995_v12  ;;  %v2879_v23 = vmul.f32 %v6880_v21, %v2863_v49  ;;  %v7017_v33 = vsel %vm2690_vm6, 1.0, %v8446_v35 }
 0x26d   : > { %5493 = vpow2.f32 %v2963_v9  ;;  %v2928_v39 = vsub.f32 0.0, %v6898_v8  ;;  %v7021_v36 = vmul.f32 0.70710677, %v6999_v27  ;;  %v3003_v13 = vsub.f32 1.0, %v2987_v45 }
 0x26e   : > { %v7024_v63 = vmul.f32 0.5, %v6846_v15  ;;  %v2784_v19 = vmul.f32 1.0614054, %v7001_v44  ;;  %v2742_v38 = vmul.f32 0.3275911, %v7008_v6  ;;  %v2988_v37 = vmul.f32 %v5484_v58, %v2908_v52 }
 0x26f   : > { %v7029_v29 = vsel %vm2688_vm7, 1.0, %v8446_v35  ;;  %v7035_v9 = vand.u32 2147483647, %v7011_v53  ;;  %v2897_v26 = vadd.f32 0.2548296, %v2881_v30  ;;  %5495 = vpow2.f32 %v2969_v46 }
 0x270   : > { %v7037_v32 = vpop.eup %5487  ;;  %v2866_v56 = vadd.f32 -0.28449672, %v2850_v43  ;;  %v2758_v15 = vadd.f32 1.0, %v2742_v38  ;;  %v2895_v49 = vadd.f32 0.2548296, %v2879_v23  ;;  %v2944_v45 = vmul.f32 %v2928_v39, %v6898_v8 }
 0x271   : > { %v2740_v58 = vmul.f32 0.3275911, %v7035_v9  ;;  %v7042_v52 = vand.u32 2147483647, %v7021_v36  ;;  %v3019_v57 = vmul.f32 %v3003_v13, %v6939_v14  ;;  %v2800_v59 = vadd.f32 -1.4531521, %v2784_v19 }
 0x272   : > { %5497 = vrcp.f32 %v2758_v15  ;;  %v7049_v30 = vadd.f32 %v6747_v62, %v6825_v28  ;;  %v3004_v46 = vsub.f32 1.0, %v2988_v37  ;;  %v2789_v8 = vmul.f32 1.0614054, %v7037_v32 }
 0x273   : > { %v2756_v43 = vadd.f32 1.0, %v2740_v58  ;;  %v2913_v39 = vmul.f32 %v6866_v11, %v2897_v26  ;;  %v2882_v38 = vmul.f32 %v6908_v16, %v2866_v56  ;;  %v2933_v3 = vsub.f32 0.0, %v6916_v18 }
 0x274   : > { %8509 = vst [vmem:[#allocation58_spill] sm:$0xff] %v7049_v30  ;;  %v2745_v14 = vmul.f32 0.3275911, %v7042_v52  ;;  %v2911_v19 = vmul.f32 %v6880_v21, %v2895_v49  ;;  %v2965_v28 = vmul.f32 1.442695, %v2944_v45  ;;  %v3035_v15 = vadd.f32 1.0, %v3019_v57 }
 0x275   : > { %v7044_v48 = vpop.eup %5489  ;;  %5499 = vrcp.f32 %v2756_v43  ;;  %v2816_v27 = vmul.f32 %v7001_v44, %v2800_v59  ;;  %v7061_v10 = vmul.f32 0.70710677, %v7049_v30  ;;  %v3020_v11 = vmul.f32 %v3004_v46, %v6949_v4 }
 0x276   : > { %v5492_v23 = vpop.eup %5491  ;;  %v2787_v37 = vmul.f32 1.0614054, %v7044_v48  ;;  %v2761_v58 = vadd.f32 1.0, %v2745_v14  ;;  %v7067_v26 = vsel %vm2693_vm8, 1.0, %v8446_v35  ;;  %v2805_v56 = vadd.f32 -1.4531521, %v2789_v8 }
 0x277   : > { %v5494_v13 = vpop.eup %5493  ;;  %v7071_v21 = vadd.f32 %v6827_v50, %v6747_v62  ;;  %v2993_v49 = vmul.f32 %v5492_v23, %v2913_v39  ;;  %v2898_v45 = vadd.f32 0.2548296, %v2882_v38  ;;  %v2949_v59 = vmul.f32 %v2933_v3, %v6916_v18 }
 0x278   : > { %5501 = vrcp.f32 %v2761_v58  ;;  %v7074_v57 = vmul.f32 %v5494_v13, %v2911_v19  ;;  %v2803_v43 = vadd.f32 -1.4531521, %v2787_v37  ;;  %v7077_v4 = vand.u32 2147483647, %v7061_v10 }
 0x279   : > { %8510 = vst [vmem:[#allocation59_spill] sm:$0xff] %v7071_v21  ;;  %5503 = vpow2.f32 %v2965_v28  ;;  %v5496_v60 = vpop.eup %5495  ;;  %v7080_v46 = vmul.f32 %v3035_v15, %v6893_v24  ;;  %v2832_v8 = vadd.f32 1.4214138, %v2816_v27  ;;  %v7083_v50 = vmul.f32 0.70710677, %v7071_v21 }
 0x27a   : > { %v7087_v23 = vadd.f32 %v6747_v62, %v6829_v41  ;;  %v7089_v18 = vadd.f32 1.0, %v3020_v11  ;;  %v2821_v3 = vmul.f32 %v7037_v32, %v2805_v56  ;;  %v7093_v39 = vmul.f32 0.5, %v6924_v5 }
 0x27b   : > { %v2743_v38 = vmul.f32 0.3275911, %v7077_v4  ;;  %v3009_v24 = vsub.f32 1.0, %v2993_v49  ;;  %v2914_v27 = vmul.f32 %v6908_v16, %v2898_v45  ;;  %v2975_v13 = vmul.f32 1.442695, %v2949_v59 }
 0x27c   : > { %8511 = vst [vmem:[#allocation60_spill] sm:$0xff] %v7087_v23  ;;  %8512 = vst [vmem:[#allocation61_spill] sm:$0xff] %v7093_v39  ;;  %v7096_v14 = vpop.eup %5497  ;;  %v7100_v19 = vand.u32 2147483647, %v7083_v50  ;;  %v3007_v62 = vsub.f32 1.0, %v7074_v57  ;;  %v2819_v41 = vmul.f32 %v7044_v48, %v2803_v43  ;;  %v2848_v5 = vmul.f32 %v7001_v44, %v2832_v8 }
 0x27d   : > { %v2790_v28 = vmul.f32 1.0614054, %v7096_v14  ;;  %v2759_v37 = vadd.f32 1.0, %v2743_v38  ;;  %vm2691_vm9 = vcmp.ge.f32.partialorder %v6946_v2, 0.0  ;;  %v7109_v58 = vmul.f32 0.70710677, %v7087_v23 }
 0x27e   : > { %v2746_v15 = vmul.f32 0.3275911, %v7100_v19  ;;  %v2837_v11 = vadd.f32 1.4214138, %v2821_v3  ;;  %v2931_v56 = vsub.f32 0.0, %v6955_v31  ;;  %v3025_v45 = vmul.f32 %v3009_v24, %v6982_v51 }
 0x27f   : > { %v7111_v16 = vpop.eup %5499  ;;  %v2806_v49 = vadd.f32 -1.4531521, %v2790_v28  ;;  %5505 = vrcp.f32 %v2759_v37  ;;  %v2934_v59 = vsub.f32 0.0, %v7008_v6  ;;  %v7117_v8 = vmul.f32 %v5496_v60, %v2914_v27 }
 0x280   : > { %v2788_v57 = vmul.f32 1.0614054, %v7111_v16  ;;  %v2762_v43 = vadd.f32 1.0, %v2746_v15  ;;  %v2835_v38 = vadd.f32 1.4214138, %v2819_v41  ;;  %v2932_v21 = vsub.f32 0.0, %v7035_v9 }
 0x281   : > { %v2822_v23 = vmul.f32 %v7096_v14, %v2806_v49  ;;  %v2864_v3 = vadd.f32 -0.28449672, %v2848_v5  ;;  %v2728_v28 = vand.u32 2147483647, %v7109_v58  ;;  %v2853_v24 = vmul.f32 %v7037_v32, %v2837_v11 }
 0x282   : > { %v7121_v30 = vpop.eup %5501  ;;  %v2804_v39 = vadd.f32 -1.4531521, %v2788_v57  ;;  %5507 = vrcp.f32 %v2762_v43  ;;  %v2947_v37 = vmul.f32 %v2931_v56, %v6955_v31  ;;  %v2950_v41 = vmul.f32 %v2934_v59, %v7008_v6 }
 0x283   : > { %v7124_v51 = vpop.eup %5503  ;;  %v2838_v60 = vadd.f32 1.4214138, %v2822_v23  ;;  %v2793_v27 = vmul.f32 1.0614054, %v7121_v30  ;;  %5509 = vpow2.f32 %v2975_v13  ;;  %v2744_v49 = vmul.f32 0.3275911, %v2728_v28 }
 0x284   : > { %v2820_v15 = vmul.f32 %v7111_v16, %v2804_v39  ;;  %v7134_v5 = vsel %vm2691_vm9, 1.0, %v8446_v35  ;;  %v2851_v57 = vmul.f32 %v7044_v48, %v2835_v38  ;;  %v2948_v11 = vmul.f32 %v2932_v21, %v7035_v9 }
 0x285   : > { %v2809_v43 = vadd.f32 -1.4531521, %v2793_v27  ;;  %v7138_v31 = vadd.f32 1.0, %v3025_v45  ;;  %v2854_v23 = vmul.f32 %v7096_v14, %v2838_v60  ;;  %v2760_v56 = vadd.f32 1.0, %v2744_v49 }
 0x286   : > { %v2836_v13 = vadd.f32 1.4214138, %v2820_v15  ;;  %v2880_v6 = vmul.f32 %v7001_v44, %v2864_v3  ;;  %v2869_v39 = vadd.f32 -0.28449672, %v2853_v24  ;;  %v2971_v59 = vmul.f32 1.442695, %v2947_v37 }
 0x287   : > { %v2825_v40 = vmul.f32 %v7121_v30, %v2809_v43  ;;  %v2977_v2 = vmul.f32 1.442695, %v2950_v41  ;;  %v2937_v38 = vsub.f32 0.0, %v7042_v52  ;;  %5511 = vrcp.f32 %v2760_v56 }
 0x288   : > { %v2852_v55 = vmul.f32 %v7111_v16, %v2836_v13  ;;  %v2867_v21 = vadd.f32 -0.28449672, %v2851_v57  ;;  %v2973_v45 = vmul.f32 1.442695, %v2948_v11  ;;  %v2935_v60 = vsub.f32 0.0, %v7077_v4 }
 0x289   : > { %v7145_v9 = vpop.eup %5505  ;;  %v2938_v27 = vsub.f32 0.0, %v7100_v19  ;;  %v3023_v3 = vmul.f32 %v3007_v62, %v6987_v22  ;;  %v2870_v24 = vadd.f32 -0.28449672, %v2854_v23  ;;  %v2841_v37 = vadd.f32 1.4214138, %v2825_v40 }
 0x28a   : > { %v2791_v15 = vmul.f32 1.0614054, %v7145_v9  ;;  %v2896_v41 = vadd.f32 0.2548296, %v2880_v6  ;;  %v2885_v49 = vmul.f32 %v7037_v32, %v2869_v39  ;;  %5513 = vpow2.f32 %v2971_v59 }
 0x28b   : > { %v2868_v43 = vadd.f32 -0.28449672, %v2852_v55  ;;  %5515 = vpow2.f32 %v2977_v2  ;;  %v2953_v57 = vmul.f32 %v2937_v38, %v7042_v52  ;;  %v2936_v56 = vsub.f32 0.0, %v2728_v28 }
 0x28c   : > { %v7152_v13 = vpop.eup %5507  ;;  %v2807_v11 = vadd.f32 -1.4531521, %v2791_v15  ;;  %v2883_v47 = vmul.f32 %v7044_v48, %v2867_v21  ;;  %5517 = vpow2.f32 %v2973_v45  ;;  %v2951_v22 = vmul.f32 %v2935_v60, %v7077_v4 }
 0x28d   : > { %v2794_v40 = vmul.f32 1.0614054, %v7152_v13  ;;  %v5510_v62 = vpop.eup %5509  ;;  %v2886_v23 = vmul.f32 %v7096_v14, %v2870_v24  ;;  %v2857_v6 = vmul.f32 %v7121_v30, %v2841_v37  ;;  %v2954_v39 = vmul.f32 %v2938_v27, %v7100_v19 }
 0x28e   : > { %v2823_v55 = vmul.f32 %v7145_v9, %v2807_v11  ;;  %v3039_v59 = vadd.f32 1.0, %v3023_v3  ;;  %v3010_v52 = vsub.f32 1.0, %v7117_v8  ;;  %v2884_v2 = vmul.f32 %v7111_v16, %v2868_v43 }
 0x28f   : > { %v2810_v38 = vadd.f32 -1.4531521, %v2794_v40  ;;  %v2912_v21 = vmul.f32 %v7001_v44, %v2896_v41  ;;  %v2983_v4 = vmul.f32 1.442695, %v2953_v57  ;;  %v2952_v60 = vmul.f32 %v2936_v56, %v2728_v28 }
 0x290   : > { %v2839_v45 = vadd.f32 1.4214138, %v2823_v55  ;;  %v2901_v15 = vadd.f32 0.2548296, %v2885_v49  ;;  %v2899_v20 = vadd.f32 0.2548296, %v2883_v47  ;;  %v3052_v3 = vmul.f32 %v7089_v18, %v6919_v54 }
 0x291   : > { %v2979_v24 = vmul.f32 1.442695, %v2951_v22  ;;  %v2826_v37 = vmul.f32 %v7152_v13, %v2810_v38  ;;  %v7166_v7 = vpop.eup %5511  ;;  %v2902_v11 = vadd.f32 0.2548296, %v2886_v23  ;;  %v2873_v19 = vadd.f32 -0.28449672, %v2857_v6 }
 0x292   : > { %v2855_v27 = vmul.f32 %v7145_v9, %v2839_v45  ;;  %v2985_v8 = vmul.f32 1.442695, %v2954_v39  ;;  %v2900_v43 = vadd.f32 0.2548296, %v2884_v2  ;;  %v2792_v41 = vmul.f32 1.0614054, %v7166_v7 }
 0x293   : > { %v2842_v44 = vadd.f32 1.4214138, %v2826_v37  ;;  %v2992_v28 = vmul.f32 %v7124_v51, %v2912_v21  ;;  %5519 = vpow2.f32 %v2983_v4  ;;  %v2981_v49 = vmul.f32 1.442695, %v2952_v60 }
 0x294   : > { %v2871_v47 = vadd.f32 -0.28449672, %v2855_v27  ;;  %v5514_v57 = vpop.eup %5513  ;;  %v2917_v56 = vmul.f32 %v7037_v32, %v2901_v15  ;;  %5521 = vpow2.f32 %v2979_v24  ;;  %v2808_v40 = vadd.f32 -1.4531521, %v2792_v41 }
 0x295   : > { %v2858_v22 = vmul.f32 %v7152_v13, %v2842_v44  ;;  %v5516_v23 = vpop.eup %5515  ;;  %v2915_v6 = vmul.f32 %v7044_v48, %v2899_v20  ;;  %v2918_v54 = vmul.f32 %v7096_v14, %v2902_v11  ;;  %v2889_v18 = vmul.f32 %v7121_v30, %v2873_v19 }
 0x296   : > { %5523 = vpow2.f32 %v2985_v8  ;;  %v5518_v55 = vpop.eup %5517  ;;  %v2916_v51 = vmul.f32 %v7111_v16, %v2900_v43  ;;  %v2887_v39 = vmul.f32 %v7145_v9, %v2871_v47  ;;  %v2824_v32 = vmul.f32 %v7166_v7, %v2808_v40 }
 0x297   : > { %v2874_v2 = vadd.f32 -0.28449672, %v2858_v22  ;;  %v7183_v38 = vmul.f32 %v7138_v31, %v6959_v25  ;;  %v3026_v21 = vmul.f32 %v3010_v52, %v7017_v33  ;;  %v3008_v20 = vsub.f32 1.0, %v2992_v28 }
 0x298   : > { %5525 = vpow2.f32 %v2981_v49  ;;  %v2997_v48 = vmul.f32 %v5510_v62, %v2917_v56  ;;  %vm2694_vm10 = vcmp.ge.f32.partialorder %v6995_v12, 0.0  ;;  %v2840_v4 = vadd.f32 1.4214138, %v2824_v32 }
 0x299   : > { %v2890_v14 = vmul.f32 %v7152_v13, %v2874_v2  ;;  %v2995_v16 = vmul.f32 %v5514_v57, %v2915_v6  ;;  %v2998_v45 = vmul.f32 %v5516_v23, %v2918_v54  ;;  %vm2692_vm11 = vcmp.ge.f32.partialorder %v7011_v53, 0.0 }
 0x29a   : > { %v2905_v60 = vadd.f32 0.2548296, %v2889_v18  ;;  %v2996_v15 = vmul.f32 %v5518_v55, %v2916_v51  ;;  %v2903_v24 = vadd.f32 0.2548296, %v2887_v39  ;;  %v2856_v25 = vmul.f32 %v7166_v7, %v2840_v4 }
 0x29b   : > { %v2906_v37 = vadd.f32 0.2548296, %v2890_v14  ;;  %v3055_v33 = vmul.f32 %v3039_v59, %v6965_v0  ;;  %v3042_v31 = vadd.f32 1.0, %v3026_v21  ;;  %v3024_v62 = vmul.f32 %v3008_v20, %v7029_v29  ;;  %v8515_v20 = vld [vmem:[#allocation29_spill] sm:$0xff] }
 0x29c   : > { %v7193_v52 = vmul.f32 0.5, %v6975_v42  ;;  %v3013_v11 = vsub.f32 1.0, %v2997_v48  ;;  %v2710_v19 = vsel %vm2694_vm10, 1.0, %v8446_v35  ;;  %v2708_v53 = vsel %vm2692_vm11, 1.0, %v8446_v35 }
 0x29d   : > { %v2872_v27 = vadd.f32 -0.28449672, %v2856_v25  ;;  %v5520_v8 = vpop.eup %5519  ;;  %v3011_v43 = vsub.f32 1.0, %v2995_v16  ;;  %v3014_v44 = vsub.f32 1.0, %v2998_v45  ;;  %vm2697_vm12 = vcmp.ge.f32.partialorder %v7021_v36, 0.0  ;;  %v8521_v16 = vld [vmem:[#allocation36_spill] sm:$0xff] }
 0x29e   : > { %v2921_v0 = vmul.f32 %v7121_v30, %v2905_v60  ;;  %v5522_v59 = vpop.eup %5521  ;;  %v3012_v29 = vsub.f32 1.0, %v2996_v15  ;;  %v2919_v42 = vmul.f32 %v7145_v9, %v2903_v24  ;;  %v2922_v41 = vmul.f32 %v7152_v13, %v2906_v37  ;;  %v8523_v60 = vld [vmem:[#allocation35_spill] sm:$0xff]  ;;  %v8526_v25 = vld [vmem:[#allocation40_spill] sm:$0xff] }
 0x29f   : > { %v2888_v28 = vmul.f32 %v7166_v7, %v2872_v27  ;;  %v3040_v47 = vadd.f32 1.0, %v3024_v62  ;;  %vm2695_vm13 = vcmp.ge.f32.partialorder %v7061_v10, 0.0  ;;  %v7207_v49 = vmul.f32 %v7080_v46, %v6850_v34  ;;  %v8517_v10 = vld [vmem:[#allocation30_spill] sm:$0xff]  ;;  %v8525_v24 = vld [vmem:[#allocation31_spill] sm:$0xff] }
 0x2a0   : > { %v5524_v12 = vpop.eup %5523  ;;  %v7210_v57 = vmul.f32 %v3052_v3, %v6859_v1  ;;  %v3029_v30 = vmul.f32 %v3013_v11, %v7067_v26  ;;  %vm2698_vm14 = vcmp.ge.f32.partialorder %v7083_v50, 0.0  ;;  %vm2696_vm15 = vcmp.ge.f32.partialorder %v7109_v58, 0.0  ;;  %v8519_v50 = vld [vmem:[#allocation25_spill] sm:$0xff]  ;;  %v8524_v58 = vld [vmem:[#allocation32_spill] sm:$0xff] }
 0x2a1   : > { %8513 = vst [vmem:[#allocation62_spill] sm:$0xff] %v7207_v49  ;;  %v2904_v9 = vadd.f32 0.2548296, %v2888_v28  ;;  %v3027_v56 = vmul.f32 %v3011_v43, %v7134_v5  ;;  %v3030_v22 = vmul.f32 %v3014_v44, %v2710_v19  ;;  %v3001_v40 = vmul.f32 %v5520_v8, %v2921_v0  ;;  %v8528_v43 = vld [vmem:[#allocation28_spill] sm:$0xff]  ;;  %v8529_v0 = vld [vmem:[#allocation61_spill] sm:$0xff] }
 0x2a2   : > { %8514 = vst [vmem:[#allocation63_spill] sm:$0xff] %v7210_v57  ;;  %v5526_v13 = vpop.eup %5525  ;;  %v3028_v34 = vmul.f32 %v3012_v29, %v2708_v53  ;;  %v2999_v46 = vmul.f32 %v5522_v59, %v2919_v42  ;;  %v3002_v6 = vmul.f32 %v5524_v12, %v2922_v41  ;;  %v3058_v26 = vmul.f32 %v3042_v31, %v6978_v61  ;;  %v8527_v31 = vld [vmem:[#allocation33_spill] sm:$0xff]  ;;  %v8530_v41 = vld [vmem:[#allocation27_spill] sm:$0xff]  ;;  %v8531_v12 = vld [vmem:[#allocation58_spill] sm:$0xff] }
 0x2a3   : > { %v2920_v1 = vmul.f32 %v7166_v7, %v2904_v9  ;;  %v3056_v3 = vmul.f32 %v3040_v47, %v7024_v63  ;;  %v2660_v54 = vmul.f32 0.5, %v6992_v17  ;;  %v2713_v5 = vsel %vm2697_vm12, 1.0, %v8446_v35 }
 0x2a4   : > { %v3045_v18 = vadd.f32 1.0, %v3029_v30  ;;  %v2711_v55 = vsel %vm2695_vm13, 1.0, %v8446_v35  ;;  %v2714_v51 = vsel %vm2698_vm14, 1.0, %v8446_v35  ;;  %v3043_v39 = vadd.f32 1.0, %v3027_v56  ;;  %v8532_v30 = vld [vmem:[#allocation59_spill] sm:$0xff] }
 0x2a5   : > { %v3000_v7 = vmul.f32 %v5526_v13, %v2920_v1  ;;  %v3046_v61 = vadd.f32 1.0, %v3030_v22  ;;  %v3017_v2 = vsub.f32 1.0, %v3001_v40  ;;  %v2712_v17 = vsel %vm2696_vm15, 1.0, %v8446_v35  ;;  %v8533_v13 = vld [vmem:[#allocation60_spill] sm:$0xff] }
 0x2a6   : > { %v3044_v63 = vadd.f32 1.0, %v3028_v34  ;;  %v3015_v36 = vsub.f32 1.0, %v2999_v46  ;;  %v3018_v32 = vsub.f32 1.0, %v3002_v6  ;;  %v7235_v48 = vmul.f32 %v3055_v33, %v8515_v20 }
 0x2a7   : > { %v3016_v21 = vsub.f32 1.0, %v3000_v7  ;;  %v7238_v14 = vmul.f32 %v3056_v3, %v8517_v10  ;;  %v7242_v4 = vmul.f32 %v7183_v38, %v8519_v50  ;;  %v7245_v45 = vmul.f32 %v3058_v26, %v8521_v16  ;;  %v5359_v3 = vld [vmem:[#allocation9 + $0x40] sm:$0xff]  }
 0x2a8   : > { %8516 = vst [vmem:[#allocation29_spill] sm:$0xff] %v7235_v48  ;;  %v2459_v15 = vadd.f32 %v8524_v58, %v8523_v60  ;;  %v2451_v37 = vadd.f32 %v8523_v60, %v8525_v24  ;;  %v2462_v33 = vadd.f32 %v8526_v25, %v8523_v60  ;;  %v2454_v62 = vadd.f32 %v8523_v60, %v8527_v31  ;;  %v5360_v58 = vld [vmem:[#allocation9 + $0x48] sm:$0xff]   ;;  %v5361_v24 = vld [vmem:[#allocation9 + $0x50] sm:$0xff]   ;;  %v5363_v25 = vld [vmem:[#allocation9 + $0x60] sm:$0xff]  }
 0x2a9   : > { %8518 = vst [vmem:[#allocation30_spill] sm:$0xff] %v7238_v14  ;;  %8520 = vst [vmem:[#allocation25_spill] sm:$0xff] %v7242_v4  ;;  %v3033_v19 = vmul.f32 %v3017_v2, %v2713_v5  ;;  %v3031_v53 = vmul.f32 %v3015_v36, %v2711_v55  ;;  %v3034_v27 = vmul.f32 %v3018_v32, %v2714_v51  ;;  %v2665_v28 = vmul.f32 0.5, %v8530_v41  ;;  %v8539_v51 = vld [vmem:[#allocation38_spill] sm:$0xff]  ;;  %v8541_v2 = vld [vmem:[#allocation39_spill] sm:$0xff] }
 0x2aa   : > { %8522 = vst [vmem:[#allocation36_spill] sm:$0xff] %v7245_v45  ;;  %v3032_v8 = vmul.f32 %v3016_v21, %v2712_v17  ;;  %v3061_v44 = vmul.f32 %v3045_v18, %v8528_v43  ;;  %v3059_v59 = vmul.f32 %v3043_v39, %v8529_v0  ;;  %v3062_v29 = vmul.f32 %v3046_v61, %v7193_v52  ;;  %v8538_v18 = vld [vmem:[#allocation41_spill] sm:$0xff]  ;;  %v8540_v39 = vld [vmem:[#allocation34_spill] sm:$0xff]  ;;  %v5365_v31 = vld [vmem:[#allocation9 + $0x70] sm:$0xff]  }
 0x2ab   : > { %v3060_v42 = vmul.f32 %v3044_v63, %v2660_v54  ;;  %v2663_v47 = vmul.f32 0.5, %v8531_v12  ;;  %v2666_v9 = vmul.f32 0.5, %v8532_v30  ;;  %v2664_v56 = vmul.f32 0.5, %v8533_v13  ;;  %4947 = vmatprep.subr.bf16.mxu0 %v5359_v3 }
 0x2ac   : > { %v3049_v22 = vadd.f32 1.0, %v3033_v19  ;;  %v3047_v40 = vadd.f32 1.0, %v3031_v53  ;;  %v3050_v34 = vadd.f32 1.0, %v3034_v27  ;;  %v3048_v46 = vadd.f32 1.0, %v3032_v8  ;;  %4948 = vmatpush3.bf16.msra.mxu0 %v5359_v3  ;;  %v7298_v19 = vld [vmem:[#allocation9 + $0x80] sm:$0xff]   ;;  %v8547_v3 = vld [vmem:[#allocation42_spill] sm:$0xff] }
 0x2ad   : > { %v7266_v6 = vmul.f32 %v3059_v59, %v2451_v37  ;;  %v7268_v1 = vmul.f32 %v3060_v42, %v2454_v62  ;;  %v7270_v26 = vmul.f32 %v3061_v44, %v2459_v15  ;;  %v7272_v52 = vmul.f32 %v3062_v29, %v2462_v33  ;;  %4949 = vmatprep.subr.bf16.mxu0 %v5360_v58  ;;  %v5362_v37 = vld [vmem:[#allocation9 + $0x58] sm:$0xff]   ;;  %v5364_v33 = vld [vmem:[#allocation9 + $0x68] sm:$0xff]   ;;  %v7304_v53 = vld [vmem:[%s8356_s4 + $0x1] ss:$0 sm:$0xff] }
 0x2ae   : > { %v2475_v55 = vadd.f32 %v8538_v18, %v8523_v60  ;;  %v2467_v7 = vadd.f32 %v8523_v60, %v8539_v51  ;;  %v2478_v61 = vadd.f32 %v8540_v39, %v8523_v60  ;;  %v2470_v17 = vadd.f32 %v8523_v60, %v8541_v2  ;;  %v5366_v62 = vld [vmem:[#allocation9 + $0x78] sm:$0xff]   ;;  %8546 = vst [vmem:[#allocation58_spill] sm:$0xff] %v7298_v19  ;;  %v8548_v39 = vld [vmem:[#allocation43_spill] sm:$0xff] }
 0x2af   : > { %8534 = vst [vmem:[#allocation35_spill] sm:$0xff] %v7266_v6  ;;  %8535 = vst [vmem:[#allocation32_spill] sm:$0xff] %v7268_v1  ;;  %v3065_v63 = vmul.f32 %v3049_v22, %v2665_v28  ;;  %v3063_v36 = vmul.f32 %v3047_v40, %v2663_v47  ;;  %v3066_v32 = vmul.f32 %v3050_v34, %v2666_v9  ;;  %v4504_v9 = vld [vmem:[%s8354_s2 + $0x1] ss:$0 sm:$0xff]  ;;  %v8549_v2 = vld [vmem:[#allocation44_spill] sm:$0xff] }
 0x2b0   : > { %8536 = vst [vmem:[#allocation31_spill] sm:$0xff] %v7270_v26  ;;  %8537 = vst [vmem:[#allocation40_spill] sm:$0xff] %v7272_v52  ;;  %v3064_v21 = vmul.f32 %v3048_v46, %v2664_v56  ;;  %4950 = vmatpush3.bf16.msra.mxu0 %v5360_v58  ;;  %v7322_v18 = vadd.f32 %v8547_v3, %v4504_v9  ;;  %v8552_v58 = vld [vmem:[#allocation46_spill] sm:$0xff] }
 0x2b1   : > { %v7286_v20 = vmul.f32 %v3063_v36, %v2467_v7  ;;  %v7290_v50 = vmul.f32 %v3065_v63, %v2475_v55  ;;  %v7292_v16 = vmul.f32 %v3066_v32, %v2478_v61  ;;  %4951 = vmatprep.subr.bf16.mxu0 %v5361_v24  ;;  %v7325_v61 = vadd.f32 %v4504_v9, %v8548_v39  ;;  %v8550_v32 = vld [vmem:[#allocation45_spill] sm:$0xff] }
 0x2b2   : > { %v7288_v10 = vmul.f32 %v3064_v21, %v2470_v17  ;;  %v7328_v17 = vadd.f32 %v8549_v2, %v4504_v9  ;;  %v7334_v21 = vadd.f32 %v4504_v9, %v8550_v32  ;;  %v8562_v32 = vld [vmem:[#allocation51_spill] sm:$0xff] }
 0x2b3   : > { %8542 = vst [vmem:[#allocation33_spill] sm:$0xff] %v7286_v20  ;;  %8544 = vst [vmem:[#allocation61_spill] sm:$0xff] %v7290_v50 }
 0x2b4   : > { %8543 = vst [vmem:[#allocation28_spill] sm:$0xff] %v7288_v10  ;;  %8545 = vst [vmem:[#allocation27_spill] sm:$0xff] %v7292_v16  ;;  %4952 = vmatpush3.bf16.msra.mxu0 %v5361_v24  ;;  %v7337_v24 = vadd.f32 %v8552_v58, %v4504_v9  ;;  %v7362_v58 = vadd.f32 %v4504_v9, %v8562_v32 }
 0x2b5   : > { %4953 = vmatprep.subr.bf16.mxu0 %v5362_v37  ;;  %8551 = vst [vmem:[#allocation59_spill] sm:$0xff] %v7334_v21 }
 0x2b6   : > { %8553 = vst [vmem:[#allocation60_spill] sm:$0xff] %v7337_v24  ;;  %8563 = vst [vmem:[#allocation42_spill] sm:$0xff] %v7362_v58 }
 0x2b8   : > { %4954 = vmatpush3.bf16.msra.mxu0 %v5362_v37 }
 0x2b9   : > { %4955 = vmatprep.subr.bf16.mxu0 %v5363_v25 }
 0x2bc   : > { %4956 = vmatpush3.bf16.msra.mxu0 %v5363_v25 }
 0x2bd   : > { %4957 = vmatprep.subr.bf16.mxu0 %v5364_v33 }
 0x2c0   : > { %4958 = vmatpush3.bf16.msra.mxu0 %v5364_v33  ;;  %v8554_v33 = vld [vmem:[#allocation47_spill] sm:$0xff] }
 0x2c1   : > { %4959 = vmatprep.subr.bf16.mxu0 %v5365_v31 }
 0x2c4   : > { %4960 = vmatpush3.bf16.msra.mxu0 %v5365_v31  ;;  %v7340_v31 = vadd.f32 %v4504_v9, %v8554_v33  ;;  %v8564_v33 = vld [vmem:[#allocation52_spill] sm:$0xff] }
 0x2c5   : > { %4961 = vmatprep.subr.bf16.mxu0 %v5366_v62 }
 0x2c6   : > { %8555 = vst [vmem:[#allocation41_spill] sm:$0xff] %v7340_v31 }
 0x2c8   : > { %4962 = vmatpush3.bf16.msra.mxu0 %v5366_v62  ;;  %v8556_v62 = vld [vmem:[#allocation48_spill] sm:$0xff] }
 0x2c9   : > { %5043 = vmatprep.subr.bf16.mxu0 %v7298_v19 }
 0x305   : > { %v4933_v27 = vpop.f32.mrb[16].mxu0 }
 0x306   : > { %v1607_v8 = vadd.f32 %v4933_v27, %v7304_v53  ;;  %v1598_v43 = vpop.f32.mrb[17].mxu0  ;;  %v7343_v27 = vadd.f32 %v8556_v62, %v4504_v9  ;;  %v7365_v62 = vadd.f32 %v8564_v33, %v4504_v9 }
 0x307   : > { %v1599_v44 = vadd.f32 %v7304_v53, %v1598_v43  ;;  %v4934_v0 = vpop.f32.mrb[18].mxu0 }
 0x308   : > { %v1679_v59 = vmul.f32 0.70710677, %v1607_v8  ;;  %v1610_v29 = vadd.f32 %v4934_v0, %v7304_v53  ;;  %v1601_v42 = vpop.f32.mrb[19].mxu0  ;;  %8557 = vst [vmem:[#allocation38_spill] sm:$0xff] %v7343_v27  ;;  %8565 = vst [vmem:[#allocation43_spill] sm:$0xff] %v7365_v62 }
 0x309   : > { %v7309_v41 = vmul.f32 0.70710677, %v1599_v44  ;;  %v1602_v47 = vadd.f32 %v7304_v53, %v1601_v42  ;;  %v8558_v42 = vld [vmem:[#allocation49_spill] sm:$0xff] }
 0x30a   : > { %v1727_v28 = vand.u32 2147483647, %v1679_v59  ;;  %v7311_v12 = vmul.f32 0.70710677, %v1610_v29  ;;  %vm1695_vm0 = vcmp.ge.f32.partialorder %v1679_v59, 0.0 }
 0x30b   : > { %v1725_v30 = vand.u32 2147483647, %v7309_v41  ;;  %v7319_v34 = vmul.f32 0.70710677, %v1602_v47  ;;  %vm1693_vm1 = vcmp.ge.f32.partialorder %v7309_v41, 0.0 }
 0x30c   : > { %v1743_v13 = vmul.f32 0.3275911, %v1727_v28  ;;  %v1728_v22 = vand.u32 2147483647, %v7311_v12  ;;  %v1935_v43 = vsub.f32 0.0, %v1727_v28  ;;  %vm1696_vm2 = vcmp.ge.f32.partialorder %v7311_v12, 0.0 }
 0x30d   : > { %v1741_v56 = vmul.f32 0.3275911, %v1725_v30  ;;  %v4937_v46 = vpop.f32.mrb[20].mxu0  ;;  %v7331_v63 = vand.u32 2147483647, %v7319_v34  ;;  %vm1694_vm3 = vcmp.ge.f32.partialorder %v7319_v34, 0.0 }
 0x30e   : > { %v1759_v40 = vadd.f32 1.0, %v1743_v13  ;;  %v1744_v51 = vmul.f32 0.3275911, %v1728_v22  ;;  %v1614_v7 = vpop.f32.mrb[21].mxu0  ;;  %v7347_v13 = vadd.f32 %v4504_v9, %v8558_v42  ;;  %v1951_v42 = vmul.f32 %v1935_v43, %v1727_v28 }
 0x30f   : > { %v1757_v55 = vadd.f32 1.0, %v1741_v56  ;;  %v4938_v36 = vpop.f32.mrb[22].mxu0  ;;  %v1742_v0 = vmul.f32 0.3275911, %v7331_v63  ;;  %v1933_v56 = vsub.f32 0.0, %v1725_v30  ;;  %v7353_v3 = vadd.f32 %v7304_v53, %v1614_v7 }
 0x310   : > { %5527 = vrcp.f32 %v1759_v40  ;;  %v1760_v37 = vadd.f32 1.0, %v1744_v51  ;;  %v1617_v25 = vpop.f32.mrb[23].mxu0  ;;  %8559 = vst [vmem:[#allocation34_spill] sm:$0xff] %v7347_v13  ;;  %v7350_v40 = vadd.f32 %v4937_v46, %v7304_v53  ;;  %v7359_v2 = vadd.f32 %v4938_v36, %v7304_v53 }
 0x311   : > { %5529 = vrcp.f32 %v1757_v55  ;;  %v8560_v55 = vld [vmem:[#allocation50_spill] sm:$0xff]  ;;  %v1758_v39 = vadd.f32 1.0, %v1742_v0  ;;  %v8566_v0 = vld [vmem:[#allocation53_spill] sm:$0xff]  ;;  %v1949_v60 = vmul.f32 %v1933_v56, %v1725_v30  ;;  %v7388_v28 = vmul.f32 0.5, %v1607_v8 }
 0x312   : > { %v7356_v51 = vadd.f32 %v8560_v55, %v4504_v9  ;;  %5531 = vrcp.f32 %v1760_v37  ;;  %v7368_v46 = vmul.f32 0.70710677, %v7350_v40  ;;  %v1936_v55 = vsub.f32 0.0, %v1728_v22 }
 0x313   : > { %5533 = vrcp.f32 %v1758_v39  ;;  %v7373_v37 = vmul.f32 0.70710677, %v7353_v3  ;;  %v7378_v32 = vadd.f32 %v4504_v9, %v8566_v0  ;;  %v7384_v15 = vmul.f32 0.70710677, %v7359_v2 }
 0x314   : > { %8561 = vst [vmem:[#allocation39_spill] sm:$0xff] %v7356_v51  ;;  %v7381_v33 = vand.u32 2147483647, %v7368_v46  ;;  %v7390_v43 = vmul.f32 0.5, %v1599_v44  ;;  %v7392_v39 = vmul.f32 0.5, %v1610_v29  ;;  %v7401_v30 = vsel %vm1695_vm0, 1.0, %v8446_v35 }
 0x315   : > { %v7370_v7 = vpop.f32.mrb[24].mxu0  ;;  %8567 = vst [vmem:[#allocation44_spill] sm:$0xff] %v7378_v32  ;;  %v7395_v54 = vand.u32 2147483647, %v7373_v37  ;;  %v7404_v56 = vmul.f32 0.5, %v1602_v47  ;;  %v1952_v29 = vmul.f32 %v1936_v55, %v1728_v22  ;;  %v1934_v16 = vsub.f32 0.0, %v7331_v63 }
 0x316   : > { %v7375_v36 = vpop.f32.mrb[25].mxu0  ;;  %v1747_v8 = vmul.f32 0.3275911, %v7381_v33  ;;  %v1969_v44 = vmul.f32 1.442695, %v1951_v42  ;;  %v7420_v22 = vadd.f32 %v7304_v53, %v1617_v25  ;;  %v7452_v41 = vsel %vm1696_vm2, 1.0, %v8446_v35 }
 0x317   : > { %v7386_v5 = vpop.f32.mrb[26].mxu0  ;;  %v1745_v38 = vmul.f32 0.3275911, %v7395_v54  ;;  %v7411_v11 = vand.u32 2147483647, %v7384_v15  ;;  %v7466_v12 = vmul.f32 0.5, %v7353_v3  ;;  %v7480_v3 = vadd.f32 %v7370_v7, %v7304_v53 }
 0x318   : > { %v7397_v9 = vpop.f32.mrb[27].mxu0  ;;  %v1965_v50 = vmul.f32 1.442695, %v1949_v60  ;;  %v1763_v47 = vadd.f32 1.0, %v1747_v8  ;;  %v1971_v8 = vmul.f32 1.442695, %v1952_v29 }
 0x319   : > { %v1761_v10 = vadd.f32 1.0, %v1745_v38  ;;  %v1748_v26 = vmul.f32 0.3275911, %v7411_v11  ;;  %vm1699_vm4 = vcmp.ge.f32.partialorder %v7368_v46, 0.0  ;;  %v1937_v49 = vsub.f32 0.0, %v7395_v54 }
 0x31a   : > { %v7407_v0 = vpop.eup %5527  ;;  %5535 = vrcp.f32 %v1763_v47  ;;  %vm1697_vm5 = vcmp.ge.f32.partialorder %v7373_v37, 0.0  ;;  %vm1700_vm6 = vcmp.ge.f32.partialorder %v7384_v15, 0.0 }
 0x31b   : > { %v7413_v23 = vpop.eup %5529  ;;  %v1791_v59 = vmul.f32 1.0614054, %v7407_v0  ;;  %5537 = vrcp.f32 %v1761_v10  ;;  %v1764_v6 = vadd.f32 1.0, %v1748_v26  ;;  %v7444_v10 = vmul.f32 0.70710677, %v7420_v22 }
 0x31c   : > { %v1789_v20 = vmul.f32 1.0614054, %v7413_v23  ;;  %v7426_v60 = vpop.eup %5531  ;;  %5539 = vpow2.f32 %v1969_v44 }
 0x31d   : > { %v1807_v42 = vadd.f32 -1.4531521, %v1791_v59  ;;  %v7424_v55 = vpop.f32.mrb[28].mxu0  ;;  %v1792_v25 = vmul.f32 1.0614054, %v7426_v60  ;;  %v1950_v59 = vmul.f32 %v1934_v16, %v7331_v63  ;;  %v7435_v47 = vpop.eup %5533  ;;  %5541 = vpow2.f32 %v1965_v50 }
 0x31e   : > { %v1805_v52 = vadd.f32 -1.4531521, %v1789_v20  ;;  %v7428_v38 = vpop.f32.mrb[29].mxu0  ;;  %v7440_v20 = vsel %vm1693_vm1, 1.0, %v8446_v35  ;;  %v1790_v16 = vmul.f32 1.0614054, %v7435_v47  ;;  %5543 = vrcp.f32 %v1764_v6 }
 0x31f   : > { %v1823_v1 = vmul.f32 %v7407_v0, %v1807_v42  ;;  %v7433_v4 = vpop.f32.mrb[30].mxu0  ;;  %v1808_v42 = vadd.f32 -1.4531521, %v1792_v25  ;;  %5545 = vpow2.f32 %v1971_v8  ;;  %v1967_v45 = vmul.f32 1.442695, %v1950_v59 }
 0x320   : > { %v1821_v26 = vmul.f32 %v7413_v23, %v1805_v52  ;;  %v7446_v44 = vpop.f32.mrb[31].mxu0  ;;  %v7457_v52 = vsel %vm1694_vm3, 1.0, %v8446_v35  ;;  %v1806_v25 = vadd.f32 -1.4531521, %v1790_v16  ;;  %v7469_v8 = vand.u32 2147483647, %v7444_v10 }
 0x321   : > { %v1839_v29 = vadd.f32 1.4214138, %v1823_v1  ;;  %v1824_v1 = vmul.f32 %v7426_v60, %v1808_v42  ;;  %v1939_v59 = vsub.f32 0.0, %v7381_v33  ;;  %5547 = vpow2.f32 %v1967_v45 }
 0x322   : > { %v1837_v63 = vadd.f32 1.4214138, %v1821_v26  ;;  %v7463_v26 = vmul.f32 0.5, %v7350_v40  ;;  %v1822_v14 = vmul.f32 %v7435_v47, %v1806_v25  ;;  %v1746_v40 = vmul.f32 0.3275911, %v7469_v8 }
 0x323   : > { %v1855_v50 = vmul.f32 %v7407_v0, %v1839_v29  ;;  %v1840_v48 = vadd.f32 1.4214138, %v1824_v1  ;;  %v7473_v29 = vmul.f32 0.5, %v7359_v2  ;;  %vm1698_vm7 = vcmp.ge.f32.partialorder %v7444_v10, 0.0 }
 0x324   : > { %v1853_v6 = vmul.f32 %v7413_v23, %v1837_v63  ;;  %v7482_v42 = vpop.eup %5535  ;;  %v1762_v57 = vadd.f32 1.0, %v1746_v40  ;;  %v7611_v10 = vadd.f32 %v7424_v55, %v7304_v53 }
 0x325   : > { %v1871_v34 = vadd.f32 -0.28449672, %v1855_v50  ;;  %8568 = vst [vmem:[#allocation45_spill] sm:$0xff] %v7473_v29  ;;  %v1856_v63 = vmul.f32 %v7426_v60, %v1840_v48  ;;  %v1838_v50 = vadd.f32 1.4214138, %v1822_v14  ;;  %v7486_v2 = vpop.eup %5537  ;;  %v1955_v48 = vmul.f32 %v1939_v59, %v7381_v33 }
 0x326   : > { %v1869_v1 = vadd.f32 -0.28449672, %v1853_v6  ;;  %v1795_v25 = vmul.f32 1.0614054, %v7482_v42  ;;  %v5540_v32 = vpop.eup %5539  ;;  %v1793_v51 = vmul.f32 1.0614054, %v7486_v2  ;;  %5549 = vrcp.f32 %v1762_v57 }
 0x327   : > { %v1887_v16 = vmul.f32 %v7407_v0, %v1871_v34  ;;  %v1872_v7 = vadd.f32 -0.28449672, %v1856_v63  ;;  %v1854_v58 = vmul.f32 %v7435_v47, %v1838_v50  ;;  %v5542_v34 = vpop.eup %5541  ;;  %v7494_v14 = vmul.f32 0.70710677, %v7480_v3 }
 0x328   : > { %v1811_v27 = vadd.f32 -1.4531521, %v1795_v25  ;;  %v7496_v45 = vpop.eup %5543  ;;  %v1809_v63 = vadd.f32 -1.4531521, %v1793_v51  ;;  %v1885_v50 = vmul.f32 %v7413_v23, %v1869_v1  ;;  %v7504_v25 = vsel %vm1699_vm4, 1.0, %v8446_v35 }
 0x329   : > { %v1903_v62 = vadd.f32 0.2548296, %v1887_v16  ;;  %v1888_v40 = vmul.f32 %v7426_v60, %v1872_v7  ;;  %v1870_v16 = vadd.f32 -0.28449672, %v1854_v58  ;;  %v5546_v19 = vpop.eup %5545  ;;  %v1796_v33 = vmul.f32 1.0614054, %v7496_v45 }
 0x32a   : > { %v1827_v57 = vmul.f32 %v7482_v42, %v1811_v27  ;;  %v1953_v51 = vmul.f32 %v1937_v49, %v7395_v54  ;;  %v7513_v46 = vand.u32 2147483647, %v7494_v14  ;;  %v1977_v13 = vmul.f32 1.442695, %v1955_v48 }
 0x32b   : > { %v1919_v6 = vmul.f32 %v7407_v0, %v1903_v62  ;;  %v1904_v24 = vadd.f32 0.2548296, %v1888_v40  ;;  %v1886_v62 = vmul.f32 %v7435_v47, %v1870_v16  ;;  %v1825_v0 = vmul.f32 %v7486_v2, %v1809_v63  ;;  %v5548_v63 = vpop.eup %5547 }
 0x32c   : > { %v1843_v58 = vadd.f32 1.4214138, %v1827_v57  ;;  %v1812_v1 = vadd.f32 -1.4531521, %v1796_v33  ;;  %v1751_v16 = vmul.f32 0.3275911, %v7513_v46 }
 0x32d   : > { %v1999_v59 = vmul.f32 %v5540_v32, %v1919_v6  ;;  %v1920_v27 = vmul.f32 %v7426_v60, %v1904_v24  ;;  %v1841_v31 = vadd.f32 1.4214138, %v1825_v0  ;;  %v1901_v32 = vadd.f32 0.2548296, %v1885_v50 }
 0x32e   : > { %v1859_v6 = vmul.f32 %v7482_v42, %v1843_v58  ;;  %v1828_v40 = vmul.f32 %v7496_v45, %v1812_v1  ;;  %v1902_v54 = vadd.f32 0.2548296, %v1886_v62  ;;  %v1940_v24 = vsub.f32 0.0, %v7411_v11 }
 0x32f   : > { %v2015_v7 = vsub.f32 1.0, %v1999_v59  ;;  %v2000_v49 = vmul.f32 %v5546_v19, %v1920_v27  ;;  %v1857_v33 = vmul.f32 %v7486_v2, %v1841_v31  ;;  %v1767_v60 = vadd.f32 1.0, %v1751_v16 }
 0x330   : > { %v1875_v21 = vadd.f32 -0.28449672, %v1859_v6  ;;  %v1844_v59 = vadd.f32 1.4214138, %v1828_v40  ;;  %v7523_v58 = vpop.eup %5549  ;;  %v1917_v1 = vmul.f32 %v7413_v23, %v1901_v32  ;;  %v1973_v29 = vmul.f32 1.442695, %v1953_v51 }
 0x331   : > { %v2031_v57 = vmul.f32 %v2015_v7, %v7401_v30  ;;  %v2016_v50 = vsub.f32 1.0, %v2000_v49  ;;  %v1873_v0 = vadd.f32 -0.28449672, %v1857_v33  ;;  %v1938_v19 = vsub.f32 0.0, %v7469_v8 }
 0x332   : > { %5551 = vrcp.f32 %v1767_v60  ;;  %v1918_v62 = vmul.f32 %v7435_v47, %v1902_v54  ;;  %v1891_v7 = vmul.f32 %v7482_v42, %v1875_v21  ;;  %v1860_v27 = vmul.f32 %v7496_v45, %v1844_v59 }
 0x333   : > { %v2047_v48 = vadd.f32 1.0, %v2031_v57  ;;  %v2032_v30 = vmul.f32 %v2016_v50, %v7452_v41  ;;  %5553 = vpow2.f32 %v1977_v13  ;;  %v1956_v6 = vmul.f32 %v1940_v24, %v7411_v11 }
 0x334   : > { %v1794_v40 = vmul.f32 1.0614054, %v7523_v58  ;;  %v1889_v32 = vmul.f32 %v7486_v2, %v1873_v0  ;;  %v1997_v47 = vmul.f32 %v5542_v34, %v1917_v1  ;;  %5555 = vpow2.f32 %v1973_v29 }
 0x335   : > { %v2063_v31 = vmul.f32 %v2047_v48, %v7388_v28  ;;  %v2048_v51 = vadd.f32 1.0, %v2032_v30  ;;  %v7540_v28 = vadd.f32 %v7304_v53, %v7375_v36  ;;  %v1954_v21 = vmul.f32 %v1938_v19, %v7469_v8 }
 0x336   : > { %v1810_v13 = vadd.f32 -1.4531521, %v1794_v40  ;;  %v1998_v11 = vmul.f32 %v5548_v63, %v1918_v62  ;;  %v7552_v16 = vsel %vm1700_vm6, 1.0, %v8446_v35  ;;  %v1907_v36 = vadd.f32 0.2548296, %v1891_v7  ;;  %v5383_v62 = vld [vmem:[#allocation6 + $0xc0] sm:$0xff]  }
 0x337   : > { %v7535_v23 = vmul.f32 %v2063_v31, %v7322_v18  ;;  %v2064_v41 = vmul.f32 %v2048_v51, %v7392_v39  ;;  %v7547_v18 = vsel %vm1697_vm5, 1.0, %v8446_v35  ;;  %v1876_v57 = vadd.f32 -0.28449672, %v1860_v27  ;;  %5075 = vmatprep.subr.bf16.mxu1 %v5383_v62 }
 0x338   : > { %v1826_v29 = vmul.f32 %v7523_v58, %v1810_v13  ;;  %v1943_v34 = vsub.f32 0.0, %v7513_v46  ;;  %v1905_v39 = vadd.f32 0.2548296, %v1889_v32  ;;  %v1979_v63 = vmul.f32 1.442695, %v1956_v6  ;;  %5076 = vmatpush3.bf16.msra.mxu1 %v5383_v62 }
 0x339   : > { %v7557_v8 = vmul.f32 %v2064_v41, %v7328_v17  ;;  %v7560_v37 = vmul.f32 0.70710677, %v7540_v28  ;;  %v2013_v49 = vsub.f32 1.0, %v1997_v47  ;;  %v7563_v54 = vmul.f32 0.5, %v7420_v22 }
 0x33a   : > { %v1842_v15 = vadd.f32 1.4214138, %v1826_v29  ;;  %v1975_v33 = vmul.f32 1.442695, %v1954_v21  ;;  %v2014_v24 = vsub.f32 1.0, %v1998_v11  ;;  %v1923_v48 = vmul.f32 %v7482_v42, %v1907_v36 }
 0x33b   : > { %v2094_v59 = vpack.c.bf16 %v7557_v8, %v7535_v23  ;;  %v7569_v17 = vand.u32 2147483647, %v7560_v37  ;;  %v1892_v50 = vmul.f32 %v7496_v45, %v1876_v57  ;;  %v1959_v0 = vmul.f32 %v1943_v34, %v7513_v46  ;;  %v5384_v34 = vld [vmem:[#allocation6 + $0xc8] sm:$0xff]  }
 0x33c   : > { %v7571_v60 = vpop.eup %5551  ;;  %v1858_v22 = vmul.f32 %v7523_v58, %v1842_v15  ;;  %v1921_v19 = vmul.f32 %v7486_v2, %v1905_v39  ;;  %5557 = vpow2.f32 %v1979_v63  ;;  %v2029_v7 = vmul.f32 %v2013_v49, %v7440_v20  ;;  %5077 = vmatprep.subr.bf16.mxu1 %v5384_v34 }
 0x33d   : > { %v5554_v1 = vpop.eup %5553  ;;  %v1799_v31 = vmul.f32 1.0614054, %v7571_v60  ;;  %v1749_v30 = vmul.f32 0.3275911, %v7569_v17  ;;  %5559 = vpow2.f32 %v1975_v33  ;;  %vm1703_vm8 = vcmp.ge.f32.partialorder %v7494_v14, 0.0  ;;  %5078 = vmatpush3.bf16.msra.mxu1 %v5384_v34  ;;  %v5387_v34 = vld [vmem:[#allocation6 + $0xe0] sm:$0xff]  }
 0x33e   : > { %v1874_v27 = vadd.f32 -0.28449672, %v1858_v22  ;;  %v2030_v42 = vmul.f32 %v2014_v24, %v7457_v52  ;;  %v7585_v46 = vadd.f32 %v7386_v5, %v7304_v53  ;;  %v5556_v2 = vpop.eup %5555  ;;  %v2003_v51 = vmul.f32 %v5554_v1, %v1923_v48  ;;  %v5385_v24 = vld [vmem:[#allocation6 + $0xd0] sm:$0xff]  }
 0x33f   : > { %v1815_v6 = vadd.f32 -1.4531521, %v1799_v31  ;;  %v1765_v40 = vadd.f32 1.0, %v1749_v30  ;;  %v1908_v32 = vadd.f32 0.2548296, %v1892_v50  ;;  %v2001_v20 = vmul.f32 %v5556_v2, %v1921_v19  ;;  %5079 = vmatprep.subr.bf16.mxu1 %v5385_v24 }
 0x340   : > { %v1890_v47 = vmul.f32 %v7523_v58, %v1874_v27  ;;  %v1985_v13 = vmul.f32 1.442695, %v1959_v0  ;;  %v7589_v21 = vmul.f32 0.5, %v7480_v3  ;;  %v7595_v5 = vsel %vm1698_vm7, 1.0, %v8446_v35 }
 0x341   : > { %v1831_v52 = vmul.f32 %v7571_v60, %v1815_v6  ;;  %5561 = vrcp.f32 %v1765_v40  ;;  %v7600_v11 = vsel %vm1703_vm8, 1.0, %v8446_v35  ;;  %v7604_v36 = vadd.f32 %v7304_v53, %v7397_v9  ;;  %5080 = vmatpush3.bf16.msra.mxu1 %v5385_v24 }
 0x342   : > { %v1906_v41 = vadd.f32 0.2548296, %v1890_v47  ;;  %v2045_v3 = vadd.f32 1.0, %v2029_v7  ;;  %v7607_v29 = vmul.f32 0.70710677, %v7585_v46  ;;  %v2046_v39 = vadd.f32 1.0, %v2030_v42 }
 0x343   : > { %v1847_v57 = vadd.f32 1.4214138, %v1831_v52  ;;  %v2019_v63 = vsub.f32 1.0, %v2003_v51  ;;  %v1924_v14 = vmul.f32 %v7496_v45, %v1908_v32  ;;  %5563 = vpow2.f32 %v1985_v13 }
 0x344   : > { %v2017_v49 = vsub.f32 1.0, %v2001_v20  ;;  %v1736_v9 = vand.u32 2147483647, %v7607_v29  ;;  %v7617_v33 = vmul.f32 0.70710677, %v7604_v36  ;;  %v1922_v48 = vmul.f32 %v7523_v58, %v1906_v41 }
 0x345   : > { %v1863_v15 = vmul.f32 %v7571_v60, %v1847_v57  ;;  %vm1701_vm9 = vcmp.ge.f32.partialorder %v7560_v37, 0.0  ;;  %v1941_v55 = vsub.f32 0.0, %v7569_v17  ;;  %v7623_v50 = vmul.f32 0.70710677, %v7611_v10  ;;  %v5386_v37 = vld [vmem:[#allocation6 + $0xd8] sm:$0xff]  }
 0x346   : > { %v5558_v45 = vpop.eup %5557  ;;  %v7626_v22 = vmul.f32 %v2045_v3, %v7390_v43  ;;  %v7629_v1 = vmul.f32 0.5, %v7540_v28  ;;  %v1752_v19 = vmul.f32 0.3275911, %v1736_v9  ;;  %v7632_v58 = vmul.f32 %v2046_v39, %v7404_v56  ;;  %5081 = vmatprep.subr.bf16.mxu1 %v5386_v37 }
 0x347   : > { %v1879_v0 = vadd.f32 -0.28449672, %v1863_v15  ;;  %v5560_v31 = vpop.eup %5559  ;;  %v2035_v30 = vmul.f32 %v2019_v63, %v7504_v25  ;;  %v2004_v62 = vmul.f32 %v5558_v45, %v1924_v14  ;;  %v1734_v7 = vand.u32 2147483647, %v7617_v33  ;;  %5082 = vmatpush3.bf16.msra.mxu1 %v5386_v37 }
 0x348   : > { %v2033_v27 = vmul.f32 %v2017_v49, %v7547_v18  ;;  %v7641_v28 = vsel %vm1701_vm9, 1.0, %v8446_v35  ;;  %v1768_v42 = vadd.f32 1.0, %v1752_v19  ;;  %v2002_v6 = vmul.f32 %v5560_v31, %v1922_v48  ;;  %5083 = vmatprep.subr.bf16.mxu1 %v5387_v34 }
 0x349   : > { %v1895_v43 = vmul.f32 %v7571_v60, %v1879_v0  ;;  %v1957_v40 = vmul.f32 %v1941_v55, %v7569_v17  ;;  %v1750_v56 = vmul.f32 0.3275911, %v1734_v7  ;;  %v1739_v2 = vand.u32 2147483647, %v7623_v50  ;;  %v5388_v55 = vld [vmem:[#allocation6 + $0xe8] sm:$0xff]  }
 0x34a   : > { %5565 = vrcp.f32 %v1768_v42  ;;  %v1944_v18 = vsub.f32 0.0, %v1736_v9  ;;  %v7649_v32 = vadd.f32 %v7304_v53, %v7428_v38  ;;  %v2051_v47 = vadd.f32 1.0, %v2035_v30 }
 0x34b   : > { %v7645_v25 = vpop.eup %5561  ;;  %v1911_v51 = vadd.f32 0.2548296, %v1895_v43  ;;  %v2020_v13 = vsub.f32 1.0, %v2004_v62  ;;  %v1766_v52 = vadd.f32 1.0, %v1750_v56  ;;  %v2049_v17 = vadd.f32 1.0, %v2033_v27  ;;  %5084 = vmatpush3.bf16.msra.mxu1 %v5387_v34 }
 0x34c   : > { %v1797_v20 = vmul.f32 1.0614054, %v7645_v25  ;;  %v1942_v3 = vsub.f32 0.0, %v1734_v7  ;;  %v1755_v57 = vmul.f32 0.3275911, %v1739_v2  ;;  %v2018_v63 = vsub.f32 1.0, %v2002_v6  ;;  %5085 = vmatprep.subr.bf16.mxu1 %v5388_v55 }
 0x34d   : > { %v1927_v41 = vmul.f32 %v7571_v60, %v1911_v51  ;;  %v5564_v39 = vpop.eup %5563  ;;  %v1981_v49 = vmul.f32 1.442695, %v1957_v40  ;;  %5567 = vrcp.f32 %v1766_v52  ;;  %v1960_v15 = vmul.f32 %v1944_v18, %v1736_v9 }
 0x34e   : > { %v1813_v14 = vadd.f32 -1.4531521, %v1797_v20  ;;  %v1771_v24 = vadd.f32 1.0, %v1755_v57  ;;  %v7654_v48 = vmul.f32 0.70710677, %v7649_v32  ;;  %v7657_v60 = vmul.f32 %v2051_v47, %v7463_v26 }
 0x34f   : > { %v2007_v38 = vmul.f32 %v5564_v39, %v1927_v41  ;;  %v2036_v45 = vmul.f32 %v2020_v13, %v7552_v16  ;;  %v7663_v19 = vadd.f32 %v7433_v4, %v7304_v53  ;;  %v7666_v31 = vmul.f32 %v2049_v17, %v7466_v12  ;;  %v5389_v12 = vld [vmem:[#allocation6 + $0xf0] sm:$0xff]   ;;  %5086 = vmatpush3.bf16.msra.mxu1 %v5388_v55 }
 0x350   : > { %v1829_v0 = vmul.f32 %v7645_v25, %v1813_v14  ;;  %v1958_v9 = vmul.f32 %v1942_v3, %v1734_v7  ;;  %5569 = vrcp.f32 %v1771_v24  ;;  %v1947_v30 = vsub.f32 0.0, %v1739_v2  ;;  %5087 = vmatprep.subr.bf16.mxu1 %v5389_v12  ;;  %v8569_v3 = vld [vmem:[#allocation45_spill] sm:$0xff] }
 0x351   : > { %v2034_v62 = vmul.f32 %v2018_v63, %v7595_v5  ;;  %5571 = vpow2.f32 %v1981_v49  ;;  %v1737_v26 = vand.u32 2147483647, %v7654_v48  ;;  %v2023_v16 = vsub.f32 1.0, %v2007_v38 }
 0x352   : > { %v1845_v27 = vadd.f32 1.4214138, %v1829_v0  ;;  %v1987_v43 = vmul.f32 1.442695, %v1960_v15  ;;  %v7671_v42 = vmul.f32 0.70710677, %v7663_v19  ;;  %v7675_v4 = vadd.f32 %v7304_v53, %v7446_v44 }
 0x353   : > { %v2052_v7 = vadd.f32 1.0, %v2036_v45  ;;  %v7679_v5 = vmul.f32 0.5, %v7585_v46  ;;  %v1753_v40 = vmul.f32 0.3275911, %v1737_v26  ;;  %v1983_v51 = vmul.f32 1.442695, %v1958_v9  ;;  %5088 = vmatpush3.bf16.msra.mxu1 %v5389_v12 }
 0x354   : > { %v1861_v6 = vmul.f32 %v7645_v25, %v1845_v27  ;;  %v7681_v56 = vpop.eup %5565  ;;  %v1963_v18 = vmul.f32 %v1947_v30, %v1739_v2  ;;  %v7684_v37 = vand.u32 2147483647, %v7671_v42  ;;  %v2077_v53 = vmul.f32 %v7626_v22, %v7325_v61  ;;  %v5390_v2 = vld [vmem:[#allocation6 + $0xf8] sm:$0xff]  }
 0x355   : > { %v2050_v44 = vadd.f32 1.0, %v2034_v62  ;;  %v1800_v13 = vmul.f32 1.0614054, %v7681_v56  ;;  %v1769_v20 = vadd.f32 1.0, %v1753_v40  ;;  %v2039_v46 = vmul.f32 %v2023_v16, %v7600_v11  ;;  %5089 = vmatprep.subr.bf16.mxu1 %v5390_v2  ;;  %v8570_v62 = vld [vmem:[#allocation59_spill] sm:$0xff] }
 0x356   : > { %v1877_v47 = vadd.f32 -0.28449672, %v1861_v6  ;;  %5573 = vpow2.f32 %v1987_v43  ;;  %v1756_v52 = vmul.f32 0.3275911, %v7684_v37  ;;  %v7692_v17 = vmul.f32 0.70710677, %v7675_v4 }
 0x357   : > { %v7694_v41 = vpop.eup %5567  ;;  %v7697_v61 = vmul.f32 %v2052_v7, %v8569_v3  ;;  %v1816_v57 = vadd.f32 -1.4531521, %v1800_v13  ;;  %5575 = vrcp.f32 %v1769_v20  ;;  %v1993_v11 = vmul.f32 1.442695, %v1963_v18  ;;  %5090 = vmatpush3.bf16.msra.mxu1 %v5390_v2  ;;  %v8574_v2 = vld [vmem:[#allocation18_spill] sm:$0xff] }
 0x358   : > { %v1893_v22 = vmul.f32 %v7645_v25, %v1877_v47  ;;  %v1798_v34 = vmul.f32 1.0614054, %v7694_v41  ;;  %v1945_v39 = vsub.f32 0.0, %v1737_v26  ;;  %v1772_v63 = vadd.f32 1.0, %v1756_v52  ;;  %v5368_v47 = vld [vmem:[#allocation9 + $0x88] sm:$0xff]  }
 0x359   : > { %v2066_v14 = vmul.f32 %v2050_v44, %v7563_v54  ;;  %v1832_v38 = vmul.f32 %v7681_v56, %v1816_v57  ;;  %5577 = vpow2.f32 %v1983_v51  ;;  %v2055_v24 = vadd.f32 1.0, %v2039_v46  ;;  %v8572_v52 = vld [vmem:[#allocation34_spill] sm:$0xff] }
 0x35a   : > { %v1909_v49 = vadd.f32 0.2548296, %v1893_v22  ;;  %v7703_v15 = vpop.eup %5569  ;;  %v1814_v55 = vadd.f32 -1.4531521, %v1798_v34  ;;  %5579 = vrcp.f32 %v1772_v63  ;;  %v7706_v45 = vand.u32 2147483647, %v7692_v17  ;;  %5092 = vmatmul.mubr.bf16.vlgmr.msra.gmra.mrb[80].mxu1 %v8574_v2 }
 0x35b   : > { %v5572_v0 = vpop.eup %5571  ;;  %v1848_v30 = vadd.f32 1.4214138, %v1832_v38  ;;  %v1803_v54 = vmul.f32 1.0614054, %v7703_v15  ;;  %v2078_v27 = vmul.f32 %v7632_v58, %v8570_v62  ;;  %5581 = vpow2.f32 %v1993_v11  ;;  %v8571_v58 = vld [vmem:[#allocation41_spill] sm:$0xff]  ;;  %v5369_v38 = vld [vmem:[#allocation9 + $0x90] sm:$0xff]  }
 0x35c   : > { %v1925_v9 = vmul.f32 %v7645_v25, %v1909_v49  ;;  %v1830_v16 = vmul.f32 %v7694_v41, %v1814_v55  ;;  %v1961_v43 = vmul.f32 %v1945_v39, %v1737_v26  ;;  %v1754_v12 = vmul.f32 0.3275911, %v7706_v45 }
 0x35d   : > { %vm1704_vm10 = vcmp.ge.f32.partialorder %v7607_v29, 0.0  ;;  %v1864_v6 = vmul.f32 %v7681_v56, %v1848_v30  ;;  %v1819_v40 = vadd.f32 -1.4531521, %v1803_v54  ;;  %v2093_v51 = vpack.c.bf16 %v2078_v27, %v2077_v53  ;;  %v8578_v54 = vld [vmem:[#allocation39_spill] sm:$0xff] }
 0x35e   : > { %v2005_v7 = vmul.f32 %v5572_v0, %v1925_v9  ;;  %v2071_v25 = vmul.f32 %v2055_v24, %v7589_v21  ;;  %v1846_v18 = vadd.f32 1.4214138, %v1830_v16  ;;  %v1770_v44 = vadd.f32 1.0, %v1754_v12  ;;  %v8573_v21 = vld [vmem:[#allocation60_spill] sm:$0xff]  ;;  %v8576_v24 = vld [vmem:[#allocation19_spill] sm:$0xff] }
 0x35f   : > { %v2081_v13 = vmul.f32 %v7666_v31, %v8571_v58  ;;  %v1880_v26 = vadd.f32 -0.28449672, %v1864_v6  ;;  %v1835_v46 = vmul.f32 %v7703_v15, %v1819_v40  ;;  %4963 = vmatprep.mubr.bf16.mxu0 %v2093_v51  ;;  %v2082_v3 = vmul.f32 %v2066_v14, %v8572_v52  ;;  %v8575_v14 = vld [vmem:[#allocation58_spill] sm:$0xff]  ;;  %5095 = vmatprep.mubr.bf16.mxu1 %v8576_v24 }
 0x360   : > { %v2021_v20 = vsub.f32 1.0, %v2005_v7  ;;  %v5574_v22 = vpop.eup %5573  ;;  %v1862_v57 = vmul.f32 %v7694_v41, %v1846_v18  ;;  %v1948_v53 = vsub.f32 0.0, %v7684_v37  ;;  %5583 = vrcp.f32 %v1770_v44  ;;  %4964 = vmatmul.mubr.bf16.vlgmr.msra.gmra.mrb[0].mxu0 %v2094_v59 }
 0x361   : > { %v2083_v31 = vmul.f32 %v7657_v60, %v8573_v21  ;;  %v7729_v34 = vpop.eup %5575  ;;  %v1896_v39 = vmul.f32 %v7681_v56, %v1880_v26  ;;  %v1851_v63 = vadd.f32 1.4214138, %v1835_v46  ;;  %5044 = vmatpush3.bf16.msra.mxu0 %v8575_v14  ;;  %v2095_v49 = vpack.c.bf16 %v2082_v3, %v2081_v13  ;;  %v8577_v60 = vld [vmem:[#allocation38_spill] sm:$0xff]  ;;  %v5370_v13 = vld [vmem:[#allocation9 + $0x98] sm:$0xff]   ;;  %v5371_v14 = vld [vmem:[#allocation9 + $0xa0] sm:$0xff]  }
 0x362   : > { %v2037_v11 = vmul.f32 %v2021_v20, %v7641_v28  ;;  %v1878_v23 = vadd.f32 -0.28449672, %v1862_v57  ;;  %v1801_v8 = vmul.f32 1.0614054, %v7729_v34  ;;  %v1989_v59 = vmul.f32 1.442695, %v1961_v43  ;;  %5045 = vmatprep.subr.bf16.mxu0 %v5368_v47 }
 0x363   : > { %v2084_v55 = vmul.f32 %v7697_v61, %v8577_v60  ;;  %v5578_v0 = vpop.eup %5577  ;;  %v1912_v28 = vadd.f32 0.2548296, %v1896_v39  ;;  %v1867_v30 = vmul.f32 %v7703_v15, %v1851_v63  ;;  %4967 = vmatprep.mubr.bf16.mxu0 %v2095_v49  ;;  %v7740_v62 = vmul.f32 %v2071_v25, %v8578_v54  ;;  %v8579_v26 = vld [vmem:[#allocation42_spill] sm:$0xff]  ;;  %v8580_v57 = vld [vmem:[#allocation20_spill] sm:$0xff] }
 0x364   : > { %v2053_v9 = vadd.f32 1.0, %v2037_v11  ;;  %v7742_v27 = vpop.eup %5579  ;;  %v1894_v16 = vmul.f32 %v7694_v41, %v1878_v23  ;;  %v1817_v12 = vadd.f32 -1.4531521, %v1801_v8  ;;  %v1964_v43 = vmul.f32 %v1948_v53, %v7684_v37  ;;  %5096 = vmatmul.mubr.bf16.gmra.mrb[84].mxu1 %v8580_v57  ;;  %v5372_v54 = vld [vmem:[#allocation9 + $0xa8] sm:$0xff]  }
 0x365   : > { %v2096_v7 = vpack.c.bf16 %v2084_v55, %v2083_v31  ;;  %v1928_v61 = vmul.f32 %v7681_v56, %v1912_v28  ;;  %v1883_v40 = vadd.f32 -0.28449672, %v1867_v30  ;;  %v1804_v51 = vmul.f32 1.0614054, %v7742_v27  ;;  %5046 = vmatpush3.bf16.msra.mxu0 %v5368_v47  ;;  %v5582_v18 = vpop.eup %5581  ;;  %v8581_v31 = vld [vmem:[#allocation21_spill] sm:$0xff] }
 0x366   : > { %v2069_v6 = vmul.f32 %v2053_v9, %v7629_v1  ;;  %vm1702_vm11 = vcmp.ge.f32.partialorder %v7617_v33, 0.0  ;;  %v1910_v25 = vadd.f32 0.2548296, %v1894_v16  ;;  %v1833_v44 = vmul.f32 %v7729_v34, %v1817_v12  ;;  %5047 = vmatprep.subr.bf16.mxu0 %v5369_v38  ;;  %5099 = vmatprep.mubr.bf16.mxu1 %v8581_v31 }
 0x367   : > { %v1946_v58 = vsub.f32 0.0, %v7706_v45  ;;  %v2008_v37 = vmul.f32 %v5574_v22, %v1928_v61  ;;  %v1899_v20 = vmul.f32 %v7703_v15, %v1883_v40  ;;  %v1820_v1 = vadd.f32 -1.4531521, %v1804_v51  ;;  %v8582_v51 = vld [vmem:[#allocation22_spill] sm:$0xff] }
 0x368   : > { %v7754_v56 = vmul.f32 %v2069_v6, %v8579_v26  ;;  %v1720_v47 = vsel %vm1704_vm10, 1.0, %v8446_v35  ;;  %v1926_v46 = vmul.f32 %v7694_v41, %v1910_v25  ;;  %v1849_v52 = vadd.f32 1.4214138, %v1833_v44  ;;  %4968 = vmatmul.mubr.bf16.gmra.mrb[4].mxu0 %v2096_v7 }
 0x369   : > { %v1995_v3 = vmul.f32 1.442695, %v1964_v43  ;;  %v2024_v53 = vsub.f32 1.0, %v2008_v37  ;;  %v1915_v21 = vadd.f32 0.2548296, %v1899_v20  ;;  %5585 = vpow2.f32 %v1989_v59  ;;  %5048 = vmatpush3.bf16.msra.mxu0 %v5369_v38 }
 0x36a   : > { %v1836_v22 = vmul.f32 %v7742_v27, %v1820_v1  ;;  %v7763_v11 = vpop.eup %5583  ;;  %v1718_v29 = vsel %vm1702_vm11, 1.0, %v8446_v35  ;;  %v2006_v41 = vmul.f32 %v5578_v0, %v1926_v46  ;;  %v1865_v39 = vmul.f32 %v7729_v34, %v1849_v52  ;;  %5049 = vmatprep.subr.bf16.mxu0 %v5370_v13 }
 0x36b   : > { %v1962_v63 = vmul.f32 %v1946_v58, %v7706_v45  ;;  %v2040_v49 = vmul.f32 %v2024_v53, %v1720_v47  ;;  %v1931_v23 = vmul.f32 %v7703_v15, %v1915_v21  ;;  %v1802_v38 = vmul.f32 1.0614054, %v7763_v11  ;;  %v8583_v58 = vld [vmem:[#allocation43_spill] sm:$0xff]  ;;  %v5657_v21 = vld [vmem:[%s8354_s2 + $0x1] ss:$0 sm:$0xff] }
 0x36c   : > { %v1852_v8 = vadd.f32 1.4214138, %v1836_v22  ;;  %v2022_v59 = vsub.f32 1.0, %v2006_v41  ;;  %vm1707_vm12 = vcmp.ge.f32.partialorder %v7623_v50, 0.0  ;;  %v1881_v60 = vadd.f32 -0.28449672, %v1865_v39  ;;  %5100 = vmatmul.mubr.bf16.gmra.mrb[88].mxu1 %v8582_v51 }
 0x36d   : > { %5587 = vpow2.f32 %v1995_v3  ;;  %v2056_v33 = vadd.f32 1.0, %v2040_v49  ;;  %v2011_v55 = vmul.f32 %v5582_v18, %v1931_v23  ;;  %v1818_v9 = vadd.f32 -1.4531521, %v1802_v38  ;;  %5050 = vmatpush3.bf16.msra.mxu0 %v5370_v13  ;;  %v8584_v13 = vld [vmem:[#allocation23_spill] sm:$0xff]  ;;  %v8585_v3 = vld [vmem:[#allocation44_spill] sm:$0xff]  ;;  %v8586_v22 = vld [vmem:[#allocation54_spill] sm:$0xff] }
 0x36e   : > { %v1868_v0 = vmul.f32 %v7742_v27, %v1852_v8  ;;  %v1670_v45 = vmul.f32 0.5, %v7604_v36  ;;  %v2038_v28 = vmul.f32 %v2022_v59, %v1718_v29  ;;  %v1897_v30 = vmul.f32 %v7729_v34, %v1881_v60  ;;  %5051 = vmatprep.subr.bf16.mxu0 %v5371_v14  ;;  %5103 = vmatprep.mubr.bf16.mxu1 %v8584_v13  ;;  %v5373_v50 = vld [vmem:[#allocation9 + $0xb0] sm:$0xff]   ;;  %v5374_v59 = vld [vmem:[#allocation9 + $0xb8] sm:$0xff]  }
 0x36f   : > { %v1991_v15 = vmul.f32 1.442695, %v1962_v63  ;;  %v2072_v16 = vmul.f32 %v2056_v33, %v7679_v5  ;;  %v2027_v12 = vsub.f32 1.0, %v2011_v55  ;;  %v1834_v7 = vmul.f32 %v7763_v11, %v1818_v9 }
 0x370   : > { %v1884_v43 = vadd.f32 -0.28449672, %v1868_v0  ;;  %v2054_v6 = vadd.f32 1.0, %v2038_v28  ;;  %v1675_v61 = vmul.f32 0.5, %v7611_v10  ;;  %v1723_v40 = vsel %vm1707_vm12, 1.0, %v8446_v35 }
 0x371   : > { %v1913_v36 = vadd.f32 0.2548296, %v1897_v30  ;;  %v2043_v18 = vmul.f32 %v2027_v12, %v1723_v40  ;;  %v1850_v44 = vadd.f32 1.4214138, %v1834_v7  ;;  %v2088_v5 = vmul.f32 %v2072_v16, %v8583_v58  ;;  %5052 = vmatpush3.bf16.msra.mxu0 %v5371_v14  ;;  %v8588_v30 = vld [vmem:[#allocation55_spill] sm:$0xff]  ;;  %v8589_v7 = vld [vmem:[#allocation56_spill] sm:$0xff] }
 0x372   : > { %v1900_v25 = vmul.f32 %v7742_v27, %v1884_v43  ;;  %v2070_v37 = vmul.f32 %v2054_v6, %v1670_v45  ;;  %vm1705_vm13 = vcmp.ge.f32.partialorder %v7654_v48, 0.0  ;;  %5589 = vpow2.f32 %v1991_v15  ;;  %5053 = vmatprep.subr.bf16.mxu0 %v5372_v54  ;;  %v5375_v45 = vld [vmem:[#allocation8 + $0xc0] sm:$0xff]  }
 0x373   : > { %v1929_v10 = vmul.f32 %v7729_v34, %v1913_v36  ;;  %v5586_v20 = vpop.eup %5585  ;;  %v2059_v1 = vadd.f32 1.0, %v2043_v18  ;;  %v1866_v47 = vmul.f32 %v7763_v11, %v1850_v44  ;;  %v2098_v46 = vpack.c.bf16 %v2088_v5, %v7740_v62 }
 0x374   : > { %v1916_v26 = vadd.f32 0.2548296, %v1900_v25  ;;  %v2086_v53 = vmul.f32 %v2070_v37, %v8585_v3  ;;  %v1485_v29 = vadd.f32 %v5657_v21, %v8586_v22  ;;  %v1721_v14 = vsel %vm1705_vm13, 1.0, %v8446_v35  ;;  %v8597_v3 = vld [vmem:[#allocation30_spill] sm:$0xff]  ;;  %v5378_v22 = vld [vmem:[#allocation8 + $0xd8] sm:$0xff]  }
 0x375   : > { %v2009_v52 = vmul.f32 %v5586_v20, %v1929_v10  ;;  %v2075_v34 = vmul.f32 %v2059_v1, %v1675_v61  ;;  %v1882_v39 = vadd.f32 -0.28449672, %v1866_v47  ;;  %5054 = vmatpush3.bf16.msra.mxu0 %v5372_v54  ;;  %vm1708_vm14 = vcmp.ge.f32.partialorder %v7671_v42, 0.0  ;;  %v8592_v20 = vld [vmem:[#allocation62_spill] sm:$0xff] }
 0x376   : > { %v1932_v41 = vmul.f32 %v7742_v27, %v1916_v26  ;;  %v2097_v49 = vpack.c.bf16 %v2086_v53, %v7754_v56  ;;  %5055 = vmatprep.subr.bf16.mxu0 %v5373_v50  ;;  %v8587_v27 = vld [vmem:[#allocation24_spill] sm:$0xff]  ;;  %v1673_v48 = vmul.f32 0.5, %v7649_v32  ;;  %v1724_v56 = vsel %vm1708_vm14, 1.0, %v8446_v35  ;;  %v5376_v26 = vld [vmem:[#allocation8 + $0xc8] sm:$0xff]  }
 0x377   : > { %v5588_v63 = vpop.eup %5587  ;;  %v2025_v62 = vsub.f32 1.0, %v2009_v52  ;;  %v1898_v8 = vmul.f32 %v7763_v11, %v1882_v39  ;;  %v2091_v38 = vmul.f32 %v2075_v34, %v1485_v29  ;;  %5104 = vmatmul.mubr.bf16.gmra.mrb[92].mxu1 %v8587_v27  ;;  %v1477_v15 = vadd.f32 %v5657_v21, %v8588_v30  ;;  %v8594_v47 = vld [vmem:[#allocation26_spill] sm:$0xff]  ;;  %v8600_v29 = vld [vmem:[#allocation36_spill] sm:$0xff]  ;;  %v8601_v34 = vld [vmem:[#allocation25_spill] sm:$0xff] }
 0x378   : > { %v2012_v23 = vmul.f32 %v5588_v63, %v1932_v41  ;;  %4971 = vmatprep.mubr.bf16.mxu0 %v2097_v49  ;;  %v1676_v16 = vmul.f32 0.5, %v7663_v19  ;;  %vm1706_vm15 = vcmp.ge.f32.partialorder %v7692_v17, 0.0  ;;  %v1488_v6 = vadd.f32 %v5657_v21, %v8589_v7  ;;  %v8590_v19 = vld [vmem:[#allocation57_spill] sm:$0xff]  ;;  %v8603_v39 = vld [vmem:[#allocation32_spill] sm:$0xff]  ;;  %v8604_v63 = vld [vmem:[#allocation35_spill] sm:$0xff] }
 0x379   : > { %v2041_v60 = vmul.f32 %v2025_v62, %v1721_v14  ;;  %v1914_v55 = vadd.f32 0.2548296, %v1898_v8  ;;  %4972 = vmatmul.mubr.bf16.gmra.mrb[8].mxu0 %v2098_v46  ;;  %v1674_v25 = vmul.f32 0.5, %v7675_v4  ;;  %v1480_v5 = vadd.f32 %v5657_v21, %v8590_v19  ;;  %v8595_v46 = vld [vmem:[#allocation37_spill] sm:$0xff]  ;;  %v5377_v21 = vld [vmem:[#allocation8 + $0xd0] sm:$0xff]   ;;  %v5380_v49 = vld [vmem:[#allocation8 + $0xe8] sm:$0xff]  }
 0x37a   : > { %v2028_v33 = vsub.f32 1.0, %v2012_v23  ;;  %5056 = vmatpush3.bf16.msra.mxu0 %v5373_v50  ;;  %v8591_v50 = vld [vmem:[#allocation63_spill] sm:$0xff]  ;;  %v8596_v52 = vpack.c.bf16 %v8594_v47, %v8595_v46  ;;  %v8598_v4 = vld [vmem:[#allocation29_spill] sm:$0xff]  ;;  %v8602_v41 = vpack.c.bf16 %v8600_v29, %v8601_v34  ;;  %v8605_v14 = vpack.c.bf16 %v8603_v39, %v8604_v63  ;;  %v8606_v23 = vld [vmem:[#allocation40_spill] sm:$0xff] }
 0x37b   : > { %v2057_v0 = vadd.f32 1.0, %v2041_v60  ;;  %v1930_v42 = vmul.f32 %v7763_v11, %v1914_v55  ;;  %5057 = vmatprep.subr.bf16.mxu0 %v5374_v59  ;;  %v1722_v11 = vsel %vm1706_vm15, 1.0, %v8446_v35  ;;  %v8593_v1 = vpack.c.bf16 %v8591_v50, %v8592_v20  ;;  %v5379_v62 = vld [vmem:[#allocation8 + $0xe0] sm:$0xff]   ;;  %v8607_v8 = vld [vmem:[#allocation31_spill] sm:$0xff] }
 0x37c   : > { %v2044_v9 = vmul.f32 %v2028_v33, %v1724_v56  ;;  %v5590_v28 = vpop.eup %5589  ;;  %v8599_v53 = vpack.c.bf16 %v8597_v3, %v8598_v4  ;;  %v8610_v60 = vld [vmem:[#allocation33_spill] sm:$0xff]  ;;  %v5381_v55 = vld [vmem:[#allocation8 + $0xf0] sm:$0xff]  }
 0x37d   : > { %v2073_v54 = vmul.f32 %v2057_v0, %v1673_v48  ;;  %v2010_v43 = vmul.f32 %v5590_v28, %v1930_v42  ;;  %v5382_v48 = vld [vmem:[#allocation8 + $0xf8] sm:$0xff]   ;;  %v8612_v0 = vld [vmem:[#allocation27_spill] sm:$0xff]  ;;  %v8613_v56 = vld [vmem:[#allocation61_spill] sm:$0xff] }
 0x37e   : > { %v2060_v12 = vadd.f32 1.0, %v2044_v9  ;;  %5058 = vmatpush3.bf16.msra.mxu0 %v5374_v59  ;;  %v8609_v59 = vld [vmem:[#allocation28_spill] sm:$0xff]  ;;  %v8614_v9 = vpack.c.bf16 %v8612_v0, %v8613_v56  ;;  %v8615_v42 = vld [vmem:[#allocation17_spill] sm:$0xff]  ;;  %v5392_v28 = vld [vmem:[#allocation9 + $0xc8] sm:$0xff]  }
 0x37f   : > { %v2089_v32 = vmul.f32 %v2073_v54, %v1477_v15  ;;  %v2026_v40 = vsub.f32 1.0, %v2010_v43  ;;  %5107 = vmatprep.subr.bf16.mxu0 %v5375_v45  ;;  %v8611_v33 = vpack.c.bf16 %v8609_v59, %v8610_v60  ;;  %v5393_v30 = vld [vmem:[#allocation9 + $0xd0] sm:$0xff]   ;;  %v7861_v19 = vld [vmem:[%s8354_s2 + $0x3] ss:$0 sm:$0xff] }
 0x380   : > { %v2076_v61 = vmul.f32 %v2060_v12, %v1676_v16  ;;  %v5397_v15 = vld [vmem:[#allocation9 + $0xf0] sm:$0xff]   ;;  %v5398_v16 = vld [vmem:[#allocation9 + $0xf8] sm:$0xff]   ;;  %8619 = vst [vmem:[#allocation49_spill] sm:$0xff] %v7861_v19 }
 0x381   : > { %v2042_v36 = vmul.f32 %v2026_v40, %v1722_v11 }
 0x382   : > { %v2092_v18 = vmul.f32 %v2076_v61, %v1488_v6 }
 0x383   : > { %v2058_v44 = vadd.f32 1.0, %v2042_v36 }
 0x384   : > { %v2100_v58 = vpack.c.bf16 %v2092_v18, %v2091_v38  ;;  %v8608_v38 = vpack.c.bf16 %v8606_v23, %v8607_v8 }
 0x385   : > { %v2074_v37 = vmul.f32 %v2058_v44, %v1674_v25  ;;  %v7856_v44 = vld [vmem:[%s8356_s4 + $0x3] ss:$0 sm:$0xff] }
 0x387   : > { %v2090_v17 = vmul.f32 %v2074_v37, %v1480_v5 }
 0x389   : > { %v2099_v10 = vpack.c.bf16 %v2090_v17, %v2089_v32 }
 0x38b   : > { %4975 = vmatprep.mubr.bf16.mxu0 %v2099_v10 }
 0x38c   : > { %4976 = vmatmul.mubr.bf16.gmra.mrb[12].mxu0 %v2100_v58 }
 0x38d   : > { %5059 = vmatprep.mubr.bf16.mxu0 %v8593_v1 }
 0x394   : > { %5060 = vmatmul.mubr.bf16.vlgmr.msra.gmra.mrb[0].mxu0 %v8596_v52 }
 0x395   : > { %5063 = vmatprep.mubr.bf16.mxu0 %v8599_v53  ;;  %5108 = vmatpush3.bf16.msra.mxu0 %v5375_v45  ;;  %v5391_v45 = vld [vmem:[#allocation9 + $0xc0] sm:$0xff]  }
 0x396   : > { %5109 = vmatprep.subr.bf16.mxu0 %v5376_v26 }
 0x399   : > { %5110 = vmatpush3.bf16.msra.mxu0 %v5376_v26 }
 0x39a   : > { %5111 = vmatprep.subr.bf16.mxu0 %v5377_v21 }
 0x39c   : > { %5064 = vmatmul.mubr.bf16.gmra.mrb[4].mxu0 %v8602_v41 }
 0x39d   : > { %5067 = vmatprep.mubr.bf16.mxu0 %v8605_v14  ;;  %5112 = vmatpush3.bf16.msra.mxu0 %v5377_v21 }
 0x39e   : > { %5113 = vmatprep.subr.bf16.mxu0 %v5378_v22 }
 0x3a1   : > { %5114 = vmatpush3.bf16.msra.mxu0 %v5378_v22 }
 0x3a2   : > { %5115 = vmatprep.subr.bf16.mxu0 %v5379_v62 }
 0x3a4   : > { %5068 = vmatmul.mubr.bf16.gmra.mrb[8].mxu0 %v8608_v38 }
 0x3a5   : > { %5071 = vmatprep.mubr.bf16.mxu0 %v8611_v33  ;;  %5116 = vmatpush3.bf16.msra.mxu0 %v5379_v62 }
 0x3a6   : > { %5117 = vmatprep.subr.bf16.mxu0 %v5380_v49 }
 0x3a9   : > { %5118 = vmatpush3.bf16.msra.mxu0 %v5380_v49 }
 0x3aa   : > { %5119 = vmatprep.subr.bf16.mxu0 %v5381_v55 }
 0x3ac   : > { %5072 = vmatmul.mubr.bf16.gmra.mrb[12].mxu0 %v8614_v9 }
 0x3ad   : > { %5120 = vmatpush3.bf16.msra.mxu0 %v5381_v55  ;;  %5123 = vmatprep.mubr.bf16.mxu0 %v8615_v42 }
 0x3ae   : > { %5121 = vmatprep.subr.bf16.mxu0 %v5382_v48 }
 0x3b1   : > { %5122 = vmatpush3.bf16.msra.mxu0 %v5382_v48 }
 0x3b2   : > { %5139 = vmatprep.subr.bf16.mxu0 %v5391_v45 }
 0x3b4   : > { %5124 = vmatmul.mubr.bf16.vlgmr.msra.gmra.mrb[32].mxu0 %v8574_v2  ;;  %v5394_v2 = vld [vmem:[#allocation9 + $0xd8] sm:$0xff]  }
 0x3b5   : > { %5127 = vmatprep.mubr.bf16.mxu0 %v8576_v24  ;;  %5140 = vmatpush3.bf16.msra.mxu0 %v5391_v45  ;;  %v5395_v24 = vld [vmem:[#allocation9 + $0xe0] sm:$0xff]  }
 0x3b6   : > { %5141 = vmatprep.subr.bf16.mxu0 %v5392_v28 }
 0x3b9   : > { %5142 = vmatpush3.bf16.msra.mxu0 %v5392_v28 }
 0x3ba   : > { %5143 = vmatprep.subr.bf16.mxu0 %v5393_v30 }
 0x3bc   : > { %5128 = vmatmul.mubr.bf16.gmra.mrb[36].mxu0 %v8580_v57 }
 0x3bd   : > { %5131 = vmatprep.mubr.bf16.mxu0 %v8581_v31  ;;  %5144 = vmatpush3.bf16.msra.mxu0 %v5393_v30  ;;  %v5396_v31 = vld [vmem:[#allocation9 + $0xe8] sm:$0xff]  }
 0x3be   : > { %5145 = vmatprep.subr.bf16.mxu0 %v5394_v2 }
 0x3c1   : > { %5146 = vmatpush3.bf16.msra.mxu0 %v5394_v2 }
 0x3c2   : > { %5147 = vmatprep.subr.bf16.mxu0 %v5395_v24 }
 0x3c4   : > { %5132 = vmatmul.mubr.bf16.gmra.mrb[40].mxu0 %v8582_v51 }
 0x3c5   : > { %5135 = vmatprep.mubr.bf16.mxu0 %v8584_v13  ;;  %5148 = vmatpush3.bf16.msra.mxu0 %v5395_v24 }
 0x3c6   : > { %5149 = vmatprep.subr.bf16.mxu0 %v5396_v31 }
 0x3c9   : > { %5150 = vmatpush3.bf16.msra.mxu0 %v5396_v31 }
 0x3ca   : > { %5151 = vmatprep.subr.bf16.mxu0 %v5397_v15 }
 0x3cc   : > { %5136 = vmatmul.mubr.bf16.gmra.mrb[44].mxu0 %v8587_v27 }
 0x3cd   : > { %5152 = vmatpush3.bf16.msra.mxu0 %v5397_v15 }
 0x3ce   : > { %5153 = vmatprep.subr.bf16.mxu0 %v5398_v16 }
 0x3d1   : > { %5154 = vmatpush3.bf16.msra.mxu0 %v5398_v16 }
 0x42d   : > { %v5093_v57 = vpop.f32.mrb[80].mxu1 }
 0x42e   : > { %v3408_v51 = vpop.f32.mrb[81].mxu1  ;;  %v7867_v26 = vadd.f32 %v5093_v57, %v7861_v19 }
 0x42f   : > { %v5094_v13 = vpop.f32.mrb[82].mxu1  ;;  %v7870_v47 = vadd.f32 %v7861_v19, %v3408_v51 }
 0x430   : > { %v3411_v27 = vpop.f32.mrb[83].mxu1  ;;  %v7875_v52 = vadd.f32 %v5094_v13, %v7861_v19 }
 0x431   : > { %v7878_v3 = vadd.f32 %v7861_v19, %v3411_v27 }
 0x437   : > { %v5097_v54 = vpop.f32.mrb[84].mxu1 }
 0x438   : > { %v3424_v12 = vpop.f32.mrb[85].mxu1  ;;  %v7881_v4 = vadd.f32 %v5097_v54, %v7861_v19 }
 0x439   : > { %v5098_v43 = vpop.f32.mrb[86].mxu1  ;;  %v7887_v29 = vadd.f32 %v7861_v19, %v3424_v12 }
 0x43a   : > { %v3427_v32 = vpop.f32.mrb[87].mxu1  ;;  %v7891_v41 = vadd.f32 %v5098_v43, %v7861_v19 }
 0x43b   : > { %8620 = vst [vmem:[#allocation50_spill] sm:$0xff] %v7887_v29  ;;  %v7894_v39 = vadd.f32 %v7861_v19, %v3427_v32 }
 0x43c   : > { %8621 = vst [vmem:[#allocation51_spill] sm:$0xff] %v7891_v41 }
 0x43d   : > { %8622 = vst [vmem:[#allocation52_spill] sm:$0xff] %v7894_v39 }
 0x43f   : > { %v5101_v7 = vpop.f32.mrb[88].mxu1 }
 0x440   : > { %v3440_v6 = vpop.f32.mrb[89].mxu1  ;;  %v7897_v63 = vadd.f32 %v5101_v7, %v7861_v19 }
 0x441   : > { %v5102_v61 = vpop.f32.mrb[90].mxu1  ;;  %v7900_v49 = vadd.f32 %v7861_v19, %v3440_v6 }
 0x442   : > { %v3443_v40 = vpop.f32.mrb[91].mxu1  ;;  %8623 = vst [vmem:[#allocation53_spill] sm:$0xff] %v7897_v63  ;;  %v7903_v23 = vadd.f32 %v5102_v61, %v7861_v19 }
 0x443   : > { %8624 = vst [vmem:[#allocation45_spill] sm:$0xff] %v7900_v49  ;;  %v7907_v60 = vadd.f32 %v7861_v19, %v3443_v40 }
 0x444   : > { %8625 = vst [vmem:[#allocation59_spill] sm:$0xff] %v7903_v23 }
 0x445   : > { %8626 = vst [vmem:[#allocation41_spill] sm:$0xff] %v7907_v60 }
 0x44a   : > { %v7845_v11 = vpop.f32.mrb[92].mxu1 }
 0x44b   : > { %v7847_v36 = vpop.f32.mrb[93].mxu1 }
 0x44c   : > { %8616 = vst [vmem:[#allocation46_spill] sm:$0xff] %v7847_v36  ;;  %v7849_v18 = vpop.f32.mrb[94].mxu1 }
 0x44d   : > { %8617 = vst [vmem:[#allocation47_spill] sm:$0xff] %v7849_v18  ;;  %v7851_v25 = vpop.f32.mrb[95].mxu1 }
 0x44e   : > { %8618 = vst [vmem:[#allocation48_spill] sm:$0xff] %v7851_v25 }
 0x487   : > { %v5125_v58 = vpop.f32.mrb[32].mxu0 }
 0x488   : > { %v3587_v5 = vadd.f32 %v5125_v58, %v7856_v44  ;;  %v3578_v37 = vpop.f32.mrb[33].mxu0 }
 0x489   : > { %v3579_v17 = vadd.f32 %v7856_v44, %v3578_v37  ;;  %v5126_v10 = vpop.f32.mrb[34].mxu0 }
 0x48a   : > { %v3659_v50 = vmul.f32 0.70710677, %v3587_v5  ;;  %v3590_v20 = vadd.f32 %v5126_v10, %v7856_v44  ;;  %v3581_v1 = vpop.f32.mrb[35].mxu0  ;;  %v7909_v30 = vmul.f32 0.5, %v3587_v5 }
 0x48b   : > { %v7872_v46 = vmul.f32 0.70710677, %v3579_v17  ;;  %v3582_v22 = vadd.f32 %v7856_v44, %v3581_v1  ;;  %v7911_v2 = vmul.f32 0.5, %v3579_v17  ;;  %v7930_v17 = vadd.f32 %v7845_v11, %v7861_v19 }
 0x48c   : > { %v3707_v53 = vand.u32 2147483647, %v3659_v50  ;;  %v7883_v21 = vmul.f32 0.70710677, %v3590_v20  ;;  %vm3675_vm0 = vcmp.ge.f32.partialorder %v3659_v50, 0.0  ;;  %v7913_v31 = vmul.f32 0.5, %v3590_v20 }
 0x48d   : > { %v3705_v34 = vand.u32 2147483647, %v7872_v46  ;;  %v3658_v48 = vmul.f32 0.70710677, %v3582_v22  ;;  %v7917_v15 = vsel %vm3675_vm0, 1.0, %v8446_v35  ;;  %vm3673_vm1 = vcmp.ge.f32.partialorder %v7872_v46, 0.0 }
 0x48e   : > { %v3723_v14 = vmul.f32 0.3275911, %v3707_v53  ;;  %v3915_v62 = vsub.f32 0.0, %v3707_v53  ;;  %v3708_v59 = vand.u32 2147483647, %v7883_v21  ;;  %vm3676_vm2 = vcmp.ge.f32.partialorder %v7883_v21, 0.0 }
 0x48f   : > { %v3721_v8 = vmul.f32 0.3275911, %v3705_v34  ;;  %v3913_v38 = vsub.f32 0.0, %v3705_v34  ;;  %v5129_v0 = vpop.f32.mrb[36].mxu0  ;;  %v3706_v24 = vand.u32 2147483647, %v3658_v48 }
 0x490   : > { %v3739_v33 = vadd.f32 1.0, %v3723_v14  ;;  %v3931_v55 = vmul.f32 %v3915_v62, %v3707_v53  ;;  %v3724_v42 = vmul.f32 0.3275911, %v3708_v59  ;;  %v3916_v45 = vsub.f32 0.0, %v3708_v59  ;;  %v3594_v28 = vpop.f32.mrb[37].mxu0  ;;  %8627 = vst [vmem:[#allocation34_spill] sm:$0xff] %v7930_v17 }
 0x491   : > { %v3737_v56 = vadd.f32 1.0, %v3721_v8  ;;  %v3929_v9 = vmul.f32 %v3913_v38, %v3705_v34  ;;  %v5130_v57 = vpop.f32.mrb[38].mxu0  ;;  %v3722_v54 = vmul.f32 0.3275911, %v3706_v24  ;;  %v3914_v16 = vsub.f32 0.0, %v3706_v24 }
 0x492   : > { %5591 = vrcp.f32 %v3739_v33  ;;  %v3740_v51 = vadd.f32 1.0, %v3724_v42  ;;  %v3932_v13 = vmul.f32 %v3916_v45, %v3708_v59  ;;  %v3597_v27 = vpop.f32.mrb[39].mxu0  ;;  %v3949_v12 = vmul.f32 1.442695, %v3931_v55 }
 0x493   : > { %5593 = vrcp.f32 %v3737_v56  ;;  %v3945_v43 = vmul.f32 1.442695, %v3929_v9  ;;  %v3603_v32 = vadd.f32 %v5129_v0, %v7856_v44  ;;  %v3595_v7 = vadd.f32 %v7856_v44, %v3594_v28 }
 0x494   : > { %5595 = vrcp.f32 %v3740_v51  ;;  %v3738_v6 = vadd.f32 1.0, %v3722_v54  ;;  %v3930_v61 = vmul.f32 %v3914_v16, %v3706_v24  ;;  %v3606_v40 = vadd.f32 %v5130_v57, %v7856_v44 }
 0x495   : > { %v3951_v58 = vmul.f32 1.442695, %v3932_v13  ;;  %v7924_v5 = vmul.f32 0.70710677, %v3603_v32  ;;  %vm3674_vm3 = vcmp.ge.f32.partialorder %v3658_v48, 0.0  ;;  %v7934_v1 = vmul.f32 0.5, %v3582_v22 }
 0x496   : > { %5597 = vrcp.f32 %v3738_v6  ;;  %v3947_v10 = vmul.f32 1.442695, %v3930_v61  ;;  %v3661_v50 = vmul.f32 0.70710677, %v3595_v7  ;;  %v7937_v34 = vmul.f32 0.70710677, %v3606_v40 }
 0x497   : > { %v7926_v37 = vpop.f32.mrb[40].mxu0  ;;  %5599 = vpow2.f32 %v3949_v12  ;;  %v3711_v53 = vand.u32 2147483647, %v7924_v5  ;;  %v7944_v11 = vsel %vm3673_vm1, 1.0, %v8446_v35  ;;  %v7949_v62 = vsel %vm3676_vm2, 1.0, %v8446_v35 }
 0x498   : > { %v7932_v20 = vpop.f32.mrb[41].mxu0  ;;  %5601 = vpow2.f32 %v3945_v43  ;;  %v3709_v8 = vand.u32 2147483647, %v3661_v50  ;;  %v7955_v38 = vsel %vm3674_vm3, 1.0, %v8446_v35  ;;  %v7957_v59 = vmul.f32 0.5, %v3603_v32 }
 0x499   : > { %v7939_v14 = vpop.f32.mrb[42].mxu0  ;;  %5603 = vpow2.f32 %v3951_v58  ;;  %v3727_v33 = vmul.f32 0.3275911, %v3711_v53  ;;  %v3919_v55 = vsub.f32 0.0, %v3711_v53  ;;  %v7961_v0 = vmul.f32 0.5, %v3595_v7 }
 0x49a   : > { %v7951_v22 = vpop.f32.mrb[43].mxu0  ;;  %v3725_v56 = vmul.f32 0.3275911, %v3709_v8  ;;  %v3712_v21 = vand.u32 2147483647, %v7937_v34  ;;  %5605 = vpow2.f32 %v3947_v10  ;;  %v3598_v48 = vadd.f32 %v7856_v44, %v3597_v27 }
 0x49b   : > { %v3743_v45 = vadd.f32 1.0, %v3727_v33  ;;  %v3917_v57 = vsub.f32 0.0, %v3709_v8  ;;  %vm3679_vm4 = vcmp.ge.f32.partialorder %v7924_v5, 0.0  ;;  %v7970_v54 = vmul.f32 0.5, %v3606_v40 }
 0x49c   : > { %v7959_v46 = vpop.eup %5591  ;;  %v3741_v24 = vadd.f32 1.0, %v3725_v56  ;;  %v3728_v51 = vmul.f32 0.3275911, %v3712_v21  ;;  %v3935_v32 = vmul.f32 %v3919_v55, %v3711_v53  ;;  %vm3677_vm5 = vcmp.ge.f32.partialorder %v3661_v50, 0.0 }
 0x49d   : > { %v7964_v9 = vpop.eup %5593  ;;  %v3771_v42 = vmul.f32 1.0614054, %v7959_v46  ;;  %5607 = vrcp.f32 %v3743_v45  ;;  %8628 = vst [vmem:[#allocation60_spill] sm:$0xff] %v7970_v54  ;;  %v3920_v58 = vsub.f32 0.0, %v3712_v21  ;;  %v3933_v56 = vmul.f32 %v3917_v57, %v3709_v8 }
 0x49e   : > { %v3769_v28 = vmul.f32 1.0614054, %v7964_v9  ;;  %v7974_v12 = vpop.eup %5595  ;;  %5609 = vrcp.f32 %v3741_v24  ;;  %v3744_v7 = vadd.f32 1.0, %v3728_v51  ;;  %vm3680_vm6 = vcmp.ge.f32.partialorder %v7937_v34, 0.0 }
 0x49f   : > { %v3787_v13 = vadd.f32 -1.4531521, %v3771_v42  ;;  %v7972_v16 = vpop.f32.mrb[44].mxu0  ;;  %v3772_v61 = vmul.f32 1.0614054, %v7974_v12  ;;  %v8000_v57 = vsel %vm3677_vm5, 1.0, %v8446_v35  ;;  %v3936_v18 = vmul.f32 %v3920_v58, %v3712_v21 }
 0x4a0   : > { %v3785_v43 = vadd.f32 -1.4531521, %v3769_v28  ;;  %v7976_v27 = vpop.f32.mrb[45].mxu0  ;;  %v7982_v40 = vpop.eup %5597  ;;  %v3662_v53 = vmul.f32 0.70710677, %v3598_v48  ;;  %5611 = vrcp.f32 %v3744_v7  ;;  %v8010_v5 = vsel %vm3680_vm6, 1.0, %v8446_v35 }
 0x4a1   : > { %v3803_v6 = vmul.f32 %v7959_v46, %v3787_v13  ;;  %v7980_v10 = vpop.f32.mrb[46].mxu0  ;;  %v7988_v42 = vpop.eup %5599  ;;  %v3788_v28 = vadd.f32 -1.4531521, %v3772_v61  ;;  %v3770_v24 = vmul.f32 1.0614054, %v7982_v40  ;;  %v3619_v58 = vadd.f32 %v7926_v37, %v7856_v44 }
 0x4a2   : > { %v3801_v33 = vmul.f32 %v7964_v9, %v3785_v43  ;;  %v7986_v55 = vpop.f32.mrb[47].mxu0  ;;  %v7991_v51 = vpop.eup %5601  ;;  %v7996_v43 = vsel %vm3679_vm4, 1.0, %v8446_v35  ;;  %v3957_v8 = vmul.f32 1.442695, %v3935_v32  ;;  %v8012_v32 = vmul.f32 0.5, %v3598_v48 }
 0x4a3   : > { %v3819_v45 = vadd.f32 1.4214138, %v3803_v6  ;;  %v8002_v25 = vpop.eup %5603  ;;  %v3804_v61 = vmul.f32 %v7974_v12, %v3788_v28  ;;  %v3786_v7 = vadd.f32 -1.4531521, %v3770_v24  ;;  %v3710_v50 = vand.u32 2147483647, %v3662_v53 }
 0x4a4   : > { %v3817_v13 = vadd.f32 1.4214138, %v3801_v33  ;;  %8629 = vst [vmem:[#allocation18_spill] sm:$0xff] %v8012_v32  ;;  %v8014_v17 = vpop.eup %5605  ;;  %v3953_v60 = vmul.f32 1.442695, %v3933_v56  ;;  %5613 = vpow2.f32 %v3957_v8  ;;  %vm3678_vm7 = vcmp.ge.f32.partialorder %v3662_v53, 0.0 }
 0x4a5   : > { %v3835_v6 = vmul.f32 %v7959_v46, %v3819_v45  ;;  %v3820_v36 = vadd.f32 1.4214138, %v3804_v61  ;;  %v3802_v45 = vmul.f32 %v7982_v40, %v3786_v7  ;;  %v3726_v21 = vmul.f32 0.3275911, %v3710_v50 }
 0x4a6   : > { %v3833_v33 = vmul.f32 %v7964_v9, %v3817_v13  ;;  %v3959_v23 = vmul.f32 1.442695, %v3936_v18 }
 0x4a7   : > { %v3851_v19 = vadd.f32 -0.28449672, %v3835_v6  ;;  %v8019_v24 = vpop.eup %5607  ;;  %v3836_v48 = vmul.f32 %v7974_v12, %v3820_v36  ;;  %v3818_v13 = vadd.f32 1.4214138, %v3802_v45  ;;  %v3742_v8 = vadd.f32 1.0, %v3726_v21 }
 0x4a8   : > { %v3849_v28 = vadd.f32 -0.28449672, %v3833_v33  ;;  %v8023_v49 = vpop.eup %5609  ;;  %v3775_v56 = vmul.f32 1.0614054, %v8019_v24  ;;  %v8031_v36 = vmul.f32 0.70710677, %v3619_v58 }
 0x4a9   : > { %v3867_v34 = vmul.f32 %v7959_v46, %v3851_v19  ;;  %v3852_v7 = vadd.f32 -0.28449672, %v3836_v48  ;;  %v3834_v37 = vmul.f32 %v7982_v40, %v3818_v13  ;;  %v3773_v33 = vmul.f32 1.0614054, %v8023_v49 }
 0x4aa   : > { %v3865_v6 = vmul.f32 %v7964_v9, %v3849_v28  ;;  %v3791_v63 = vadd.f32 -1.4531521, %v3775_v56  ;;  %5615 = vrcp.f32 %v3742_v8  ;;  %v8029_v19 = vmul.f32 0.5, %v3619_v58  ;;  %v8033_v18 = vpop.eup %5611 }
 0x4ab   : > { %v3883_v61 = vadd.f32 0.2548296, %v3867_v34  ;;  %v3868_v28 = vmul.f32 %v7974_v12, %v3852_v7  ;;  %v3850_v39 = vadd.f32 -0.28449672, %v3834_v37  ;;  %v3789_v41 = vadd.f32 -1.4531521, %v3773_v33 }
 0x4ac   : > { %8630 = vst [vmem:[#allocation58_spill] sm:$0xff] %v8029_v19  ;;  %v3881_v45 = vadd.f32 0.2548296, %v3865_v6  ;;  %v3807_v21 = vmul.f32 %v8019_v24, %v3791_v63  ;;  %v3776_v34 = vmul.f32 1.0614054, %v8033_v18  ;;  %v8040_v48 = vsel %vm3678_vm7, 1.0, %v8446_v35 }
 0x4ad   : > { %v3918_v13 = vsub.f32 0.0, %v3710_v50  ;;  %v3899_v56 = vmul.f32 %v7959_v46, %v3883_v61  ;;  %v3884_v58 = vadd.f32 0.2548296, %v3868_v28  ;;  %v3866_v8 = vmul.f32 %v7982_v40, %v3850_v39 }
 0x4ae   : > { %v3805_v6 = vmul.f32 %v8023_v49, %v3789_v41  ;;  %v3823_v19 = vadd.f32 1.4214138, %v3807_v21  ;;  %5617 = vpow2.f32 %v3953_v60  ;;  %v3792_v7 = vadd.f32 -1.4531521, %v3776_v34  ;;  %v5614_v32 = vpop.eup %5613 }
 0x4af   : > { %v3715_v37 = vand.u32 2147483647, %v8031_v36  ;;  %v3897_v63 = vmul.f32 %v7964_v9, %v3881_v45  ;;  %v3900_v33 = vmul.f32 %v7974_v12, %v3884_v58  ;;  %v3882_v53 = vadd.f32 0.2548296, %v3866_v8 }
 0x4b0   : > { %v3821_v29 = vadd.f32 1.4214138, %v3805_v6  ;;  %v3839_v54 = vmul.f32 %v8019_v24, %v3823_v19  ;;  %v3808_v46 = vmul.f32 %v8033_v18, %v3792_v7  ;;  %5619 = vpow2.f32 %v3959_v23 }
 0x4b1   : > { %v3731_v39 = vmul.f32 0.3275911, %v3715_v37  ;;  %v3979_v41 = vmul.f32 %v7988_v42, %v3899_v56  ;;  %v3934_v61 = vmul.f32 %v3918_v13, %v3710_v50  ;;  %v3611_v28 = vadd.f32 %v7856_v44, %v7932_v20 }
 0x4b2   : > { %v3837_v60 = vmul.f32 %v8023_v49, %v3821_v29  ;;  %v3898_v9 = vmul.f32 %v7982_v40, %v3882_v53  ;;  %v3855_v12 = vadd.f32 -0.28449672, %v3839_v54  ;;  %v3824_v45 = vadd.f32 1.4214138, %v3808_v46 }
 0x4b3   : > { %v3747_v21 = vadd.f32 1.0, %v3731_v39  ;;  %v3977_v34 = vmul.f32 %v7991_v51, %v3897_v63  ;;  %v3980_v19 = vmul.f32 %v8002_v25, %v3900_v33  ;;  %vm3683_vm8 = vcmp.ge.f32.partialorder %v8031_v36, 0.0 }
 0x4b4   : > { %v3853_v58 = vadd.f32 -0.28449672, %v3837_v60  ;;  %v8058_v23 = vpop.eup %5615  ;;  %v3871_v29 = vmul.f32 %v8019_v24, %v3855_v12  ;;  %v3840_v42 = vmul.f32 %v8033_v18, %v3824_v45  ;;  %v3923_v20 = vsub.f32 0.0, %v3715_v37 }
 0x4b5   : > { %5621 = vrcp.f32 %v3747_v21  ;;  %v3995_v50 = vsub.f32 1.0, %v3979_v41  ;;  %v3774_v40 = vmul.f32 1.0614054, %v8058_v23  ;;  %v3955_v13 = vmul.f32 1.442695, %v3934_v61 }
 0x4b6   : > { %v3869_v54 = vmul.f32 %v8023_v49, %v3853_v58  ;;  %v3978_v51 = vmul.f32 %v8014_v17, %v3898_v9  ;;  %v3887_v25 = vadd.f32 0.2548296, %v3871_v29  ;;  %v3856_v56 = vadd.f32 -0.28449672, %v3840_v42 }
 0x4b7   : > { %v3665_v8 = vmul.f32 0.70710677, %v3611_v28  ;;  %v3993_v6 = vsub.f32 1.0, %v3977_v34  ;;  %v3996_v7 = vsub.f32 1.0, %v3980_v19  ;;  %v3790_v33 = vadd.f32 -1.4531521, %v3774_v40 }
 0x4b8   : > { %v3885_v63 = vadd.f32 0.2548296, %v3869_v54  ;;  %v5618_v53 = vpop.eup %5617  ;;  %v3903_v46 = vmul.f32 %v8019_v24, %v3887_v25  ;;  %v3872_v39 = vmul.f32 %v8033_v18, %v3856_v56  ;;  %v3939_v41 = vmul.f32 %v3923_v20, %v3715_v37 }
 0x4b9   : > { %v3622_v60 = vadd.f32 %v7939_v14, %v7856_v44  ;;  %v3806_v61 = vmul.f32 %v8058_v23, %v3790_v33  ;;  %5623 = vpow2.f32 %v3955_v13  ;;  %v8073_v17 = vsel %vm3683_vm8, 1.0, %v8446_v35 }
 0x4ba   : > { %v3713_v9 = vand.u32 2147483647, %v3665_v8  ;;  %v5620_v12 = vpop.eup %5619  ;;  %v8076_v45 = vmul.f32 %v3995_v50, %v7917_v15  ;;  %v3994_v24 = vsub.f32 1.0, %v3978_v51  ;;  %v3901_v21 = vmul.f32 %v8023_v49, %v3885_v63 }
 0x4bb   : > { %v3888_v37 = vadd.f32 0.2548296, %v3872_v39  ;;  %v8080_v34 = vmul.f32 %v3993_v6, %v7944_v11  ;;  %v3822_v14 = vadd.f32 1.4214138, %v3806_v61  ;;  %v8082_v19 = vmul.f32 0.5, %v3611_v28 }
 0x4bc   : > { %v3729_v58 = vmul.f32 0.3275911, %v3713_v9  ;;  %v8085_v36 = vmul.f32 %v3996_v7, %v7949_v62  ;;  %v3983_v29 = vmul.f32 %v5614_v32, %v3903_v46  ;;  %v3965_v42 = vmul.f32 1.442695, %v3939_v41 }
 0x4bd   : > { %v3668_v20 = vmul.f32 0.70710677, %v3622_v60  ;;  %v3904_v15 = vmul.f32 %v8033_v18, %v3888_v37  ;;  %v3838_v50 = vmul.f32 %v8058_v23, %v3822_v14  ;;  %vm3681_vm9 = vcmp.ge.f32.partialorder %v3665_v8, 0.0 }
 0x4be   : > { %v3745_v49 = vadd.f32 1.0, %v3729_v58  ;;  %v8092_v11 = vmul.f32 %v3994_v24, %v7955_v38  ;;  %v3981_v28 = vmul.f32 %v5618_v53, %v3901_v21  ;;  %v3614_v62 = vadd.f32 %v7856_v44, %v7951_v22 }
 0x4bf   : > { %v8089_v54 = vpop.eup %5621  ;;  %v3716_v40 = vand.u32 2147483647, %v3668_v20  ;;  %v3854_v13 = vadd.f32 -0.28449672, %v3838_v50  ;;  %v3921_v51 = vsub.f32 0.0, %v3713_v9  ;;  %v3999_v18 = vsub.f32 1.0, %v3983_v29 }
 0x4c0   : > { %v3779_v32 = vmul.f32 1.0614054, %v8089_v54  ;;  %5625 = vrcp.f32 %v3745_v49  ;;  %v8098_v25 = vsel %vm3681_vm9, 1.0, %v8446_v35  ;;  %v3984_v8 = vmul.f32 %v5620_v12, %v3904_v15 }
 0x4c1   : > { %5627 = vpow2.f32 %v3965_v42  ;;  %v3732_v56 = vmul.f32 0.3275911, %v3716_v40  ;;  %v3870_v38 = vmul.f32 %v8058_v23, %v3854_v13  ;;  %v3924_v7 = vsub.f32 0.0, %v3716_v40 }
 0x4c2   : > { %v3795_v6 = vadd.f32 -1.4531521, %v3779_v32  ;;  %v3997_v63 = vsub.f32 1.0, %v3981_v28  ;;  %v8101_v33 = vmul.f32 0.5, %v3622_v60  ;;  %v3666_v53 = vmul.f32 0.70710677, %v3614_v62 }
 0x4c3   : > { %v3748_v22 = vadd.f32 1.0, %v3732_v56  ;;  %v5624_v46 = vpop.eup %5623  ;;  %v3886_v39 = vadd.f32 0.2548296, %v3870_v38  ;;  %v3937_v61 = vmul.f32 %v3921_v51, %v3713_v9  ;;  %v8106_v24 = vadd.f32 %v7972_v16, %v7856_v44 }
 0x4c4   : > { %v3811_v41 = vmul.f32 %v8089_v54, %v3795_v6  ;;  %vm3684_vm10 = vcmp.ge.f32.partialorder %v3668_v20, 0.0  ;;  %v3940_v12 = vmul.f32 %v3924_v7, %v3716_v40  ;;  %v3714_v21 = vand.u32 2147483647, %v3666_v53 }
 0x4c5   : > { %5629 = vrcp.f32 %v3748_v22  ;;  %v8109_v37 = vmul.f32 %v3999_v18, %v7996_v43  ;;  %v4000_v60 = vsub.f32 1.0, %v3984_v8  ;;  %v8113_v58 = vadd.f32 %v7856_v44, %v7976_v27 }
 0x4c6   : > { %v3827_v14 = vadd.f32 1.4214138, %v3811_v41  ;;  %v8116_v29 = vmul.f32 %v3997_v63, %v8000_v57  ;;  %v3902_v9 = vmul.f32 %v8058_v23, %v3886_v39  ;;  %v3730_v16 = vmul.f32 0.3275911, %v3714_v21 }
 0x4c7   : > { %v3671_v42 = vmul.f32 0.70710677, %v8106_v24  ;;  %v3961_v15 = vmul.f32 1.442695, %v3937_v61  ;;  %v8122_v43 = vsel %vm3684_vm10, 1.0, %v8446_v35  ;;  %v3922_v50 = vsub.f32 0.0, %v3714_v21 }
 0x4c8   : > { %v3843_v20 = vmul.f32 %v8089_v54, %v3827_v14  ;;  %v3967_v49 = vmul.f32 1.442695, %v3940_v12  ;;  %v8124_v28 = vmul.f32 0.5, %v3614_v62  ;;  %v3746_v27 = vadd.f32 1.0, %v3730_v16 }
 0x4c9   : > { %v3719_v40 = vand.u32 2147483647, %v3671_v42  ;;  %v8129_v57 = vmul.f32 %v4000_v60, %v8010_v5  ;;  %vm3682_vm11 = vcmp.ge.f32.partialorder %v3666_v53, 0.0  ;;  %v8132_v32 = vmul.f32 0.70710677, %v8113_v58 }
 0x4ca   : > { %v8126_v13 = vpop.eup %5625  ;;  %v3859_v23 = vadd.f32 -0.28449672, %v3843_v20  ;;  %v3982_v18 = vmul.f32 %v5624_v46, %v3902_v9  ;;  %5631 = vrcp.f32 %v3746_v27  ;;  %v3938_v38 = vmul.f32 %v3922_v50, %v3714_v21 }
 0x4cb   : > { %v5628_v51 = vpop.eup %5627  ;;  %v3777_v56 = vmul.f32 1.0614054, %v8126_v13  ;;  %v3735_v8 = vmul.f32 0.3275911, %v3719_v40  ;;  %5633 = vpow2.f32 %v3961_v15  ;;  %v3927_v6 = vsub.f32 0.0, %v3719_v40 }
 0x4cc   : > { %v3875_v62 = vmul.f32 %v8089_v54, %v3859_v23  ;;  %5635 = vpow2.f32 %v3967_v49  ;;  %v8137_v5 = vsel %vm3682_vm11, 1.0, %v8446_v35  ;;  %v3717_v39 = vand.u32 2147483647, %v8132_v32 }
 0x4cd   : > { %v3793_v7 = vadd.f32 -1.4531521, %v3777_v56  ;;  %v3751_v63 = vadd.f32 1.0, %v3735_v8  ;;  %v3943_v53 = vmul.f32 %v3927_v6, %v3719_v40  ;;  %v8142_v46 = vadd.f32 %v7980_v10, %v7856_v44 }
 0x4ce   : > { %v3891_v22 = vadd.f32 0.2548296, %v3875_v62  ;;  %v3998_v61 = vsub.f32 1.0, %v3982_v18  ;;  %vm3687_vm12 = vcmp.ge.f32.partialorder %v3671_v42, 0.0  ;;  %v3963_v14 = vmul.f32 1.442695, %v3938_v38 }
 0x4cf   : > { %v8144_v41 = vpop.eup %5629  ;;  %v3809_v12 = vmul.f32 %v8126_v13, %v3793_v7  ;;  %5637 = vrcp.f32 %v3751_v63  ;;  %v3733_v9 = vmul.f32 0.3275911, %v3717_v39  ;;  %v3925_v20 = vsub.f32 0.0, %v3717_v39 }
 0x4d0   : > { %v3907_v21 = vmul.f32 %v8089_v54, %v3891_v22  ;;  %v3780_v60 = vmul.f32 1.0614054, %v8144_v41  ;;  %v8150_v15 = vmul.f32 0.70710677, %v8142_v46  ;;  %v4027_v10 = vadd.f32 1.0, %v8076_v45 }
 0x4d1   : > { %v3825_v16 = vadd.f32 1.4214138, %v3809_v12  ;;  %v8154_v49 = vsel %vm3687_vm12, 1.0, %v8446_v35  ;;  %v3973_v27 = vmul.f32 1.442695, %v3943_v53  ;;  %v3749_v42 = vadd.f32 1.0, %v3733_v9 }
 0x4d2   : > { %v3796_v50 = vadd.f32 -1.4531521, %v3780_v60  ;;  %v3987_v40 = vmul.f32 %v5628_v51, %v3907_v21  ;;  %v3941_v23 = vmul.f32 %v3925_v20, %v3717_v39  ;;  %v3720_v18 = vand.u32 2147483647, %v8150_v15 }
 0x4d3   : > { %v3841_v54 = vmul.f32 %v8126_v13, %v3825_v16  ;;  %v8159_v56 = vmul.f32 %v3998_v61, %v8040_v48  ;;  %5639 = vrcp.f32 %v3749_v42  ;;  %v8164_v45 = vadd.f32 %v7856_v44, %v7986_v55 }
 0x4d4   : > { %v3812_v8 = vmul.f32 %v8144_v41, %v3796_v50  ;;  %v8166_v62 = vpop.eup %5631  ;;  %5641 = vpow2.f32 %v3963_v14  ;;  %v3736_v51 = vmul.f32 0.3275911, %v3720_v18  ;;  %v4043_v6 = vmul.f32 %v4027_v10, %v7909_v30 }
 0x4d5   : > { %v3857_v38 = vadd.f32 -0.28449672, %v3841_v54  ;;  %v5634_v7 = vpop.eup %5633  ;;  %v3778_v22 = vmul.f32 1.0614054, %v8166_v62  ;;  %5643 = vpow2.f32 %v3973_v27  ;;  %v3928_v48 = vsub.f32 0.0, %v3720_v18 }
 0x4d6   : > { %v3828_v63 = vadd.f32 1.4214138, %v3812_v8  ;;  %v5636_v53 = vpop.eup %5635  ;;  %v4003_v39 = vsub.f32 1.0, %v3987_v40  ;;  %v3969_v12 = vmul.f32 1.442695, %v3941_v23  ;;  %v3752_v44 = vadd.f32 1.0, %v3736_v51 }
 0x4d7   : > { %v3873_v61 = vmul.f32 %v8126_v13, %v3857_v38  ;;  %v3794_v21 = vadd.f32 -1.4531521, %v3778_v22  ;;  %v3944_v60 = vmul.f32 %v3928_v48, %v3720_v18  ;;  %v8173_v14 = vmul.f32 0.70710677, %v8164_v45 }
 0x4d8   : > { %v3844_v55 = vmul.f32 %v8144_v41, %v3828_v63  ;;  %5645 = vrcp.f32 %v3752_v44  ;;  %v8178_v16 = vmul.f32 %v4043_v6, %v7867_v26  ;;  %v4025_v20 = vadd.f32 1.0, %v8080_v34 }
 0x4d9   : > { %v8175_v30 = vpop.eup %5637  ;;  %v3889_v9 = vadd.f32 0.2548296, %v3873_v61  ;;  %v3810_v50 = vmul.f32 %v8166_v62, %v3794_v21  ;;  %v3975_v42 = vmul.f32 1.442695, %v3944_v60  ;;  %v8184_v40 = vmul.f32 %v4003_v39, %v8073_v17 }
 0x4da   : > { %v3860_v10 = vadd.f32 -0.28449672, %v3844_v55  ;;  %v3783_v27 = vmul.f32 1.0614054, %v8175_v30  ;;  %v3718_v23 = vand.u32 2147483647, %v8173_v14  ;;  %v4041_v18 = vmul.f32 %v4025_v20, %v7911_v2 }
 0x4db   : > { %v3905_v54 = vmul.f32 %v8126_v13, %v3889_v9  ;;  %v3826_v8 = vadd.f32 1.4214138, %v3810_v50  ;;  %5647 = vpow2.f32 %v3969_v12  ;;  %v4028_v9 = vadd.f32 1.0, %v8085_v36 }
 0x4dc   : > { %v3876_v26 = vmul.f32 %v8144_v41, %v3860_v10  ;;  %v3799_v38 = vadd.f32 -1.4531521, %v3783_v27  ;;  %5649 = vpow2.f32 %v3975_v42  ;;  %v3734_v51 = vmul.f32 0.3275911, %v3718_v23 }
 0x4dd   : > { %v3985_v34 = vmul.f32 %v5634_v7, %v3905_v54  ;;  %v3926_v6 = vsub.f32 0.0, %v3718_v23  ;;  %v8190_v63 = vpop.eup %5639  ;;  %v3842_v17 = vmul.f32 %v8166_v62, %v3826_v8  ;;  %v4057_v48 = vmul.f32 %v4041_v18, %v7870_v47 }
 0x4de   : > { %v3892_v22 = vadd.f32 0.2548296, %v3876_v26  ;;  %v3815_v13 = vmul.f32 %v8175_v30, %v3799_v38  ;;  %v5642_v39 = vpop.eup %5641  ;;  %v3781_v61 = vmul.f32 1.0614054, %v8190_v63  ;;  %v3750_v44 = vadd.f32 1.0, %v3734_v51 }
 0x4df   : > { %v4001_v2 = vsub.f32 1.0, %v3985_v34  ;;  %v3942_v55 = vmul.f32 %v3926_v6, %v3718_v23  ;;  %v5644_v12 = vpop.eup %5643  ;;  %v3858_v21 = vadd.f32 -0.28449672, %v3842_v17  ;;  %v4044_v54 = vmul.f32 %v4028_v9, %v7913_v31 }
 0x4e0   : > { %v3908_v7 = vmul.f32 %v8144_v41, %v3892_v22  ;;  %v3831_v60 = vadd.f32 1.4214138, %v3815_v13  ;;  %v3797_v10 = vadd.f32 -1.4531521, %v3781_v61  ;;  %5651 = vrcp.f32 %v3750_v44 }
 0x4e1   : > { %v8199_v20 = vmul.f32 %v4001_v2, %v8098_v25  ;;  %v3971_v50 = vmul.f32 1.442695, %v3942_v55  ;;  %v3874_v27 = vmul.f32 %v8166_v62, %v3858_v21  ;;  %v4026_v36 = vadd.f32 1.0, %v8092_v11 }
 0x4e2   : > { %v3988_v47 = vmul.f32 %v5636_v53, %v3908_v7  ;;  %v3847_v42 = vmul.f32 %v8175_v30, %v3831_v60  ;;  %v8204_v23 = vpop.eup %5645  ;;  %v3813_v41 = vmul.f32 %v8190_v63, %v3797_v10  ;;  %v4031_v25 = vadd.f32 1.0, %v8109_v37 }
 0x4e3   : > { %5653 = vpow2.f32 %v3971_v50  ;;  %v3890_v26 = vadd.f32 0.2548296, %v3874_v27  ;;  %v4060_v53 = vmul.f32 %v4044_v54, %v7875_v52  ;;  %v3784_v34 = vmul.f32 1.0614054, %v8204_v23  ;;  %v8632_v50 = vld [vmem:[#allocation18_spill] sm:$0xff] }
 0x4e4   : > { %v4004_v18 = vsub.f32 1.0, %v3988_v47  ;;  %v3863_v8 = vadd.f32 -0.28449672, %v3847_v42  ;;  %v3829_v38 = vadd.f32 1.4214138, %v3813_v41  ;;  %v4042_v51 = vmul.f32 %v4026_v36, %v7934_v1 }
 0x4e5   : > { %v4047_v31 = vmul.f32 %v4031_v25, %v7957_v59  ;;  %v5648_v6 = vpop.eup %5647  ;;  %v3906_v17 = vmul.f32 %v8166_v62, %v3890_v26  ;;  %v4074_v37 = vpack.c.bf16 %v4060_v53, %v8178_v16  ;;  %v3800_v2 = vadd.f32 -1.4531521, %v3784_v34  ;;  %v8634_v25 = vld [vmem:[#allocation51_spill] sm:$0xff]  ;;  %v8635_v26 = vld [vmem:[#allocation52_spill] sm:$0xff]  ;;  %v8636_v34 = vld [vmem:[#allocation58_spill] sm:$0xff] }
 0x4e6   : > { %v4020_v22 = vmul.f32 %v4004_v18, %v8122_v43  ;;  %v3879_v11 = vmul.f32 %v8175_v30, %v3863_v8  ;;  %v8217_v13 = vpop.eup %5649  ;;  %v3845_v52 = vmul.f32 %v8190_v63, %v3829_v38  ;;  %v4058_v61 = vmul.f32 %v4042_v51, %v7878_v3 }
 0x4e7   : > { %v4063_v1 = vmul.f32 %v4047_v31, %v7881_v4  ;;  %v3986_v44 = vmul.f32 %v5642_v39, %v3906_v17  ;;  %v4029_v55 = vadd.f32 1.0, %v8116_v29  ;;  %v4032_v43 = vadd.f32 1.0, %v8129_v57  ;;  %v8631_v4 = vld [vmem:[#allocation60_spill] sm:$0xff] }
 0x4e8   : > { %v3895_v59 = vadd.f32 0.2548296, %v3879_v11  ;;  %vm3685_vm13 = vcmp.ge.f32.partialorder %v8132_v32, 0.0  ;;  %v3861_v62 = vadd.f32 -0.28449672, %v3845_v52  ;;  %v3816_v16 = vmul.f32 %v8204_v23, %v3800_v2  ;;  %v8637_v52 = vld [vmem:[#allocation53_spill] sm:$0xff] }
 0x4e9   : > { %v4030_v7 = vadd.f32 1.0, %v8159_v56  ;;  %v4073_v21 = vpack.c.bf16 %v4058_v61, %v4057_v48  ;;  %v4002_v60 = vsub.f32 1.0, %v3986_v44  ;;  %v4045_v3 = vmul.f32 %v4029_v55, %v7961_v0 }
 0x4ea   : > { %v3911_v9 = vmul.f32 %v8175_v30, %v3895_v59  ;;  %v4048_v39 = vmul.f32 %v4032_v43, %v8631_v4  ;;  %v8230_v10 = vpop.eup %5651  ;;  %v3877_v29 = vmul.f32 %v8190_v63, %v3861_v62  ;;  %v3832_v57 = vadd.f32 1.4214138, %v3816_v16  ;;  %v8633_v30 = vld [vmem:[#allocation50_spill] sm:$0xff] }
 0x4eb   : > { %v4046_v47 = vmul.f32 %v4030_v7, %v8632_v50  ;;  %5155 = vmatprep.mubr.bf16.mxu0 %v4073_v21  ;;  %v4035_v27 = vadd.f32 1.0, %v8184_v40  ;;  %v4018_v56 = vmul.f32 %v4002_v60, %v8137_v5  ;;  %v3782_v42 = vmul.f32 1.0614054, %v8230_v10  ;;  %v8639_v21 = vld [vmem:[#allocation59_spill] sm:$0xff] }
 0x4ec   : > { %v3991_v48 = vmul.f32 %v5644_v12, %v3911_v9  ;;  %v4061_v54 = vmul.f32 %v4045_v3, %v8633_v30  ;;  %5156 = vmatmul.mubr.bf16.vlgmr.msra.gmra.mrb[0].mxu0 %v4074_v37  ;;  %v3893_v41 = vadd.f32 0.2548296, %v3877_v29  ;;  %v3848_v36 = vmul.f32 %v8204_v23, %v3832_v57  ;;  %v8640_v9 = vld [vmem:[#allocation41_spill] sm:$0xff]  ;;  %v8643_v30 = vld [vmem:[#allocation34_spill] sm:$0xff] }
 0x4ed   : > { %v5654_v0 = vpop.eup %5653  ;;  %v4064_v18 = vmul.f32 %v4048_v39, %v8634_v25  ;;  %v4062_v8 = vmul.f32 %v4046_v47, %v8635_v26  ;;  %v3798_v38 = vadd.f32 -1.4531521, %v3782_v42  ;;  %v4051_v40 = vmul.f32 %v4035_v27, %v8636_v34  ;;  %v8641_v47 = vld [vmem:[#allocation46_spill] sm:$0xff]  ;;  %v8642_v27 = vld [vmem:[#allocation49_spill] sm:$0xff] }
 0x4ee   : > { %v4007_v53 = vsub.f32 1.0, %v3991_v48  ;;  %v4033_v5 = vadd.f32 1.0, %v8199_v20  ;;  %v3909_v12 = vmul.f32 %v8190_v63, %v3893_v41  ;;  %v3864_v51 = vadd.f32 -0.28449672, %v3848_v36  ;;  %v8638_v63 = vld [vmem:[#allocation45_spill] sm:$0xff] }
 0x4ef   : > { %v4036_v31 = vadd.f32 1.0, %v4020_v22  ;;  %v4034_v17 = vadd.f32 1.0, %v4018_v56  ;;  %v3814_v37 = vmul.f32 %v8230_v10, %v3798_v38  ;;  %v4067_v2 = vmul.f32 %v4051_v40, %v8637_v52  ;;  %v8644_v38 = vld [vmem:[#allocation47_spill] sm:$0xff] }
 0x4f0   : > { %v4023_v11 = vmul.f32 %v4007_v53, %v8154_v49  ;;  %v4049_v61 = vmul.f32 %v4033_v5, %v8082_v19  ;;  %v3989_v44 = vmul.f32 %v5648_v6, %v3909_v12  ;;  %v3880_v59 = vmul.f32 %v8204_v23, %v3864_v51  ;;  %v5658_v53 = vld [vmem:[%s8354_s2 + $0x3] ss:$0 sm:$0xff] }
 0x4f1   : > { %v4052_v55 = vmul.f32 %v4036_v31, %v8101_v33  ;;  %v4050_v20 = vmul.f32 %v4034_v17, %v8124_v28  ;;  %v3830_v43 = vadd.f32 1.4214138, %v3814_v37  ;;  %v4075_v22 = vpack.c.bf16 %v4062_v8, %v4061_v54 }
 0x4f2   : > { %v4065_v62 = vmul.f32 %v4049_v61, %v8638_v63  ;;  %v4076_v16 = vpack.c.bf16 %v4064_v18, %v4063_v1  ;;  %v4005_v7 = vsub.f32 1.0, %v3989_v44  ;;  %v3896_v49 = vadd.f32 0.2548296, %v3880_v59 }
 0x4f3   : > { %v4068_v60 = vmul.f32 %v4052_v55, %v8639_v21  ;;  %v4066_v3 = vmul.f32 %v4050_v20, %v8640_v9  ;;  %v3655_v19 = vmul.f32 0.5, %v8106_v24  ;;  %v3701_v6 = vsel %vm3685_vm13, 1.0, %v8446_v35  ;;  %5159 = vmatprep.mubr.bf16.mxu0 %v4075_v22 }
 0x4f4   : > { %v3846_v33 = vmul.f32 %v8230_v10, %v3830_v43  ;;  %v4039_v28 = vadd.f32 1.0, %v4023_v11  ;;  %v4021_v4 = vmul.f32 %v4005_v7, %v3701_v6  ;;  %v3912_v39 = vmul.f32 %v8204_v23, %v3896_v49  ;;  %5160 = vmatmul.mubr.bf16.gmra.mrb[4].mxu0 %v4076_v16  ;;  %v8645_v11 = vld [vmem:[#allocation48_spill] sm:$0xff] }
 0x4f5   : > { %v4077_v1 = vpack.c.bf16 %v4066_v3, %v4065_v62  ;;  %v4078_v29 = vpack.c.bf16 %v4068_v60, %v4067_v2  ;;  %v3457_v56 = vadd.f32 %v8642_v27, %v8641_v47  ;;  %v3653_v24 = vmul.f32 0.5, %v8113_v58  ;;  %v4587_v2 = vld [vmem:[%s8358_s6] ss:$0 sm:$0xff] }
 0x4f6   : > { %v3862_v57 = vadd.f32 -0.28449672, %v3846_v33  ;;  %v4055_v50 = vmul.f32 %v4039_v28, %v3655_v19  ;;  %vm3688_vm14 = vcmp.ge.f32.partialorder %v8150_v15, 0.0  ;;  %v3992_v32 = vmul.f32 %v8217_v13, %v3912_v39 }
 0x4f7   : > { %v4037_v48 = vadd.f32 1.0, %v4021_v4  ;;  %5163 = vmatprep.mubr.bf16.mxu0 %v4077_v1  ;;  %v3704_v36 = vsel %vm3688_vm14, 1.0, %v8446_v35  ;;  %v3656_v58 = vmul.f32 0.5, %v8142_v46  ;;  %vm3686_vm15 = vcmp.ge.f32.partialorder %v8173_v14, 0.0 }
 0x4f8   : > { %v3878_v42 = vmul.f32 %v8230_v10, %v3862_v57  ;;  %v4071_v23 = vmul.f32 %v4055_v50, %v8643_v30  ;;  %v4008_v54 = vsub.f32 1.0, %v3992_v32  ;;  %v3468_v34 = vadd.f32 %v5658_v53, %v8644_v38 }
 0x4f9   : > { %v4053_v41 = vmul.f32 %v4037_v48, %v3653_v24  ;;  %v3702_v12 = vsel %vm3686_vm15, 1.0, %v8446_v35  ;;  %v3654_v46 = vmul.f32 0.5, %v8164_v45  ;;  %v3460_v14 = vadd.f32 %v5658_v53, %v8645_v11 }
 0x4fa   : > { %v3894_v25 = vadd.f32 0.2548296, %v3878_v42  ;;  %v4024_v18 = vmul.f32 %v4008_v54, %v3704_v36 }
 0x4fb   : > { %v4069_v26 = vmul.f32 %v4053_v41, %v3457_v56 }
 0x4fc   : > { %v3910_v8 = vmul.f32 %v8230_v10, %v3894_v25  ;;  %v4040_v15 = vadd.f32 1.0, %v4024_v18  ;;  %5164 = vmatmul.mubr.bf16.gmra.mrb[8].mxu0 %v4078_v29 }
 0x4fe   : > { %v3990_v13 = vmul.f32 %v5654_v0, %v3910_v8  ;;  %v4056_v40 = vmul.f32 %v4040_v15, %v3656_v58 }
 0x500   : > { %v4006_v5 = vsub.f32 1.0, %v3990_v13  ;;  %v4072_v51 = vmul.f32 %v4056_v40, %v3468_v34 }
 0x502   : > { %v4022_v31 = vmul.f32 %v4006_v5, %v3702_v12  ;;  %v4080_v10 = vpack.c.bf16 %v4072_v51, %v4071_v23 }
 0x504   : > { %v4038_v17 = vadd.f32 1.0, %v4022_v31 }
 0x506   : > { %v4054_v0 = vmul.f32 %v4038_v17, %v3654_v46 }
 0x508   : > { %v4070_v37 = vmul.f32 %v4054_v0, %v3460_v14 }
 0x50a   : > { %v4079_v52 = vpack.c.bf16 %v4070_v37, %v4069_v26 }
 0x50c   : > { %5167 = vmatprep.mubr.bf16.mxu0 %v4079_v52 }
 0x50d   : > { %5168 = vmatmul.mubr.bf16.gmra.mrb[12].mxu0 %v4080_v10 }
 0x5bf   : > { %v5157_v61 = vpop.f32.mrb[0].mxu0 }
 0x5c0   : > { %v4316_v35 = vadd.f32 %v5157_v61, %v4587_v2  ;;  %v4180_v44 = vpop.f32.mrb[1].mxu0 }
 0x5c1   : > { %v4314_v59 = vadd.f32 %v4587_v2, %v4180_v44  ;;  %v5158_v55 = vpop.f32.mrb[2].mxu0 }
 0x5c2   : > { %4332 = vst [vmem:[%s8283_s13 + $0x10] sm:$0xff] %v4316_v35  ;;  %v4317_v45 = vadd.f32 %v5158_v55, %v4587_v2  ;;  %v4183_v20 = vpop.f32.mrb[3].mxu0 }
 0x5c3   : > { %4330 = vst [vmem:[%s8283_s13] sm:$0xff] %v4314_v59  ;;  %v4315_v43 = vadd.f32 %v4587_v2, %v4183_v20 }
 0x5c4   : > { %4333 = vst [vmem:[%s8283_s13 + $0x18] sm:$0xff] %v4317_v45 }
 0x5c5   : > { %4331 = vst [vmem:[%s8283_s13 + $0x8] sm:$0xff] %v4315_v43 }
 0x5c7   : > { %v5161_v63 = vpop.f32.mrb[4].mxu0 }
 0x5c8   : > { %v4320_v62 = vadd.f32 %v5161_v63, %v4587_v2  ;;  %v4196_v22 = vpop.f32.mrb[5].mxu0 }
 0x5c9   : > { %v4318_v16 = vadd.f32 %v4587_v2, %v4196_v22  ;;  %v5162_v7 = vpop.f32.mrb[6].mxu0 }
 0x5ca   : > { %4336 = vst [vmem:[%s8283_s13 + $0x30] sm:$0xff] %v4320_v62  ;;  %v4321_v49 = vadd.f32 %v5162_v7, %v4587_v2  ;;  %v4199_v21 = vpop.f32.mrb[7].mxu0 }
 0x5cb   : > { %4334 = vst [vmem:[%s8283_s13 + $0x20] sm:$0xff] %v4318_v16  ;;  %v4319_v60 = vadd.f32 %v4587_v2, %v4199_v21 }
 0x5cc   : > { %4337 = vst [vmem:[%s8283_s13 + $0x38] sm:$0xff] %v4321_v49 }
 0x5cd   : > { %4335 = vst [vmem:[%s8283_s13 + $0x28] sm:$0xff] %v4319_v60 }
 0x5cf   : > { %v5165_v9 = vpop.f32.mrb[8].mxu0 }
 0x5d0   : > { %v4324_v3 = vadd.f32 %v5165_v9, %v4587_v2  ;;  %v4212_v19 = vpop.f32.mrb[9].mxu0 }
 0x5d1   : > { %v4322_v6 = vadd.f32 %v4587_v2, %v4212_v19  ;;  %v5166_v33 = vpop.f32.mrb[10].mxu0 }
 0x5d2   : > { %4340 = vst [vmem:[%s8283_s13 + $0x50] sm:$0xff] %v4324_v3  ;;  %v4325_v28 = vadd.f32 %v5166_v33, %v4587_v2  ;;  %v4215_v4 = vpop.f32.mrb[11].mxu0 }
 0x5d3   : > { %4338 = vst [vmem:[%s8283_s13 + $0x40] sm:$0xff] %v4322_v6  ;;  %v4323_v39 = vadd.f32 %v4587_v2, %v4215_v4 }
 0x5d4   : > { %4341 = vst [vmem:[%s8283_s13 + $0x58] sm:$0xff] %v4325_v28 }
 0x5d5   : > { %4339 = vst [vmem:[%s8283_s13 + $0x48] sm:$0xff] %v4323_v39 }
 0x5e0   : > { %v5169_v1 = vpop.f32.mrb[12].mxu0 }
 0x5e1   : > { %v4328_v29 = vadd.f32 %v5169_v1, %v4587_v2  ;;  %v4228_v57 = vpop.f32.mrb[13].mxu0 }
 0x5e2   : > { %v4326_v50 = vadd.f32 %v4587_v2, %v4228_v57  ;;  %v5170_v47 = vpop.f32.mrb[14].mxu0 }
 0x5e3   : > { %4344 = vst [vmem:[%s8283_s13 + $0x70] sm:$0xff] %v4328_v29  ;;  %v4329_v27 = vadd.f32 %v5170_v47, %v4587_v2  ;;  %v4231_v56 = vpop.f32.mrb[15].mxu0 }
 0x5e4   : > { %4342 = vst [vmem:[%s8283_s13 + $0x60] sm:$0xff] %v4326_v50  ;;  %v4327_v24 = vadd.f32 %v4587_v2, %v4231_v56 }
 0x5e5   : > { %4345 = vst [vmem:[%s8283_s13 + $0x78] sm:$0xff] %v4329_v27 }
 0x5e6   : > { %4343 = vst [vmem:[%s8283_s13 + $0x68] sm:$0xff] %v4327_v24 }
 0x5e7   : > { %5786 = shalt.err (!%p5783_p4)
}
 0x5e8   : > { %s5787_s29 = scalar_lea.hbm %s8303_s23, 2048  ;;  %s5791_s17 = scalar_lea.hbm %s8359_s7, 4096 }
 0x5e9   : > { %p5788_p9 = scmp.ne.s32.totalorder %s8303_s23, %s5787_s29  ;;  %p5792_p8 = scmp.lt.u32.totalorder %s8303_s23, %s8359_s7 }
 0x5ea   : > { %p5793_p13 = scmp.lt.u32.totalorder %s5791_s17, %s5787_s29  ;;  %p5795_p10 = scmp.lt.u32.totalorder %s5787_s29, %s8303_s23 }
 0x5eb   : > { %p5789_p0 = pnand %p5788_p9, %p6055_p5 }
 0x5ec   : > { %p5794_p6 = por %p5793_p13, %p5792_p8 }
 0x5ed   : > { %p5790_p11 = pneg %p5789_p0 }
 0x5ee   : > { %p5796_p3 = por %p5795_p10, %p5794_p6 }
 0x5f0   : > { %p5797_p7 = pnand %p5796_p3, %p5790_p11 }
 0x5f2   : > { %5800 = shalt.err (!%p5797_p7)
}
 0x5f3   : > { %s5859_s30 = smov 128   ;;  %s5860_s9 = smov 8  }
 0x5f4   : > { %5233 = dma.vmem_to_hbm [thread:$0]  (%p6055_p5), %s8305_s20, 2048, %s8303_s23, %s4347_s28, %s5859_s30, %s5859_s30, %s5860_s9  }
 0x5f5 PF: > { %s8646_s10 = sld [smem:[#allocation16_spill]]  ;;  %s4375_s11 = sand.u32 1, %s5835_s24  }
 0x5f6   : > { %p8648_p1 = scmp.ge.s32.totalorder %s5847_s27, 2  ;;  %s4376_s14 = scalar_lea.sflag [#allocation5], %s4375_s11 }
 0x5fb   : > { %p8647_p12 = scmp.ne.s32.totalorder %s8646_s10, 0 }
 0x5fd   : > { %p5250_p2 = pnand %p8648_p1, %p8647_p12 }
 0x5ff   : > { %5830 = dma.done.wait (!%p5250_p2), %s4376_s14, 2048  }
 0x600   : > { %5832 = vsyncadd (!%p5250_p2), %s4376_s14, 4294965248  ;;  %p22_p4 = scmp.ge.s32.totalorder %s6041_s22, 4   ;;  %s8649_s24 = smov %s5839_s25 }
 0x601   : > { %s8650_s25 = smov %s5843_s26  ;;  %s8651_s26 = smov %s6051_s18 }
 0x602   : > { %s8652_s27 = smov %s6041_s22  ;;  %24 = sbr.rel (!%p22_p4) target bundleno = 7 (0x7), region = 120 }
 0x609   :  { %4381 = vsyncpa [#allocation4], 1 }
 0x60a   :  { %4383 = vsyncpa [#allocation4 + $0x1], 1 }
 0x60b   :  { %4384 = vsyncpa [#allocation7], 1 }
 0x60c   :  { %4385 = vsyncpa [#allocation10], 1 }
 0x60d   :  { %4386 = vsyncpa [#allocation5], 1 }
 0x60e   :  { %4388 = vsyncpa [#allocation5 + $0x1], 1 }

</bundles_post_ra>
